<compile_context>
chip_gen: v7x
topology: tpu7x:2x2x1
jax: 0.10.0
libtpu: 0.0.40
codegen_flags: <defaults>
</compile_context>

<pallas_src>
import math
from functools import partial

import jax
import jax.numpy as jnp
from jax.experimental import pallas as pl
from jax.experimental.pallas import tpu as pltpu


def _round_up(x, m):
    return ((x + m - 1) // m) * m


# --------------------------------------------------------------------------- #
# Fused Pallas kernel: blend + cosine + gaussian kernels + packed window       #
# pooling + per-window kernel-weight contraction, per batch-block.             #
# --------------------------------------------------------------------------- #
def _tk_fused_kernel(mix_ref,                                   # SMEM (1,)
                     qo_ref, qc_ref, do_ref, dc_ref,            # (bt,Q8,E)/(bt,D,E)
                     qm_ref, dmc_ref, dmr_ref,                  # masks
                     poolT_ref, kwT_ref, scal_ref,              # grid-invariant
                     out_ref,                                   # (bt, W, C)
                     act_sc,                                     # VMEM (bt,K,Q8,D)
                     *, mu, coef):
    f32 = jnp.float32
    bt, Q8, _ = qo_ref.shape
    D = do_ref.shape[1]
    K = len(mu)
    W, KQ = kwT_ref.shape
    C = poolT_ref.shape[1]

    mix = mix_ref[0]                                            # scalar from SMEM
    qm = qm_ref[...]                                            # (bt, Q8, 1)
    dm = dmc_ref[...]                                           # (bt, D, 1)
    dmr = dmr_ref[...]                                          # (bt, 1, D)

    # mixer blend + masking + cosine, hoisted & batched over the whole block
    q = (mix * qo_ref[...] + (1.0 - mix) * qc_ref[...]) * qm    # (bt, Q8, E)
    d = (mix * do_ref[...] + (1.0 - mix) * dc_ref[...]) * dm    # (bt, D, E)
    q_inv = 1.0 / (jnp.sqrt(jnp.sum(q * q, axis=-1, keepdims=True)) + 1e-13)
    d_inv = 1.0 / (jnp.sqrt(jnp.sum(d * d, axis=-1, keepdims=True)) + 1e-13)
    cos = jnp.einsum("bqe,bde->bqd", q * q_inv, d * d_inv,
                     preferred_element_type=f32)                # (bt, Q8, D)
    qbd = qm * dmr                                              # (bt, Q8, D)
    cosm = jnp.tanh(cos * qbd)

    # gaussian kernel activations, staged chunk-by-chunk into the VMEM scratch
    # (K is tiny and static; each chunk's live range ends at its store, so no
    #  (K, bt, Q8, D) value ever lives in the register file -- see review #11)
    for kk in range(K):
        diff = cosm - mu[kk]
        act_sc[:, kk, :, :] = (jnp.exp(diff * diff * coef[kk]) * qbd
                               ).astype(act_sc.dtype)

    # ONE pooling matmul for all bt*K*Q8 rows against the packed 0/1 pooling
    # matrix shared by every window size (high MXU row occupancy)
    act2 = act_sc[...].reshape(bt * K * Q8, D)
    pkq = jnp.dot(act2, poolT_ref[...], preferred_element_type=f32)  # (btKQ8, C)
    pkq4 = pkq.reshape(bt, K, Q8, C)

    # reference-faithful row mask: sum over kernels of pooled activations != 0
    # (non-negative addends -> summation order cannot flip the test)
    rmask = (jnp.sum(pkq4, axis=1) != 0.0).astype(f32)               # (bt, Q8, C)
    masked = jnp.log(jnp.maximum(pkq4, 1e-10)) * rmask[:, None, :, :]
    masked = masked.reshape(bt, K * Q8, C)

    # per-window-size kernel-weight contraction on the MXU (depth K*Q8);
    # replaces W cross-sublane XLU reductions + lane-width-1 kw column loads
    kw_b = jnp.broadcast_to(kwT_ref[...][None, :, :], (bt, W, KQ))
    ws = jnp.einsum("bwr,brc->bwc", kw_b, masked,
                    preferred_element_type=f32)                      # (bt, W, C)
    scal = scal_ref[...][None, :, :]                                 # (1, W, 1)
    out_ref[...] = jnp.exp(ws * scal) * (ws != 0.0).astype(f32)


# --------------------------------------------------------------------------- #
# Generation-aware VMEM budgeting                                              #
# --------------------------------------------------------------------------- #
def _tpu_vmem_limit_bytes(requested):
    """~40 MiB cap on 64-MiB parts (v7x), 64 MiB on 128-MiB parts (v4/v5e/v6e),
    leaving headroom for Mosaic internal scratch / semaphores."""
    phys = None
    try:
        phys = getattr(pltpu.get_tpu_info(), "vmem_capacity_bytes", None)
    except Exception:
        phys = None
    if not phys:
        kind = ""
        try:
            kind = jax.devices()[0].device_kind.lower()
        except Exception:
            pass
        phys = 64 * 2**20 if "v7" in kind else 128 * 2**20
    cap = 40 * 2**20 if phys <= 64 * 2**20 else 64 * 2**20
    return cap if requested is None else min(int(requested), cap)


def _vmem_bytes_estimate(bt, Q8, D, E, K, W, C, pool_bytes, pool_bufs):
    """Per-grid-step VMEM footprint: double-buffered streamed blocks, the
    grid-invariant residents, and the in-kernel working set (staging scratch,
    (bt*K*Q8, C) pooled intermediates, blend/cosine temporaries)."""
    f32 = 4
    Dp, D8 = _round_up(D, 128), _round_up(D, 8)
    Ep = _round_up(E, 128)
    W8 = _round_up(W, 8)
    KQ = K * Q8
    stream = 2 * f32 * bt * (2 * Q8 * Ep + 2 * D8 * Ep           # q/d emb + ctx
                             + Q8 * 128 + D8 * 128 + 8 * Dp      # the 3 masks
                             + W8 * C)                           # output block
    invariant = pool_bufs * (pool_bytes * D8 * C                 # poolT
                             + f32 * (W8 * _round_up(KQ, 128)    # kw matrix
                                      + W8 * 128))               # nn scalers
    work = (pool_bytes * bt * KQ * Dp                            # act staging
            + 2 * f32 * bt * KQ * C                              # pkq + masked
            + f32 * bt * (Q8 * C                                 # rowsum / mask
                          + 3 * Q8 * Dp                          # cos/qbd/cosm
                          + 2 * (Q8 + D8) * Ep                   # blended + norm
                          + W8 * C))                             # ws
    return stream + invariant + work


def fused_tk_window_scores(q_emb, q_ctx, d_emb, d_ctx, q_mask, d_mask,
                           mixer, nn_scalers, kernel_weights,
                           kernels_mu, kernels_sigma, win_size, lengths,
                           max_batch_block=8, vmem_limit_bytes=None,
                           pool_matmul_dtype=jnp.float32):
    # pool_matmul_dtype=jnp.bfloat16 gives ~2x MXU + half the staging VMEM, but
    # the downstream log amplifies ~1e-3 relative error; default stays f32 for
    # bit-faithful scoring vs the PyTorch reference.
    B, Q, E = q_emb.shape
    D = d_emb.shape[1]
    K = len(kernels_mu)
    W = len(win_size)
    f32 = jnp.float32

    # packed pooled-column layout: window size i owns n_win[i] real columns at
    # a cumulative offset; one shared lane-dense pad to C (multiple of 128).
    n_wins = [lengths[i] // w for i, w in enumerate(win_size)]
    C = max(128, _round_up(sum(n_wins), 128))

    # pad query rows to a sublane multiple; padded rows are fully masked.
    Q8 = _round_up(Q, 8)
    if Q8 != Q:
        pad_q = [(0, 0), (0, Q8 - Q), (0, 0)]
        q_emb = jnp.pad(q_emb, pad_q)
        q_ctx = jnp.pad(q_ctx, pad_q)
        q_mask = jnp.pad(q_mask, [(0, 0), (0, Q8 - Q)])

    qm = q_mask[:, :, None].astype(f32)                          # (B, Q8, 1)
    dmc = d_mask[:, :, None].astype(f32)                         # (B, D, 1)
    dmr = d_mask[:, None, :].astype(f32)                         # (B, 1, D)
    mix = mixer.reshape(-1).astype(f32)[:1]                      # (1,)  -> SMEM

    # packed constant 0/1 pooling matrix (D, C); cumulatively padded doc
    # positions of the reference are all-zero contributions, so only the
    # window COUNTS (lengths) matter.
    d_idx = jnp.arange(D)[:, None]
    c_idx = jnp.arange(C)[None, :]
    poolT = jnp.zeros((D, C), f32)
    off = 0
    for i, w in enumerate(win_size):
        blk = (((d_idx // w) == (c_idx - off))
               & (c_idx >= off) & (c_idx < off + n_wins[i]))
        poolT = poolT + blk.astype(f32)
        off += n_wins[i]
    poolT = poolT.astype(pool_matmul_dtype)

    # (W, K*Q8) kernel-weight matrix: weight of kernel k replicated over Q8 rows
    kwT = jnp.stack([jnp.repeat(jnp.asarray(kw, f32).reshape(-1), Q8)
                     for kw in kernel_weights], axis=0).astype(f32)
    scal = jnp.concatenate([jnp.asarray(s, f32).reshape(-1)
                            for s in nn_scalers]).reshape(W, 1)

    vmem_limit = _tpu_vmem_limit_bytes(vmem_limit_bytes)
    budget = int(0.8 * vmem_limit)           # headroom for compiler temporaries
    pool_bytes = jnp.dtype(pool_matmul_dtype).itemsize

    kern = partial(
        _tk_fused_kernel,
        mu=tuple(float(m) for m in kernels_mu),
        coef=tuple(-1.0 / (2.0 * float(s) * float(s)) for s in kernels_sigma))

    def _call(single_buffer_invariants):
        pool_bufs = 1 if single_buffer_invariants else 2
        # batch block: biggest VMEM-safe divisor of B; keep >= 2 grid steps so
        # the single "parallel" axis spans both TensorCores on v7x (the one
        # extra ~0.35us step is noise on single-TC parts).
        bt = max(1, min(B, max_batch_block, B // 2 if B >= 2 else 1))
        while bt > 1 and (B % bt != 0 or _vmem_bytes_estimate(
                bt, Q8, D, E, K, W, C, pool_bytes, pool_bufs) > budget):
            bt -= 1

        def inv_spec(shape):
            imap = lambda i, _n=len(shape): (0,) * _n
            if single_buffer_invariants:
                # grid-invariant block: a second pipeline buffer is pure waste
                return pl.BlockSpec(shape, imap, pipeline_mode=pl.Buffered(1))
            return pl.BlockSpec(shape, imap)

        return pl.pallas_call(
            kern,
            out_shape=jax.ShapeDtypeStruct((B, W, C), f32),
            grid=(B // bt,),
            in_specs=[
                pl.BlockSpec(memory_space=pltpu.MemorySpace.SMEM),    # mixer
                pl.BlockSpec((bt, Q8, E), lambda i: (i, 0, 0)),       # q_emb
                pl.BlockSpec((bt, Q8, E), lambda i: (i, 0, 0)),       # q_ctx
                pl.BlockSpec((bt, D, E), lambda i: (i, 0, 0)),        # d_emb
                pl.BlockSpec((bt, D, E), lambda i: (i, 0, 0)),        # d_ctx
                pl.BlockSpec((bt, Q8, 1), lambda i: (i, 0, 0)),       # q mask
                pl.BlockSpec((bt, D, 1), lambda i: (i, 0, 0)),        # d mask col
                pl.BlockSpec((bt, 1, D), lambda i: (i, 0, 0)),        # d mask row
                inv_spec((D, C)),                                     # poolT
                inv_spec((W, K * Q8)),                                # kw matrix
                inv_spec((W, 1)),                                     # nn scalers
            ],
            out_specs=pl.BlockSpec((bt, W, C), lambda i: (i, 0, 0)),
            scratch_shapes=[pltpu.VMEM((bt, K, Q8, D), pool_matmul_dtype)],
            compiler_params=pltpu.CompilerParams(
                dimension_semantics=("parallel",),
                vmem_limit_bytes=vmem_limit),
        )(mix, q_emb, q_ctx, d_emb, d_ctx, qm, dmc, dmr, poolT, kwT, scal)

    try:
        return _call(True)
    except Exception:
        # pl.Buffered(1) / pipeline_mode unsupported on this jax version:
        # fall back to default double buffering of the invariant blocks.
        return _call(False)


# --------------------------------------------------------------------------- #
# Stacked self-attention contextualizer (AllenNLP semantics) in plain JAX      #
# --------------------------------------------------------------------------- #
def _layer_norm(x, gamma, beta, eps=1e-6):
    mean = jnp.mean(x, axis=-1, keepdims=True)
    std = jnp.sqrt(jnp.mean((x - mean) ** 2, axis=-1, keepdims=True))
    return gamma * (x - mean) / (std + eps) + beta


def _add_positional_features(x, min_timescale=1.0, max_timescale=1.0e4):
    _, T, H = x.shape
    num_timescales = H // 2
    timesteps = jnp.arange(T, dtype=jnp.float32)
    log_inc = math.log(max_timescale / min_timescale) / max(num_timescales - 1, 1)
    inv = min_timescale * jnp.exp(
        jnp.arange(num_timescales, dtype=jnp.float32) * -log_inc)
    scaled = timesteps[:, None] * inv[None, :]
    sinusoids = jnp.concatenate([jnp.sin(scaled), jnp.cos(scaled)], axis=1)
    if H % 2 != 0:
        sinusoids = jnp.pad(sinusoids, ((0, 0), (0, 1)))
    return x + sinusoids[None, :, :]


def _multihead_self_attention(x, mask, p, num_heads, attn_dim, values_dim):
    B, T, E = x.shape
    comb = x @ p["w_comb"].T + p["b_comb"]
    q = comb[..., :attn_dim]
    k = comb[..., attn_dim:2 * attn_dim]
    v = comb[..., 2 * attn_dim:]
    scale = float(E // num_heads) ** 0.5
    dq = attn_dim // num_heads
    dv = values_dim // num_heads

    def split_heads(t, dh):
        return t.reshape(B, T, num_heads, dh).transpose(0, 2, 1, 3).reshape(
            B * num_heads, T, dh)

    qh, kh, vh = split_heads(q, dq), split_heads(k, dq), split_heads(v, dv)
    sims = jnp.einsum("btd,bsd->bts", qh / scale, kh)               # (B*H, T, T)
    m = jnp.tile(mask, (1, num_heads)).reshape(B * num_heads, T)[:, None, :]
    att = jax.nn.softmax(sims * m, axis=-1)
    att = att * m
    att = att / (jnp.sum(att, axis=-1, keepdims=True) + 1e-13)
    out = jnp.einsum("bts,bsd->btd", att, vh)
    out = out.reshape(B, num_heads, T, dv).transpose(0, 2, 1, 3).reshape(
        B, T, values_dim)
    return out @ p["w_out"].T + p["b_out"]


def stacked_self_attention(x, mask, enc_params, num_heads, attn_dim, values_dim):
    out = _add_positional_features(x)
    for p in enc_params:
        cached = out
        ff = jax.nn.relu(out @ p["ff_w1"].T + p["ff_b1"]) @ p["ff_w2"].T + p["ff_b2"]
        if ff.shape == cached.shape:
            ff = _layer_norm(ff + cached, p["ff_ln_g"], p["ff_ln_b"])
        att = _multihead_self_attention(ff, mask, p, num_heads, attn_dim, values_dim)
        out = _layer_norm(att + ff, p["ln_g"], p["ln_b"])
    return out


# --------------------------------------------------------------------------- #
# Parameters (deterministic synthetic init)                                    #
# --------------------------------------------------------------------------- #
def make_tk_params(seed, embsize, att_heads, att_layer, att_proj_dim, att_ff_dim,
                   kernels_mu, kernels_sigma, win_size, max_windows):
    key = jax.random.PRNGKey(seed)

    def nxt():
        nonlocal key
        key, sub = jax.random.split(key)
        return sub

    def lin(out_d, in_d, scale=0.1):
        return scale * jax.random.normal(nxt(), (out_d, in_d), dtype=jnp.float32)

    enc = []
    for _ in range(att_layer):
        enc.append(dict(
            ff_w1=lin(att_ff_dim, embsize),
            ff_b1=jnp.zeros((att_ff_dim,), jnp.float32),
            ff_w2=lin(embsize, att_ff_dim),
            ff_b2=jnp.zeros((embsize,), jnp.float32),
            ff_ln_g=jnp.ones((embsize,), jnp.float32),
            ff_ln_b=jnp.zeros((embsize,), jnp.float32),
            w_comb=lin(3 * att_proj_dim, embsize),
            b_comb=jnp.zeros((3 * att_proj_dim,), jnp.float32),
            w_out=lin(embsize, att_proj_dim),
            b_out=jnp.zeros((embsize,), jnp.float32),
            ln_g=jnp.ones((embsize,), jnp.float32),
            ln_b=jnp.zeros((embsize,), jnp.float32),
        ))

    K = len(kernels_mu)
    return dict(
        mu=jnp.asarray(kernels_mu, jnp.float32),
        sigma=jnp.asarray(kernels_sigma, jnp.float32),
        mixer=jnp.full((1, 1, 1), 0.5, jnp.float32),
        encoder=enc,
        kernel_weights=[lin(1, K) for _ in win_size],
        nn_scaler=[jnp.full((1,), 0.01, jnp.float32) for _ in win_size],
        window_scorer=[jnp.full((1, mw), 1.0 / mw, jnp.float32) for mw in max_windows],
        window_merger=lin(1, len(win_size)),
    )


# --------------------------------------------------------------------------- #
# Full TK_v2 forward                                                           #
# --------------------------------------------------------------------------- #
def tk_v2_forward(params, q_emb, d_emb, q_mask, d_mask,
                  att_heads, att_proj_dim, win_size, max_windows,
                  kernels_mu, kernels_sigma):
    q_emb = q_emb * q_mask[:, :, None]
    d_emb = d_emb * d_mask[:, :, None]

    q_ctx = stacked_self_attention(q_emb, q_mask, params["encoder"],
                                   att_heads, att_proj_dim, att_proj_dim)
    d_ctx = stacked_self_attention(d_emb, d_mask, params["encoder"],
                                   att_heads, att_proj_dim, att_proj_dim)

    # Cumulative doc-axis padding of the PyTorch loop: only the resulting
    # window COUNTS matter (padded positions are all-zero contributions).
    D = d_emb.shape[1]
    lengths, L = [], D
    for w in win_size:
        L = L + (w - (L % w))
        lengths.append(L)

    wse = fused_tk_window_scores(
        q_emb, q_ctx, d_emb, d_ctx, q_mask, d_mask,
        params["mixer"], params["nn_scaler"], params["kernel_weights"],
        kernels_mu, kernels_sigma, win_size, lengths)        # (B, W, C) packed

    per_window = []
    off = 0
    for i, w in enumerate(win_size):
        n_win = lengths[i] // w
        v = wse[:, i, off:off + n_win]
        off += n_win
        mw = max_windows[i]
        if n_win > mw:
            v = v[:, :mw]
        elif n_win < mw:
            v = jnp.pad(v, ((0, 0), (0, mw - n_win)))
        # TODO(synk): descending sort has no clean Pallas TPU equivalent; done in JAX.
        v = jnp.flip(jnp.sort(v, axis=-1), axis=-1)
        per_window.append(v @ params["window_scorer"][i].T)   # (B, 1)

    final = jnp.concatenate(per_window, axis=1) @ params["window_merger"].T
    return final[:, 0]                                        # (B,)


# --------------------------------------------------------------------------- #
if __name__ == "__main__":
    B, Q, D, E = 2, 6, 12, 32
    att_heads, att_layer, att_proj_dim, att_ff_dim = 2, 2, 16, 32
    kernels_mu = [1.0, 0.9, 0.7, 0.5, 0.3, 0.1, -0.1, -0.3, -0.5, -0.7, -0.9]
    kernels_sigma = [0.1] * len(kernels_mu)
    win_size = [2, 3, 4]
    max_doc_length = D
    max_windows = [math.ceil(max_doc_length / float(w)) for w in win_size]

    params = make_tk_params(0, E, att_heads, att_layer, att_proj_dim, att_ff_dim,
                            kernels_mu, kernels_sigma, win_size, max_windows)

    key = jax.random.PRNGKey(0)
    k1, k2 = jax.random.split(key)
    q_emb = jax.random.normal(k1, (B, Q, E), jnp.float32)
    d_emb = jax.random.normal(k2, (B, D, E), jnp.float32)
    q_len = jnp.array([6, 4])
    d_len = jnp.array([12, 9])
    q_mask = (jnp.arange(Q)[None, :] < q_len[:, None]).astype(jnp.float32)
    d_mask = (jnp.arange(D)[None, :] < d_len[:, None]).astype(jnp.float32)

    score = tk_v2_forward(params, q_emb, d_emb, q_mask, d_mask,
                          att_heads, att_proj_dim, win_size, max_windows,
                          kernels_mu, kernels_sigma)
    jax.block_until_ready(score)
    assert score.shape == (B,) and score.dtype == jnp.float32
    print("KERNEL_OK")
</pallas_src>

<mosaic_0001>
module attributes {stable_mosaic.version = 11 : i64} {
  func.func @_tk_fused_kernel(%arg0: i32, %arg1: memref<1xf32, #tpu.memory_space<smem>>, %arg2: memref<1x8x32xf32, #tpu.memory_space<vmem>>, %arg3: memref<1x8x32xf32, #tpu.memory_space<vmem>>, %arg4: memref<1x12x32xf32, #tpu.memory_space<vmem>>, %arg5: memref<1x12x32xf32, #tpu.memory_space<vmem>>, %arg6: memref<1x8x1xf32, #tpu.memory_space<vmem>>, %arg7: memref<1x12x1xf32, #tpu.memory_space<vmem>>, %arg8: memref<1x1x12xf32, #tpu.memory_space<vmem>>, %arg9: memref<12x128xf32, #tpu.memory_space<vmem>>, %arg10: memref<3x88xf32, #tpu.memory_space<vmem>>, %arg11: memref<3x1xf32, #tpu.memory_space<vmem>>, %arg12: memref<1x3x128xf32, #tpu.memory_space<vmem>>, %arg13: memref<1x11x8x12xf32, #tpu.memory_space<vmem>>) attributes {dimension_semantics = [#tpu.dimension_semantics<parallel>], iteration_bounds = array<i64: 2>, scalar_prefetch = 0 : i64, scratch_operands = 1 : i64, tpu.core_type = #tpu.core_type<tc>, window_params = [{transform_indices = @transform_0, window_bounds = array<i64: 1>}, {transform_indices = @transform_1, window_bounds = array<i64: 1, 8, 32>}, {transform_indices = @transform_2, window_bounds = array<i64: 1, 8, 32>}, {transform_indices = @transform_3, window_bounds = array<i64: 1, 12, 32>}, {transform_indices = @transform_4, window_bounds = array<i64: 1, 12, 32>}, {transform_indices = @transform_5, window_bounds = array<i64: 1, 8, 1>}, {transform_indices = @transform_6, window_bounds = array<i64: 1, 12, 1>}, {transform_indices = @transform_7, window_bounds = array<i64: 1, 1, 12>}, {pipeline_mode = #tpu.pipeline_mode<synchronous>, transform_indices = @transform_8, window_bounds = array<i64: 12, 128>}, {pipeline_mode = #tpu.pipeline_mode<synchronous>, transform_indices = @transform_9, window_bounds = array<i64: 3, 88>}, {pipeline_mode = #tpu.pipeline_mode<synchronous>, transform_indices = @transform_10, window_bounds = array<i64: 3, 1>}, {transform_indices = @transform_11, window_bounds = array<i64: 1, 3, 128>}]} {
    %c0 = arith.constant 0 : index
    %0 = memref.load %arg1[%c0] : memref<1xf32, #tpu.memory_space<smem>>
    %c0_0 = arith.constant 0 : index
    %c0_1 = arith.constant 0 : index
    %c0_2 = arith.constant 0 : index
    %1 = vector.load %arg6[%c0_0, %c0_1, %c0_2] : memref<1x8x1xf32, #tpu.memory_space<vmem>>, vector<1x8x1xf32>
    %c0_3 = arith.constant 0 : index
    %c0_4 = arith.constant 0 : index
    %c0_5 = arith.constant 0 : index
    %2 = vector.load %arg7[%c0_3, %c0_4, %c0_5] : memref<1x12x1xf32, #tpu.memory_space<vmem>>, vector<1x12x1xf32>
    %c0_6 = arith.constant 0 : index
    %c0_7 = arith.constant 0 : index
    %c0_8 = arith.constant 0 : index
    %3 = vector.load %arg8[%c0_6, %c0_7, %c0_8] : memref<1x1x12xf32, #tpu.memory_space<vmem>>, vector<1x1x12xf32>
    %c0_9 = arith.constant 0 : index
    %c0_10 = arith.constant 0 : index
    %c0_11 = arith.constant 0 : index
    %4 = vector.load %arg2[%c0_9, %c0_10, %c0_11] : memref<1x8x32xf32, #tpu.memory_space<vmem>>, vector<1x8x32xf32>
    %5 = vector.broadcast %0 : f32 to vector<1x8x32xf32>
    %6 = arith.mulf %5, %4 : vector<1x8x32xf32>
    %cst = arith.constant 1.000000e+00 : f32
    %7 = arith.subf %cst, %0 : f32
    %c0_12 = arith.constant 0 : index
    %c0_13 = arith.constant 0 : index
    %c0_14 = arith.constant 0 : index
    %8 = vector.load %arg3[%c0_12, %c0_13, %c0_14] : memref<1x8x32xf32, #tpu.memory_space<vmem>>, vector<1x8x32xf32>
    %9 = vector.broadcast %7 : f32 to vector<1x8x32xf32>
    %10 = arith.mulf %9, %8 : vector<1x8x32xf32>
    %11 = arith.addf %6, %10 : vector<1x8x32xf32>
    %12 = vector.broadcast %1 : vector<1x8x1xf32> to vector<1x8x32xf32>
    %13 = arith.mulf %11, %12 : vector<1x8x32xf32>
    %c0_15 = arith.constant 0 : index
    %c0_16 = arith.constant 0 : index
    %c0_17 = arith.constant 0 : index
    %14 = vector.load %arg4[%c0_15, %c0_16, %c0_17] : memref<1x12x32xf32, #tpu.memory_space<vmem>>, vector<1x12x32xf32>
    %15 = vector.broadcast %0 : f32 to vector<1x12x32xf32>
    %16 = arith.mulf %15, %14 : vector<1x12x32xf32>
    %cst_18 = arith.constant 1.000000e+00 : f32
    %17 = arith.subf %cst_18, %0 : f32
    %c0_19 = arith.constant 0 : index
    %c0_20 = arith.constant 0 : index
    %c0_21 = arith.constant 0 : index
    %18 = vector.load %arg5[%c0_19, %c0_20, %c0_21] : memref<1x12x32xf32, #tpu.memory_space<vmem>>, vector<1x12x32xf32>
    %19 = vector.broadcast %17 : f32 to vector<1x12x32xf32>
    %20 = arith.mulf %19, %18 : vector<1x12x32xf32>
    %21 = arith.addf %16, %20 : vector<1x12x32xf32>
    %22 = vector.broadcast %2 : vector<1x12x1xf32> to vector<1x12x32xf32>
    %23 = arith.mulf %21, %22 : vector<1x12x32xf32>
    %24 = arith.mulf %13, %13 : vector<1x8x32xf32>
    %cst_22 = arith.constant dense<0.000000e+00> : vector<1x8xf32>
    %25 = vector.multi_reduction <add>, %24, %cst_22 [2] : vector<1x8x32xf32> to vector<1x8xf32>
    %26 = vector.shape_cast %25 : vector<1x8xf32> to vector<1x8x1xf32>
    %27 = math.sqrt %26 : vector<1x8x1xf32>
    %cst_23 = arith.constant 9.99999982E-14 : f32
    %28 = vector.broadcast %cst_23 : f32 to vector<1x8x1xf32>
    %29 = arith.addf %27, %28 : vector<1x8x1xf32>
    %cst_24 = arith.constant 1.000000e+00 : f32
    %30 = vector.broadcast %cst_24 : f32 to vector<1x8x1xf32>
    %31 = arith.divf %30, %29 : vector<1x8x1xf32>
    %32 = arith.mulf %23, %23 : vector<1x12x32xf32>
    %cst_25 = arith.constant dense<0.000000e+00> : vector<1x12xf32>
    %33 = vector.multi_reduction <add>, %32, %cst_25 [2] : vector<1x12x32xf32> to vector<1x12xf32>
    %34 = vector.shape_cast %33 : vector<1x12xf32> to vector<1x12x1xf32>
    %35 = math.sqrt %34 : vector<1x12x1xf32>
    %cst_26 = arith.constant 9.99999982E-14 : f32
    %36 = vector.broadcast %cst_26 : f32 to vector<1x12x1xf32>
    %37 = arith.addf %35, %36 : vector<1x12x1xf32>
    %cst_27 = arith.constant 1.000000e+00 : f32
    %38 = vector.broadcast %cst_27 : f32 to vector<1x12x1xf32>
    %39 = arith.divf %38, %37 : vector<1x12x1xf32>
    %40 = vector.broadcast %31 : vector<1x8x1xf32> to vector<1x8x32xf32>
    %41 = arith.mulf %13, %40 : vector<1x8x32xf32>
    %42 = vector.broadcast %39 : vector<1x12x1xf32> to vector<1x12x32xf32>
    %43 = arith.mulf %23, %42 : vector<1x12x32xf32>
    "tpu.trace_start"() <{level = 10 : i32, message = "bqe,bde->bqd"}> : () -> ()
    %cst_28 = arith.constant dense<0.000000e+00> : vector<1x8x12xf32>
    %44 = tpu.matmul %41, %43, %cst_28 {dimension_numbers = #tpu.dot_dimension_numbers<[2], [2], [1], [1], [0, 0, 0, 1, 1, 1], [0], [0]>} : vector<1x8x32xf32>, vector<1x12x32xf32>, vector<1x8x12xf32> -> vector<1x8x12xf32>
    "tpu.trace_stop"() : () -> ()
    %45 = vector.broadcast %1 : vector<1x8x1xf32> to vector<1x8x12xf32>
    %46 = vector.broadcast %3 : vector<1x1x12xf32> to vector<1x8x12xf32>
    %47 = arith.mulf %45, %46 : vector<1x8x12xf32>
    %48 = arith.mulf %44, %47 : vector<1x8x12xf32>
    %49 = math.tanh %48 : vector<1x8x12xf32>
    %cst_29 = arith.constant 1.000000e+00 : f32
    %50 = vector.broadcast %cst_29 : f32 to vector<1x8x12xf32>
    %51 = arith.subf %49, %50 : vector<1x8x12xf32>
    %52 = arith.mulf %51, %51 : vector<1x8x12xf32>
    %cst_30 = arith.constant -5.000000e+01 : f32
    %53 = vector.broadcast %cst_30 : f32 to vector<1x8x12xf32>
    %54 = arith.mulf %52, %53 : vector<1x8x12xf32>
    %55 = math.exp %54 : vector<1x8x12xf32>
    %56 = arith.mulf %55, %47 : vector<1x8x12xf32>
    %c0_31 = arith.constant 0 : index
    %c0_32 = arith.constant 0 : index
    %c0_33 = arith.constant 0 : index
    %c0_34 = arith.constant 0 : index
    %57 = vector.load %arg13[%c0_31, %c0_32, %c0_33, %c0_34] : memref<1x11x8x12xf32, #tpu.memory_space<vmem>>, vector<1x1x8x12xf32>
    %58 = vector.shape_cast %57 : vector<1x1x8x12xf32> to vector<1x8x12xf32>
    %59 = vector.shape_cast %56 : vector<1x8x12xf32> to vector<1x1x8x12xf32>
    tpu.vector_store %arg13[%c0_31, %c0_32, %c0_33, %c0_34], %59 {strides = array<i32>} : memref<1x11x8x12xf32, #tpu.memory_space<vmem>>, vector<1x1x8x12xf32>,
    %cst_35 = arith.constant 0.899999976 : f32
    %60 = vector.broadcast %cst_35 : f32 to vector<1x8x12xf32>
    %61 = arith.subf %49, %60 : vector<1x8x12xf32>
    %62 = arith.mulf %61, %61 : vector<1x8x12xf32>
    %cst_36 = arith.constant -5.000000e+01 : f32
    %63 = vector.broadcast %cst_36 : f32 to vector<1x8x12xf32>
    %64 = arith.mulf %62, %63 : vector<1x8x12xf32>
    %65 = math.exp %64 : vector<1x8x12xf32>
    %66 = arith.mulf %65, %47 : vector<1x8x12xf32>
    %c0_37 = arith.constant 0 : index
    %c1 = arith.constant 1 : index
    %c0_38 = arith.constant 0 : index
    %c0_39 = arith.constant 0 : index
    %67 = vector.load %arg13[%c0_37, %c1, %c0_38, %c0_39] : memref<1x11x8x12xf32, #tpu.memory_space<vmem>>, vector<1x1x8x12xf32>
    %68 = vector.shape_cast %67 : vector<1x1x8x12xf32> to vector<1x8x12xf32>
    %69 = vector.shape_cast %66 : vector<1x8x12xf32> to vector<1x1x8x12xf32>
    tpu.vector_store %arg13[%c0_37, %c1, %c0_38, %c0_39], %69 {strides = array<i32>} : memref<1x11x8x12xf32, #tpu.memory_space<vmem>>, vector<1x1x8x12xf32>,
    %cst_40 = arith.constant 0.699999988 : f32
    %70 = vector.broadcast %cst_40 : f32 to vector<1x8x12xf32>
    %71 = arith.subf %49, %70 : vector<1x8x12xf32>
    %72 = arith.mulf %71, %71 : vector<1x8x12xf32>
    %cst_41 = arith.constant -5.000000e+01 : f32
    %73 = vector.broadcast %cst_41 : f32 to vector<1x8x12xf32>
    %74 = arith.mulf %72, %73 : vector<1x8x12xf32>
    %75 = math.exp %74 : vector<1x8x12xf32>
    %76 = arith.mulf %75, %47 : vector<1x8x12xf32>
    %c0_42 = arith.constant 0 : index
    %c2 = arith.constant 2 : index
    %c0_43 = arith.constant 0 : index
    %c0_44 = arith.constant 0 : index
    %77 = vector.load %arg13[%c0_42, %c2, %c0_43, %c0_44] : memref<1x11x8x12xf32, #tpu.memory_space<vmem>>, vector<1x1x8x12xf32>
    %78 = vector.shape_cast %77 : vector<1x1x8x12xf32> to vector<1x8x12xf32>
    %79 = vector.shape_cast %76 : vector<1x8x12xf32> to vector<1x1x8x12xf32>
    tpu.vector_store %arg13[%c0_42, %c2, %c0_43, %c0_44], %79 {strides = array<i32>} : memref<1x11x8x12xf32, #tpu.memory_space<vmem>>, vector<1x1x8x12xf32>,
    %cst_45 = arith.constant 5.000000e-01 : f32
    %80 = vector.broadcast %cst_45 : f32 to vector<1x8x12xf32>
    %81 = arith.subf %49, %80 : vector<1x8x12xf32>
    %82 = arith.mulf %81, %81 : vector<1x8x12xf32>
    %cst_46 = arith.constant -5.000000e+01 : f32
    %83 = vector.broadcast %cst_46 : f32 to vector<1x8x12xf32>
    %84 = arith.mulf %82, %83 : vector<1x8x12xf32>
    %85 = math.exp %84 : vector<1x8x12xf32>
    %86 = arith.mulf %85, %47 : vector<1x8x12xf32>
    %c0_47 = arith.constant 0 : index
    %c3 = arith.constant 3 : index
    %c0_48 = arith.constant 0 : index
    %c0_49 = arith.constant 0 : index
    %87 = vector.load %arg13[%c0_47, %c3, %c0_48, %c0_49] : memref<1x11x8x12xf32, #tpu.memory_space<vmem>>, vector<1x1x8x12xf32>
    %88 = vector.shape_cast %87 : vector<1x1x8x12xf32> to vector<1x8x12xf32>
    %89 = vector.shape_cast %86 : vector<1x8x12xf32> to vector<1x1x8x12xf32>
    tpu.vector_store %arg13[%c0_47, %c3, %c0_48, %c0_49], %89 {strides = array<i32>} : memref<1x11x8x12xf32, #tpu.memory_space<vmem>>, vector<1x1x8x12xf32>,
    %cst_50 = arith.constant 3.000000e-01 : f32
    %90 = vector.broadcast %cst_50 : f32 to vector<1x8x12xf32>
    %91 = arith.subf %49, %90 : vector<1x8x12xf32>
    %92 = arith.mulf %91, %91 : vector<1x8x12xf32>
    %cst_51 = arith.constant -5.000000e+01 : f32
    %93 = vector.broadcast %cst_51 : f32 to vector<1x8x12xf32>
    %94 = arith.mulf %92, %93 : vector<1x8x12xf32>
    %95 = math.exp %94 : vector<1x8x12xf32>
    %96 = arith.mulf %95, %47 : vector<1x8x12xf32>
    %c0_52 = arith.constant 0 : index
    %c4 = arith.constant 4 : index
    %c0_53 = arith.constant 0 : index
    %c0_54 = arith.constant 0 : index
    %97 = vector.load %arg13[%c0_52, %c4, %c0_53, %c0_54] : memref<1x11x8x12xf32, #tpu.memory_space<vmem>>, vector<1x1x8x12xf32>
    %98 = vector.shape_cast %97 : vector<1x1x8x12xf32> to vector<1x8x12xf32>
    %99 = vector.shape_cast %96 : vector<1x8x12xf32> to vector<1x1x8x12xf32>
    tpu.vector_store %arg13[%c0_52, %c4, %c0_53, %c0_54], %99 {strides = array<i32>} : memref<1x11x8x12xf32, #tpu.memory_space<vmem>>, vector<1x1x8x12xf32>,
    %cst_55 = arith.constant 1.000000e-01 : f32
    %100 = vector.broadcast %cst_55 : f32 to vector<1x8x12xf32>
    %101 = arith.subf %49, %100 : vector<1x8x12xf32>
    %102 = arith.mulf %101, %101 : vector<1x8x12xf32>
    %cst_56 = arith.constant -5.000000e+01 : f32
    %103 = vector.broadcast %cst_56 : f32 to vector<1x8x12xf32>
    %104 = arith.mulf %102, %103 : vector<1x8x12xf32>
    %105 = math.exp %104 : vector<1x8x12xf32>
    %106 = arith.mulf %105, %47 : vector<1x8x12xf32>
    %c0_57 = arith.constant 0 : index
    %c5 = arith.constant 5 : index
    %c0_58 = arith.constant 0 : index
    %c0_59 = arith.constant 0 : index
    %107 = vector.load %arg13[%c0_57, %c5, %c0_58, %c0_59] : memref<1x11x8x12xf32, #tpu.memory_space<vmem>>, vector<1x1x8x12xf32>
    %108 = vector.shape_cast %107 : vector<1x1x8x12xf32> to vector<1x8x12xf32>
    %109 = vector.shape_cast %106 : vector<1x8x12xf32> to vector<1x1x8x12xf32>
    tpu.vector_store %arg13[%c0_57, %c5, %c0_58, %c0_59], %109 {strides = array<i32>} : memref<1x11x8x12xf32, #tpu.memory_space<vmem>>, vector<1x1x8x12xf32>,
    %cst_60 = arith.constant -1.000000e-01 : f32
    %110 = vector.broadcast %cst_60 : f32 to vector<1x8x12xf32>
    %111 = arith.subf %49, %110 : vector<1x8x12xf32>
    %112 = arith.mulf %111, %111 : vector<1x8x12xf32>
    %cst_61 = arith.constant -5.000000e+01 : f32
    %113 = vector.broadcast %cst_61 : f32 to vector<1x8x12xf32>
    %114 = arith.mulf %112, %113 : vector<1x8x12xf32>
    %115 = math.exp %114 : vector<1x8x12xf32>
    %116 = arith.mulf %115, %47 : vector<1x8x12xf32>
    %c0_62 = arith.constant 0 : index
    %c6 = arith.constant 6 : index
    %c0_63 = arith.constant 0 : index
    %c0_64 = arith.constant 0 : index
    %117 = vector.load %arg13[%c0_62, %c6, %c0_63, %c0_64] : memref<1x11x8x12xf32, #tpu.memory_space<vmem>>, vector<1x1x8x12xf32>
    %118 = vector.shape_cast %117 : vector<1x1x8x12xf32> to vector<1x8x12xf32>
    %119 = vector.shape_cast %116 : vector<1x8x12xf32> to vector<1x1x8x12xf32>
    tpu.vector_store %arg13[%c0_62, %c6, %c0_63, %c0_64], %119 {strides = array<i32>} : memref<1x11x8x12xf32, #tpu.memory_space<vmem>>, vector<1x1x8x12xf32>,
    %cst_65 = arith.constant -3.000000e-01 : f32
    %120 = vector.broadcast %cst_65 : f32 to vector<1x8x12xf32>
    %121 = arith.subf %49, %120 : vector<1x8x12xf32>
    %122 = arith.mulf %121, %121 : vector<1x8x12xf32>
    %cst_66 = arith.constant -5.000000e+01 : f32
    %123 = vector.broadcast %cst_66 : f32 to vector<1x8x12xf32>
    %124 = arith.mulf %122, %123 : vector<1x8x12xf32>
    %125 = math.exp %124 : vector<1x8x12xf32>
    %126 = arith.mulf %125, %47 : vector<1x8x12xf32>
    %c0_67 = arith.constant 0 : index
    %c7 = arith.constant 7 : index
    %c0_68 = arith.constant 0 : index
    %c0_69 = arith.constant 0 : index
    %127 = vector.load %arg13[%c0_67, %c7, %c0_68, %c0_69] : memref<1x11x8x12xf32, #tpu.memory_space<vmem>>, vector<1x1x8x12xf32>
    %128 = vector.shape_cast %127 : vector<1x1x8x12xf32> to vector<1x8x12xf32>
    %129 = vector.shape_cast %126 : vector<1x8x12xf32> to vector<1x1x8x12xf32>
    tpu.vector_store %arg13[%c0_67, %c7, %c0_68, %c0_69], %129 {strides = array<i32>} : memref<1x11x8x12xf32, #tpu.memory_space<vmem>>, vector<1x1x8x12xf32>,
    %cst_70 = arith.constant -5.000000e-01 : f32
    %130 = vector.broadcast %cst_70 : f32 to vector<1x8x12xf32>
    %131 = arith.subf %49, %130 : vector<1x8x12xf32>
    %132 = arith.mulf %131, %131 : vector<1x8x12xf32>
    %cst_71 = arith.constant -5.000000e+01 : f32
    %133 = vector.broadcast %cst_71 : f32 to vector<1x8x12xf32>
    %134 = arith.mulf %132, %133 : vector<1x8x12xf32>
    %135 = math.exp %134 : vector<1x8x12xf32>
    %136 = arith.mulf %135, %47 : vector<1x8x12xf32>
    %c0_72 = arith.constant 0 : index
    %c8 = arith.constant 8 : index
    %c0_73 = arith.constant 0 : index
    %c0_74 = arith.constant 0 : index
    %137 = vector.load %arg13[%c0_72, %c8, %c0_73, %c0_74] : memref<1x11x8x12xf32, #tpu.memory_space<vmem>>, vector<1x1x8x12xf32>
    %138 = vector.shape_cast %137 : vector<1x1x8x12xf32> to vector<1x8x12xf32>
    %139 = vector.shape_cast %136 : vector<1x8x12xf32> to vector<1x1x8x12xf32>
    tpu.vector_store %arg13[%c0_72, %c8, %c0_73, %c0_74], %139 {strides = array<i32>} : memref<1x11x8x12xf32, #tpu.memory_space<vmem>>, vector<1x1x8x12xf32>,
    %cst_75 = arith.constant -0.699999988 : f32
    %140 = vector.broadcast %cst_75 : f32 to vector<1x8x12xf32>
    %141 = arith.subf %49, %140 : vector<1x8x12xf32>
    %142 = arith.mulf %141, %141 : vector<1x8x12xf32>
    %cst_76 = arith.constant -5.000000e+01 : f32
    %143 = vector.broadcast %cst_76 : f32 to vector<1x8x12xf32>
    %144 = arith.mulf %142, %143 : vector<1x8x12xf32>
    %145 = math.exp %144 : vector<1x8x12xf32>
    %146 = arith.mulf %145, %47 : vector<1x8x12xf32>
    %c0_77 = arith.constant 0 : index
    %c9 = arith.constant 9 : index
    %c0_78 = arith.constant 0 : index
    %c0_79 = arith.constant 0 : index
    %147 = vector.load %arg13[%c0_77, %c9, %c0_78, %c0_79] : memref<1x11x8x12xf32, #tpu.memory_space<vmem>>, vector<1x1x8x12xf32>
    %148 = vector.shape_cast %147 : vector<1x1x8x12xf32> to vector<1x8x12xf32>
    %149 = vector.shape_cast %146 : vector<1x8x12xf32> to vector<1x1x8x12xf32>
    tpu.vector_store %arg13[%c0_77, %c9, %c0_78, %c0_79], %149 {strides = array<i32>} : memref<1x11x8x12xf32, #tpu.memory_space<vmem>>, vector<1x1x8x12xf32>,
    %cst_80 = arith.constant -0.899999976 : f32
    %150 = vector.broadcast %cst_80 : f32 to vector<1x8x12xf32>
    %151 = arith.subf %49, %150 : vector<1x8x12xf32>
    %152 = arith.mulf %151, %151 : vector<1x8x12xf32>
    %cst_81 = arith.constant -5.000000e+01 : f32
    %153 = vector.broadcast %cst_81 : f32 to vector<1x8x12xf32>
    %154 = arith.mulf %152, %153 : vector<1x8x12xf32>
    %155 = math.exp %154 : vector<1x8x12xf32>
    %156 = arith.mulf %155, %47 : vector<1x8x12xf32>
    %c0_82 = arith.constant 0 : index
    %c10 = arith.constant 10 : index
    %c0_83 = arith.constant 0 : index
    %c0_84 = arith.constant 0 : index
    %157 = vector.load %arg13[%c0_82, %c10, %c0_83, %c0_84] : memref<1x11x8x12xf32, #tpu.memory_space<vmem>>, vector<1x1x8x12xf32>
    %158 = vector.shape_cast %157 : vector<1x1x8x12xf32> to vector<1x8x12xf32>
    %159 = vector.shape_cast %156 : vector<1x8x12xf32> to vector<1x1x8x12xf32>
    tpu.vector_store %arg13[%c0_82, %c10, %c0_83, %c0_84], %159 {strides = array<i32>} : memref<1x11x8x12xf32, #tpu.memory_space<vmem>>, vector<1x1x8x12xf32>,
    %c0_85 = arith.constant 0 : index
    %c0_86 = arith.constant 0 : index
    %c0_87 = arith.constant 0 : index
    %c0_88 = arith.constant 0 : index
    %160 = vector.load %arg13[%c0_85, %c0_86, %c0_87, %c0_88] : memref<1x11x8x12xf32, #tpu.memory_space<vmem>>, vector<1x11x8x12xf32>
    %161 = vector.shape_cast %160 : vector<1x11x8x12xf32> to vector<88x12xf32>
    %c0_89 = arith.constant 0 : index
    %c0_90 = arith.constant 0 : index
    %162 = vector.load %arg9[%c0_89, %c0_90] : memref<12x128xf32, #tpu.memory_space<vmem>>, vector<12x128xf32>
    %cst_91 = arith.constant dense<0.000000e+00> : vector<88x128xf32>
    %163 = tpu.matmul %161, %162, %cst_91 {dimension_numbers = #tpu.dot_dimension_numbers<[1], [0], [0], [1], [0, 0, 1, 1], [], []>} : vector<88x12xf32>, vector<12x128xf32>, vector<88x128xf32> -> vector<88x128xf32>
    %164 = vector.shape_cast %163 : vector<88x128xf32> to vector<1x11x8x128xf32>
    %cst_92 = arith.constant dense<0.000000e+00> : vector<1x8x128xf32>
    %165 = vector.multi_reduction <add>, %164, %cst_92 [1] : vector<1x11x8x128xf32> to vector<1x8x128xf32>
    %cst_93 = arith.constant 0.000000e+00 : f32
    %166 = vector.broadcast %cst_93 : f32 to vector<1x8x128xf32>
    %167 = arith.cmpf one, %165, %166 : vector<1x8x128xf32>
    %168 = arith.extui %167 : vector<1x8x128xi1> to vector<1x8x128xi32>
    %169 = arith.sitofp %168 : vector<1x8x128xi32> to vector<1x8x128xf32>
    %cst_94 = arith.constant 1.000000e-10 : f32
    %170 = vector.broadcast %cst_94 : f32 to vector<1x11x8x128xf32>
    %171 = arith.maximumf %164, %170 : vector<1x11x8x128xf32>
    %172 = math.log %171 : vector<1x11x8x128xf32>
    %173 = vector.shape_cast %169 : vector<1x8x128xf32> to vector<1x1x8x128xf32>
    %174 = vector.broadcast %173 : vector<1x1x8x128xf32> to vector<1x11x8x128xf32>
    %175 = arith.mulf %172, %174 : vector<1x11x8x128xf32>
    %176 = vector.shape_cast %175 : vector<1x11x8x128xf32> to vector<1x88x128xf32>
    %c0_95 = arith.constant 0 : index
    %c0_96 = arith.constant 0 : index
    %177 = vector.load %arg10[%c0_95, %c0_96] : memref<3x88xf32, #tpu.memory_space<vmem>>, vector<3x88xf32>
    %178 = vector.shape_cast %177 : vector<3x88xf32> to vector<1x3x88xf32>
    "tpu.trace_start"() <{level = 10 : i32, message = "bwr,brc->bwc"}> : () -> ()
    %cst_97 = arith.constant dense<0.000000e+00> : vector<1x3x128xf32>
    %179 = tpu.matmul %178, %176, %cst_97 {dimension_numbers = #tpu.dot_dimension_numbers<[2], [1], [1], [2], [0, 0, 0, 1, 1, 2], [0], [0]>} : vector<1x3x88xf32>, vector<1x88x128xf32>, vector<1x3x128xf32> -> vector<1x3x128xf32>
    "tpu.trace_stop"() : () -> ()
    %c0_98 = arith.constant 0 : index
    %c0_99 = arith.constant 0 : index
    %180 = vector.load %arg11[%c0_98, %c0_99] : memref<3x1xf32, #tpu.memory_space<vmem>>, vector<3x1xf32>
    %181 = vector.shape_cast %180 : vector<3x1xf32> to vector<1x3x1xf32>
    %182 = vector.broadcast %181 : vector<1x3x1xf32> to vector<1x3x128xf32>
    %183 = arith.mulf %179, %182 : vector<1x3x128xf32>
    %184 = math.exp %183 : vector<1x3x128xf32>
    %cst_100 = arith.constant 0.000000e+00 : f32
    %185 = vector.broadcast %cst_100 : f32 to vector<1x3x128xf32>
    %186 = arith.cmpf one, %179, %185 : vector<1x3x128xf32>
    %187 = arith.extui %186 : vector<1x3x128xi1> to vector<1x3x128xi32>
    %188 = arith.sitofp %187 : vector<1x3x128xi32> to vector<1x3x128xf32>
    %189 = arith.mulf %184, %188 : vector<1x3x128xf32>
    %c0_101 = arith.constant 0 : index
    %c0_102 = arith.constant 0 : index
    %c0_103 = arith.constant 0 : index
    %190 = vector.load %arg12[%c0_101, %c0_102, %c0_103] : memref<1x3x128xf32, #tpu.memory_space<vmem>>, vector<1x3x128xf32>
    tpu.vector_store %arg12[%c0_101, %c0_102, %c0_103], %189 {strides = array<i32>} : memref<1x3x128xf32, #tpu.memory_space<vmem>>, vector<1x3x128xf32>,
    return
  }
  func.func @transform_0(%arg0: i32) -> i32 {
    %c0_i32 = arith.constant 0 : i32
    %c0_i32_0 = arith.constant 0 : i32
    return %c0_i32 : i32
  }
  func.func @transform_1(%arg0: i32) -> (i32, i32, i32) {
    %c0_i32 = arith.constant 0 : i32
    %c0_i32_0 = arith.constant 0 : i32
    %c0_i32_1 = arith.constant 0 : i32
    return %arg0, %c0_i32, %c0_i32_0 : i32, i32, i32
  }
  func.func @transform_2(%arg0: i32) -> (i32, i32, i32) {
    %c0_i32 = arith.constant 0 : i32
    %c0_i32_0 = arith.constant 0 : i32
    %c0_i32_1 = arith.constant 0 : i32
    return %arg0, %c0_i32, %c0_i32_0 : i32, i32, i32
  }
  func.func @transform_3(%arg0: i32) -> (i32, i32, i32) {
    %c0_i32 = arith.constant 0 : i32
    %c0_i32_0 = arith.constant 0 : i32
    %c0_i32_1 = arith.constant 0 : i32
    return %arg0, %c0_i32, %c0_i32_0 : i32, i32, i32
  }
  func.func @transform_4(%arg0: i32) -> (i32, i32, i32) {
    %c0_i32 = arith.constant 0 : i32
    %c0_i32_0 = arith.constant 0 : i32
    %c0_i32_1 = arith.constant 0 : i32
    return %arg0, %c0_i32, %c0_i32_0 : i32, i32, i32
  }
  func.func @transform_5(%arg0: i32) -> (i32, i32, i32) {
    %c0_i32 = arith.constant 0 : i32
    %c0_i32_0 = arith.constant 0 : i32
    %c0_i32_1 = arith.constant 0 : i32
    return %arg0, %c0_i32, %c0_i32_0 : i32, i32, i32
  }
  func.func @transform_6(%arg0: i32) -> (i32, i32, i32) {
    %c0_i32 = arith.constant 0 : i32
    %c0_i32_0 = arith.constant 0 : i32
    %c0_i32_1 = arith.constant 0 : i32
    return %arg0, %c0_i32, %c0_i32_0 : i32, i32, i32
  }
  func.func @transform_7(%arg0: i32) -> (i32, i32, i32) {
    %c0_i32 = arith.constant 0 : i32
    %c0_i32_0 = arith.constant 0 : i32
    %c0_i32_1 = arith.constant 0 : i32
    return %arg0, %c0_i32, %c0_i32_0 : i32, i32, i32
  }
  func.func @transform_8(%arg0: i32) -> (i32, i32) {
    %c0_i32 = arith.constant 0 : i32
    %c0_i32_0 = arith.constant 0 : i32
    %c0_i32_1 = arith.constant 0 : i32
    return %c0_i32, %c0_i32_0 : i32, i32
  }
  func.func @transform_9(%arg0: i32) -> (i32, i32) {
    %c0_i32 = arith.constant 0 : i32
    %c0_i32_0 = arith.constant 0 : i32
    %c0_i32_1 = arith.constant 0 : i32
    return %c0_i32, %c0_i32_0 : i32, i32
  }
  func.func @transform_10(%arg0: i32) -> (i32, i32) {
    %c0_i32 = arith.constant 0 : i32
    %c0_i32_0 = arith.constant 0 : i32
    %c0_i32_1 = arith.constant 0 : i32
    return %c0_i32, %c0_i32_0 : i32, i32
  }
  func.func @transform_11(%arg0: i32) -> (i32, i32, i32) {
    %c0_i32 = arith.constant 0 : i32
    %c0_i32_0 = arith.constant 0 : i32
    %c0_i32_1 = arith.constant 0 : i32
    return %arg0, %c0_i32, %c0_i32_0 : i32, i32, i32
  }
}

module attributes {stable_mosaic.version = 11 : i64} {
  func.func @_tk_fused_kernel(%arg0: i32, %arg1: memref<1xf32, #tpu.memory_space<smem>>, %arg2: memref<1x8x32xf32, #tpu.memory_space<vmem>>, %arg3: memref<1x8x32xf32, #tpu.memory_space<vmem>>, %arg4: memref<1x12x32xf32, #tpu.memory_space<vmem>>, %arg5: memref<1x12x32xf32, #tpu.memory_space<vmem>>, %arg6: memref<1x8x1xf32, #tpu.memory_space<vmem>>, %arg7: memref<1x12x1xf32, #tpu.memory_space<vmem>>, %arg8: memref<1x1x12xf32, #tpu.memory_space<vmem>>, %arg9: memref<12x128xf32, #tpu.memory_space<vmem>>, %arg10: memref<3x88xf32, #tpu.memory_space<vmem>>, %arg11: memref<3x1xf32, #tpu.memory_space<vmem>>, %arg12: memref<1x3x128xf32, #tpu.memory_space<vmem>>, %arg13: memref<1x11x8x12xf32, #tpu.memory_space<vmem>>) attributes {dimension_semantics = [#tpu.dimension_semantics<parallel>], iteration_bounds = array<i64: 2>, scalar_prefetch = 0 : i64, scratch_operands = 1 : i64, tpu.core_type = #tpu.core_type<tc>, window_params = [{transform_indices = @transform_0, window_bounds = array<i64: 1>}, {transform_indices = @transform_1, window_bounds = array<i64: 1, 8, 32>}, {transform_indices = @transform_2, window_bounds = array<i64: 1, 8, 32>}, {transform_indices = @transform_3, window_bounds = array<i64: 1, 12, 32>}, {transform_indices = @transform_4, window_bounds = array<i64: 1, 12, 32>}, {transform_indices = @transform_5, window_bounds = array<i64: 1, 8, 1>}, {transform_indices = @transform_6, window_bounds = array<i64: 1, 12, 1>}, {transform_indices = @transform_7, window_bounds = array<i64: 1, 1, 12>}, {pipeline_mode = #tpu.pipeline_mode<synchronous>, transform_indices = @transform_8, window_bounds = array<i64: 12, 128>}, {pipeline_mode = #tpu.pipeline_mode<synchronous>, transform_indices = @transform_9, window_bounds = array<i64: 3, 88>}, {pipeline_mode = #tpu.pipeline_mode<synchronous>, transform_indices = @transform_10, window_bounds = array<i64: 3, 1>}, {transform_indices = @transform_11, window_bounds = array<i64: 1, 3, 128>}]} {
    %c0 = arith.constant 0 : index
    %0 = memref.load %arg1[%c0] : memref<1xf32, #tpu.memory_space<smem>>
    %c0_0 = arith.constant 0 : index
    %c0_1 = arith.constant 0 : index
    %c0_2 = arith.constant 0 : index
    %1 = vector.load %arg6[%c0_0, %c0_1, %c0_2] : memref<1x8x1xf32, #tpu.memory_space<vmem>>, vector<1x8x1xf32>
    %c0_3 = arith.constant 0 : index
    %c0_4 = arith.constant 0 : index
    %c0_5 = arith.constant 0 : index
    %2 = vector.load %arg7[%c0_3, %c0_4, %c0_5] : memref<1x12x1xf32, #tpu.memory_space<vmem>>, vector<1x12x1xf32>
    %c0_6 = arith.constant 0 : index
    %c0_7 = arith.constant 0 : index
    %c0_8 = arith.constant 0 : index
    %3 = vector.load %arg8[%c0_6, %c0_7, %c0_8] : memref<1x1x12xf32, #tpu.memory_space<vmem>>, vector<1x1x12xf32>
    %c0_9 = arith.constant 0 : index
    %c0_10 = arith.constant 0 : index
    %c0_11 = arith.constant 0 : index
    %4 = vector.load %arg2[%c0_9, %c0_10, %c0_11] : memref<1x8x32xf32, #tpu.memory_space<vmem>>, vector<1x8x32xf32>
    %5 = vector.broadcast %0 : f32 to vector<1x8x32xf32>
    %6 = arith.mulf %5, %4 : vector<1x8x32xf32>
    %cst = arith.constant 1.000000e+00 : f32
    %7 = arith.subf %cst, %0 : f32
    %c0_12 = arith.constant 0 : index
    %c0_13 = arith.constant 0 : index
    %c0_14 = arith.constant 0 : index
    %8 = vector.load %arg3[%c0_12, %c0_13, %c0_14] : memref<1x8x32xf32, #tpu.memory_space<vmem>>, vector<1x8x32xf32>
    %9 = vector.broadcast %7 : f32 to vector<1x8x32xf32>
    %10 = arith.mulf %9, %8 : vector<1x8x32xf32>
    %11 = arith.addf %6, %10 : vector<1x8x32xf32>
    %12 = vector.broadcast %1 : vector<1x8x1xf32> to vector<1x8x32xf32>
    %13 = arith.mulf %11, %12 : vector<1x8x32xf32>
    %c0_15 = arith.constant 0 : index
    %c0_16 = arith.constant 0 : index
    %c0_17 = arith.constant 0 : index
    %14 = vector.load %arg4[%c0_15, %c0_16, %c0_17] : memref<1x12x32xf32, #tpu.memory_space<vmem>>, vector<1x12x32xf32>
    %15 = vector.broadcast %0 : f32 to vector<1x12x32xf32>
    %16 = arith.mulf %15, %14 : vector<1x12x32xf32>
    %cst_18 = arith.constant 1.000000e+00 : f32
    %17 = arith.subf %cst_18, %0 : f32
    %c0_19 = arith.constant 0 : index
    %c0_20 = arith.constant 0 : index
    %c0_21 = arith.constant 0 : index
    %18 = vector.load %arg5[%c0_19, %c0_20, %c0_21] : memref<1x12x32xf32, #tpu.memory_space<vmem>>, vector<1x12x32xf32>
    %19 = vector.broadcast %17 : f32 to vector<1x12x32xf32>
    %20 = arith.mulf %19, %18 : vector<1x12x32xf32>
    %21 = arith.addf %16, %20 : vector<1x12x32xf32>
    %22 = vector.broadcast %2 : vector<1x12x1xf32> to vector<1x12x32xf32>
    %23 = arith.mulf %21, %22 : vector<1x12x32xf32>
    %24 = arith.mulf %13, %13 : vector<1x8x32xf32>
    %cst_22 = arith.constant dense<0.000000e+00> : vector<1x8xf32>
    %25 = vector.multi_reduction <add>, %24, %cst_22 [2] : vector<1x8x32xf32> to vector<1x8xf32>
    %26 = vector.shape_cast %25 : vector<1x8xf32> to vector<1x8x1xf32>
    %27 = math.sqrt %26 : vector<1x8x1xf32>
    %cst_23 = arith.constant 9.99999982E-14 : f32
    %28 = vector.broadcast %cst_23 : f32 to vector<1x8x1xf32>
    %29 = arith.addf %27, %28 : vector<1x8x1xf32>
    %cst_24 = arith.constant 1.000000e+00 : f32
    %30 = vector.broadcast %cst_24 : f32 to vector<1x8x1xf32>
    %31 = arith.divf %30, %29 : vector<1x8x1xf32>
    %32 = arith.mulf %23, %23 : vector<1x12x32xf32>
    %cst_25 = arith.constant dense<0.000000e+00> : vector<1x12xf32>
    %33 = vector.multi_reduction <add>, %32, %cst_25 [2] : vector<1x12x32xf32> to vector<1x12xf32>
    %34 = vector.shape_cast %33 : vector<1x12xf32> to vector<1x12x1xf32>
    %35 = math.sqrt %34 : vector<1x12x1xf32>
    %cst_26 = arith.constant 9.99999982E-14 : f32
    %36 = vector.broadcast %cst_26 : f32 to vector<1x12x1xf32>
    %37 = arith.addf %35, %36 : vector<1x12x1xf32>
    %cst_27 = arith.constant 1.000000e+00 : f32
    %38 = vector.broadcast %cst_27 : f32 to vector<1x12x1xf32>
    %39 = arith.divf %38, %37 : vector<1x12x1xf32>
    %40 = vector.broadcast %31 : vector<1x8x1xf32> to vector<1x8x32xf32>
    %41 = arith.mulf %13, %40 : vector<1x8x32xf32>
    %42 = vector.broadcast %39 : vector<1x12x1xf32> to vector<1x12x32xf32>
    %43 = arith.mulf %23, %42 : vector<1x12x32xf32>
    "tpu.trace_start"() <{level = 10 : i32, message = "bqe,bde->bqd"}> : () -> ()
    %cst_28 = arith.constant dense<0.000000e+00> : vector<1x8x12xf32>
    %44 = tpu.matmul %41, %43, %cst_28 {dimension_numbers = #tpu.dot_dimension_numbers<[2], [2], [1], [1], [0, 0, 0, 1, 1, 1], [0], [0]>} : vector<1x8x32xf32>, vector<1x12x32xf32>, vector<1x8x12xf32> -> vector<1x8x12xf32>
    "tpu.trace_stop"() : () -> ()
    %45 = vector.broadcast %1 : vector<1x8x1xf32> to vector<1x8x12xf32>
    %46 = vector.broadcast %3 : vector<1x1x12xf32> to vector<1x8x12xf32>
    %47 = arith.mulf %45, %46 : vector<1x8x12xf32>
    %48 = arith.mulf %44, %47 : vector<1x8x12xf32>
    %49 = math.tanh %48 : vector<1x8x12xf32>
    %cst_29 = arith.constant 1.000000e+00 : f32
    %50 = vector.broadcast %cst_29 : f32 to vector<1x8x12xf32>
    %51 = arith.subf %49, %50 : vector<1x8x12xf32>
    %52 = arith.mulf %51, %51 : vector<1x8x12xf32>
    %cst_30 = arith.constant -5.000000e+01 : f32
    %53 = vector.broadcast %cst_30 : f32 to vector<1x8x12xf32>
    %54 = arith.mulf %52, %53 : vector<1x8x12xf32>
    %55 = math.exp %54 : vector<1x8x12xf32>
    %56 = arith.mulf %55, %47 : vector<1x8x12xf32>
    %c0_31 = arith.constant 0 : index
    %c0_32 = arith.constant 0 : index
    %c0_33 = arith.constant 0 : index
    %c0_34 = arith.constant 0 : index
    %57 = vector.load %arg13[%c0_31, %c0_32, %c0_33, %c0_34] : memref<1x11x8x12xf32, #tpu.memory_space<vmem>>, vector<1x1x8x12xf32>
    %58 = vector.shape_cast %57 : vector<1x1x8x12xf32> to vector<1x8x12xf32>
    %59 = vector.shape_cast %56 : vector<1x8x12xf32> to vector<1x1x8x12xf32>
    tpu.vector_store %arg13[%c0_31, %c0_32, %c0_33, %c0_34], %59 {strides = array<i32>} : memref<1x11x8x12xf32, #tpu.memory_space<vmem>>, vector<1x1x8x12xf32>,
    %cst_35 = arith.constant 0.899999976 : f32
    %60 = vector.broadcast %cst_35 : f32 to vector<1x8x12xf32>
    %61 = arith.subf %49, %60 : vector<1x8x12xf32>
    %62 = arith.mulf %61, %61 : vector<1x8x12xf32>
    %cst_36 = arith.constant -5.000000e+01 : f32
    %63 = vector.broadcast %cst_36 : f32 to vector<1x8x12xf32>
    %64 = arith.mulf %62, %63 : vector<1x8x12xf32>
    %65 = math.exp %64 : vector<1x8x12xf32>
    %66 = arith.mulf %65, %47 : vector<1x8x12xf32>
    %c0_37 = arith.constant 0 : index
    %c1 = arith.constant 1 : index
    %c0_38 = arith.constant 0 : index
    %c0_39 = arith.constant 0 : index
    %67 = vector.load %arg13[%c0_37, %c1, %c0_38, %c0_39] : memref<1x11x8x12xf32, #tpu.memory_space<vmem>>, vector<1x1x8x12xf32>
    %68 = vector.shape_cast %67 : vector<1x1x8x12xf32> to vector<1x8x12xf32>
    %69 = vector.shape_cast %66 : vector<1x8x12xf32> to vector<1x1x8x12xf32>
    tpu.vector_store %arg13[%c0_37, %c1, %c0_38, %c0_39], %69 {strides = array<i32>} : memref<1x11x8x12xf32, #tpu.memory_space<vmem>>, vector<1x1x8x12xf32>,
    %cst_40 = arith.constant 0.699999988 : f32
    %70 = vector.broadcast %cst_40 : f32 to vector<1x8x12xf32>
    %71 = arith.subf %49, %70 : vector<1x8x12xf32>
    %72 = arith.mulf %71, %71 : vector<1x8x12xf32>
    %cst_41 = arith.constant -5.000000e+01 : f32
    %73 = vector.broadcast %cst_41 : f32 to vector<1x8x12xf32>
    %74 = arith.mulf %72, %73 : vector<1x8x12xf32>
    %75 = math.exp %74 : vector<1x8x12xf32>
    %76 = arith.mulf %75, %47 : vector<1x8x12xf32>
    %c0_42 = arith.constant 0 : index
    %c2 = arith.constant 2 : index
    %c0_43 = arith.constant 0 : index
    %c0_44 = arith.constant 0 : index
    %77 = vector.load %arg13[%c0_42, %c2, %c0_43, %c0_44] : memref<1x11x8x12xf32, #tpu.memory_space<vmem>>, vector<1x1x8x12xf32>
    %78 = vector.shape_cast %77 : vector<1x1x8x12xf32> to vector<1x8x12xf32>
    %79 = vector.shape_cast %76 : vector<1x8x12xf32> to vector<1x1x8x12xf32>
    tpu.vector_store %arg13[%c0_42, %c2, %c0_43, %c0_44], %79 {strides = array<i32>} : memref<1x11x8x12xf32, #tpu.memory_space<vmem>>, vector<1x1x8x12xf32>,
    %cst_45 = arith.constant 5.000000e-01 : f32
    %80 = vector.broadcast %cst_45 : f32 to vector<1x8x12xf32>
    %81 = arith.subf %49, %80 : vector<1x8x12xf32>
    %82 = arith.mulf %81, %81 : vector<1x8x12xf32>
    %cst_46 = arith.constant -5.000000e+01 : f32
    %83 = vector.broadcast %cst_46 : f32 to vector<1x8x12xf32>
    %84 = arith.mulf %82, %83 : vector<1x8x12xf32>
    %85 = math.exp %84 : vector<1x8x12xf32>
    %86 = arith.mulf %85, %47 : vector<1x8x12xf32>
    %c0_47 = arith.constant 0 : index
    %c3 = arith.constant 3 : index
    %c0_48 = arith.constant 0 : index
    %c0_49 = arith.constant 0 : index
    %87 = vector.load %arg13[%c0_47, %c3, %c0_48, %c0_49] : memref<1x11x8x12xf32, #tpu.memory_space<vmem>>, vector<1x1x8x12xf32>
    %88 = vector.shape_cast %87 : vector<1x1x8x12xf32> to vector<1x8x12xf32>
    %89 = vector.shape_cast %86 : vector<1x8x12xf32> to vector<1x1x8x12xf32>
    tpu.vector_store %arg13[%c0_47, %c3, %c0_48, %c0_49], %89 {strides = array<i32>} : memref<1x11x8x12xf32, #tpu.memory_space<vmem>>, vector<1x1x8x12xf32>,
    %cst_50 = arith.constant 3.000000e-01 : f32
    %90 = vector.broadcast %cst_50 : f32 to vector<1x8x12xf32>
    %91 = arith.subf %49, %90 : vector<1x8x12xf32>
    %92 = arith.mulf %91, %91 : vector<1x8x12xf32>
    %cst_51 = arith.constant -5.000000e+01 : f32
    %93 = vector.broadcast %cst_51 : f32 to vector<1x8x12xf32>
    %94 = arith.mulf %92, %93 : vector<1x8x12xf32>
    %95 = math.exp %94 : vector<1x8x12xf32>
    %96 = arith.mulf %95, %47 : vector<1x8x12xf32>
    %c0_52 = arith.constant 0 : index
    %c4 = arith.constant 4 : index
    %c0_53 = arith.constant 0 : index
    %c0_54 = arith.constant 0 : index
    %97 = vector.load %arg13[%c0_52, %c4, %c0_53, %c0_54] : memref<1x11x8x12xf32, #tpu.memory_space<vmem>>, vector<1x1x8x12xf32>
    %98 = vector.shape_cast %97 : vector<1x1x8x12xf32> to vector<1x8x12xf32>
    %99 = vector.shape_cast %96 : vector<1x8x12xf32> to vector<1x1x8x12xf32>
    tpu.vector_store %arg13[%c0_52, %c4, %c0_53, %c0_54], %99 {strides = array<i32>} : memref<1x11x8x12xf32, #tpu.memory_space<vmem>>, vector<1x1x8x12xf32>,
    %cst_55 = arith.constant 1.000000e-01 : f32
    %100 = vector.broadcast %cst_55 : f32 to vector<1x8x12xf32>
    %101 = arith.subf %49, %100 : vector<1x8x12xf32>
    %102 = arith.mulf %101, %101 : vector<1x8x12xf32>
    %cst_56 = arith.constant -5.000000e+01 : f32
    %103 = vector.broadcast %cst_56 : f32 to vector<1x8x12xf32>
    %104 = arith.mulf %102, %103 : vector<1x8x12xf32>
    %105 = math.exp %104 : vector<1x8x12xf32>
    %106 = arith.mulf %105, %47 : vector<1x8x12xf32>
    %c0_57 = arith.constant 0 : index
    %c5 = arith.constant 5 : index
    %c0_58 = arith.constant 0 : index
    %c0_59 = arith.constant 0 : index
    %107 = vector.load %arg13[%c0_57, %c5, %c0_58, %c0_59] : memref<1x11x8x12xf32, #tpu.memory_space<vmem>>, vector<1x1x8x12xf32>
    %108 = vector.shape_cast %107 : vector<1x1x8x12xf32> to vector<1x8x12xf32>
    %109 = vector.shape_cast %106 : vector<1x8x12xf32> to vector<1x1x8x12xf32>
    tpu.vector_store %arg13[%c0_57, %c5, %c0_58, %c0_59], %109 {strides = array<i32>} : memref<1x11x8x12xf32, #tpu.memory_space<vmem>>, vector<1x1x8x12xf32>,
    %cst_60 = arith.constant -1.000000e-01 : f32
    %110 = vector.broadcast %cst_60 : f32 to vector<1x8x12xf32>
    %111 = arith.subf %49, %110 : vector<1x8x12xf32>
    %112 = arith.mulf %111, %111 : vector<1x8x12xf32>
    %cst_61 = arith.constant -5.000000e+01 : f32
    %113 = vector.broadcast %cst_61 : f32 to vector<1x8x12xf32>
    %114 = arith.mulf %112, %113 : vector<1x8x12xf32>
    %115 = math.exp %114 : vector<1x8x12xf32>
    %116 = arith.mulf %115, %47 : vector<1x8x12xf32>
    %c0_62 = arith.constant 0 : index
    %c6 = arith.constant 6 : index
    %c0_63 = arith.constant 0 : index
    %c0_64 = arith.constant 0 : index
    %117 = vector.load %arg13[%c0_62, %c6, %c0_63, %c0_64] : memref<1x11x8x12xf32, #tpu.memory_space<vmem>>, vector<1x1x8x12xf32>
    %118 = vector.shape_cast %117 : vector<1x1x8x12xf32> to vector<1x8x12xf32>
    %119 = vector.shape_cast %116 : vector<1x8x12xf32> to vector<1x1x8x12xf32>
    tpu.vector_store %arg13[%c0_62, %c6, %c0_63, %c0_64], %119 {strides = array<i32>} : memref<1x11x8x12xf32, #tpu.memory_space<vmem>>, vector<1x1x8x12xf32>,
    %cst_65 = arith.constant -3.000000e-01 : f32
    %120 = vector.broadcast %cst_65 : f32 to vector<1x8x12xf32>
    %121 = arith.subf %49, %120 : vector<1x8x12xf32>
    %122 = arith.mulf %121, %121 : vector<1x8x12xf32>
    %cst_66 = arith.constant -5.000000e+01 : f32
    %123 = vector.broadcast %cst_66 : f32 to vector<1x8x12xf32>
    %124 = arith.mulf %122, %123 : vector<1x8x12xf32>
    %125 = math.exp %124 : vector<1x8x12xf32>
    %126 = arith.mulf %125, %47 : vector<1x8x12xf32>
    %c0_67 = arith.constant 0 : index
    %c7 = arith.constant 7 : index
    %c0_68 = arith.constant 0 : index
    %c0_69 = arith.constant 0 : index
    %127 = vector.load %arg13[%c0_67, %c7, %c0_68, %c0_69] : memref<1x11x8x12xf32, #tpu.memory_space<vmem>>, vector<1x1x8x12xf32>
    %128 = vector.shape_cast %127 : vector<1x1x8x12xf32> to vector<1x8x12xf32>
    %129 = vector.shape_cast %126 : vector<1x8x12xf32> to vector<1x1x8x12xf32>
    tpu.vector_store %arg13[%c0_67, %c7, %c0_68, %c0_69], %129 {strides = array<i32>} : memref<1x11x8x12xf32, #tpu.memory_space<vmem>>, vector<1x1x8x12xf32>,
    %cst_70 = arith.constant -5.000000e-01 : f32
    %130 = vector.broadcast %cst_70 : f32 to vector<1x8x12xf32>
    %131 = arith.subf %49, %130 : vector<1x8x12xf32>
    %132 = arith.mulf %131, %131 : vector<1x8x12xf32>
    %cst_71 = arith.constant -5.000000e+01 : f32
    %133 = vector.broadcast %cst_71 : f32 to vector<1x8x12xf32>
    %134 = arith.mulf %132, %133 : vector<1x8x12xf32>
    %135 = math.exp %134 : vector<1x8x12xf32>
    %136 = arith.mulf %135, %47 : vector<1x8x12xf32>
    %c0_72 = arith.constant 0 : index
    %c8 = arith.constant 8 : index
    %c0_73 = arith.constant 0 : index
    %c0_74 = arith.constant 0 : index
    %137 = vector.load %arg13[%c0_72, %c8, %c0_73, %c0_74] : memref<1x11x8x12xf32, #tpu.memory_space<vmem>>, vector<1x1x8x12xf32>
    %138 = vector.shape_cast %137 : vector<1x1x8x12xf32> to vector<1x8x12xf32>
    %139 = vector.shape_cast %136 : vector<1x8x12xf32> to vector<1x1x8x12xf32>
    tpu.vector_store %arg13[%c0_72, %c8, %c0_73, %c0_74], %139 {strides = array<i32>} : memref<1x11x8x12xf32, #tpu.memory_space<vmem>>, vector<1x1x8x12xf32>,
    %cst_75 = arith.constant -0.699999988 : f32
    %140 = vector.broadcast %cst_75 : f32 to vector<1x8x12xf32>
    %141 = arith.subf %49, %140 : vector<1x8x12xf32>
    %142 = arith.mulf %141, %141 : vector<1x8x12xf32>
    %cst_76 = arith.constant -5.000000e+01 : f32
    %143 = vector.broadcast %cst_76 : f32 to vector<1x8x12xf32>
    %144 = arith.mulf %142, %143 : vector<1x8x12xf32>
    %145 = math.exp %144 : vector<1x8x12xf32>
    %146 = arith.mulf %145, %47 : vector<1x8x12xf32>
    %c0_77 = arith.constant 0 : index
    %c9 = arith.constant 9 : index
    %c0_78 = arith.constant 0 : index
    %c0_79 = arith.constant 0 : index
    %147 = vector.load %arg13[%c0_77, %c9, %c0_78, %c0_79] : memref<1x11x8x12xf32, #tpu.memory_space<vmem>>, vector<1x1x8x12xf32>
    %148 = vector.shape_cast %147 : vector<1x1x8x12xf32> to vector<1x8x12xf32>
    %149 = vector.shape_cast %146 : vector<1x8x12xf32> to vector<1x1x8x12xf32>
    tpu.vector_store %arg13[%c0_77, %c9, %c0_78, %c0_79], %149 {strides = array<i32>} : memref<1x11x8x12xf32, #tpu.memory_space<vmem>>, vector<1x1x8x12xf32>,
    %cst_80 = arith.constant -0.899999976 : f32
    %150 = vector.broadcast %cst_80 : f32 to vector<1x8x12xf32>
    %151 = arith.subf %49, %150 : vector<1x8x12xf32>
    %152 = arith.mulf %151, %151 : vector<1x8x12xf32>
    %cst_81 = arith.constant -5.000000e+01 : f32
    %153 = vector.broadcast %cst_81 : f32 to vector<1x8x12xf32>
    %154 = arith.mulf %152, %153 : vector<1x8x12xf32>
    %155 = math.exp %154 : vector<1x8x12xf32>
    %156 = arith.mulf %155, %47 : vector<1x8x12xf32>
    %c0_82 = arith.constant 0 : index
    %c10 = arith.constant 10 : index
    %c0_83 = arith.constant 0 : index
    %c0_84 = arith.constant 0 : index
    %157 = vector.load %arg13[%c0_82, %c10, %c0_83, %c0_84] : memref<1x11x8x12xf32, #tpu.memory_space<vmem>>, vector<1x1x8x12xf32>
    %158 = vector.shape_cast %157 : vector<1x1x8x12xf32> to vector<1x8x12xf32>
    %159 = vector.shape_cast %156 : vector<1x8x12xf32> to vector<1x1x8x12xf32>
    tpu.vector_store %arg13[%c0_82, %c10, %c0_83, %c0_84], %159 {strides = array<i32>} : memref<1x11x8x12xf32, #tpu.memory_space<vmem>>, vector<1x1x8x12xf32>,
    %c0_85 = arith.constant 0 : index
    %c0_86 = arith.constant 0 : index
    %c0_87 = arith.constant 0 : index
    %c0_88 = arith.constant 0 : index
    %160 = vector.load %arg13[%c0_85, %c0_86, %c0_87, %c0_88] : memref<1x11x8x12xf32, #tpu.memory_space<vmem>>, vector<1x11x8x12xf32>
    %161 = vector.shape_cast %160 : vector<1x11x8x12xf32> to vector<88x12xf32>
    %c0_89 = arith.constant 0 : index
    %c0_90 = arith.constant 0 : index
    %162 = vector.load %arg9[%c0_89, %c0_90] : memref<12x128xf32, #tpu.memory_space<vmem>>, vector<12x128xf32>
    %cst_91 = arith.constant dense<0.000000e+00> : vector<88x128xf32>
    %163 = tpu.matmul %161, %162, %cst_91 {dimension_numbers = #tpu.dot_dimension_numbers<[1], [0], [0], [1], [0, 0, 1, 1], [], []>} : vector<88x12xf32>, vector<12x128xf32>, vector<88x128xf32> -> vector<88x128xf32>
    %164 = vector.shape_cast %163 : vector<88x128xf32> to vector<1x11x8x128xf32>
    %cst_92 = arith.constant dense<0.000000e+00> : vector<1x8x128xf32>
    %165 = vector.multi_reduction <add>, %164, %cst_92 [1] : vector<1x11x8x128xf32> to vector<1x8x128xf32>
    %cst_93 = arith.constant 0.000000e+00 : f32
    %166 = vector.broadcast %cst_93 : f32 to vector<1x8x128xf32>
    %167 = arith.cmpf one, %165, %166 : vector<1x8x128xf32>
    %168 = arith.extui %167 : vector<1x8x128xi1> to vector<1x8x128xi32>
    %169 = arith.sitofp %168 : vector<1x8x128xi32> to vector<1x8x128xf32>
    %cst_94 = arith.constant 1.000000e-10 : f32
    %170 = vector.broadcast %cst_94 : f32 to vector<1x11x8x128xf32>
    %171 = arith.maximumf %164, %170 : vector<1x11x8x128xf32>
    %172 = math.log %171 : vector<1x11x8x128xf32>
    %173 = vector.shape_cast %169 : vector<1x8x128xf32> to vector<1x1x8x128xf32>
    %174 = vector.broadcast %173 : vector<1x1x8x128xf32> to vector<1x11x8x128xf32>
    %175 = arith.mulf %172, %174 : vector<1x11x8x128xf32>
    %176 = vector.shape_cast %175 : vector<1x11x8x128xf32> to vector<1x88x128xf32>
    %c0_95 = arith.constant 0 : index
    %c0_96 = arith.constant 0 : index
    %177 = vector.load %arg10[%c0_95, %c0_96] : memref<3x88xf32, #tpu.memory_space<vmem>>, vector<3x88xf32>
    %178 = vector.shape_cast %177 : vector<3x88xf32> to vector<1x3x88xf32>
    "tpu.trace_start"() <{level = 10 : i32, message = "bwr,brc->bwc"}> : () -> ()
    %cst_97 = arith.constant dense<0.000000e+00> : vector<1x3x128xf32>
    %179 = tpu.matmul %178, %176, %cst_97 {dimension_numbers = #tpu.dot_dimension_numbers<[2], [1], [1], [2], [0, 0, 0, 1, 1, 2], [0], [0]>} : vector<1x3x88xf32>, vector<1x88x128xf32>, vector<1x3x128xf32> -> vector<1x3x128xf32>
    "tpu.trace_stop"() : () -> ()
    %c0_98 = arith.constant 0 : index
    %c0_99 = arith.constant 0 : index
    %180 = vector.load %arg11[%c0_98, %c0_99] : memref<3x1xf32, #tpu.memory_space<vmem>>, vector<3x1xf32>
    %181 = vector.shape_cast %180 : vector<3x1xf32> to vector<1x3x1xf32>
    %182 = vector.broadcast %181 : vector<1x3x1xf32> to vector<1x3x128xf32>
    %183 = arith.mulf %179, %182 : vector<1x3x128xf32>
    %184 = math.exp %183 : vector<1x3x128xf32>
    %cst_100 = arith.constant 0.000000e+00 : f32
    %185 = vector.broadcast %cst_100 : f32 to vector<1x3x128xf32>
    %186 = arith.cmpf one, %179, %185 : vector<1x3x128xf32>
    %187 = arith.extui %186 : vector<1x3x128xi1> to vector<1x3x128xi32>
    %188 = arith.sitofp %187 : vector<1x3x128xi32> to vector<1x3x128xf32>
    %189 = arith.mulf %184, %188 : vector<1x3x128xf32>
    %c0_101 = arith.constant 0 : index
    %c0_102 = arith.constant 0 : index
    %c0_103 = arith.constant 0 : index
    %190 = vector.load %arg12[%c0_101, %c0_102, %c0_103] : memref<1x3x128xf32, #tpu.memory_space<vmem>>, vector<1x3x128xf32>
    tpu.vector_store %arg12[%c0_101, %c0_102, %c0_103], %189 {strides = array<i32>} : memref<1x3x128xf32, #tpu.memory_space<vmem>>, vector<1x3x128xf32>,
    return
  }
  func.func @transform_0(%arg0: i32) -> i32 {
    %c0_i32 = arith.constant 0 : i32
    %c0_i32_0 = arith.constant 0 : i32
    return %c0_i32 : i32
  }
  func.func @transform_1(%arg0: i32) -> (i32, i32, i32) {
    %c0_i32 = arith.constant 0 : i32
    %c0_i32_0 = arith.constant 0 : i32
    %c0_i32_1 = arith.constant 0 : i32
    return %arg0, %c0_i32, %c0_i32_0 : i32, i32, i32
  }
  func.func @transform_2(%arg0: i32) -> (i32, i32, i32) {
    %c0_i32 = arith.constant 0 : i32
    %c0_i32_0 = arith.constant 0 : i32
    %c0_i32_1 = arith.constant 0 : i32
    return %arg0, %c0_i32, %c0_i32_0 : i32, i32, i32
  }
  func.func @transform_3(%arg0: i32) -> (i32, i32, i32) {
    %c0_i32 = arith.constant 0 : i32
    %c0_i32_0 = arith.constant 0 : i32
    %c0_i32_1 = arith.constant 0 : i32
    return %arg0, %c0_i32, %c0_i32_0 : i32, i32, i32
  }
  func.func @transform_4(%arg0: i32) -> (i32, i32, i32) {
    %c0_i32 = arith.constant 0 : i32
    %c0_i32_0 = arith.constant 0 : i32
    %c0_i32_1 = arith.constant 0 : i32
    return %arg0, %c0_i32, %c0_i32_0 : i32, i32, i32
  }
  func.func @transform_5(%arg0: i32) -> (i32, i32, i32) {
    %c0_i32 = arith.constant 0 : i32
    %c0_i32_0 = arith.constant 0 : i32
    %c0_i32_1 = arith.constant 0 : i32
    return %arg0, %c0_i32, %c0_i32_0 : i32, i32, i32
  }
  func.func @transform_6(%arg0: i32) -> (i32, i32, i32) {
    %c0_i32 = arith.constant 0 : i32
    %c0_i32_0 = arith.constant 0 : i32
    %c0_i32_1 = arith.constant 0 : i32
    return %arg0, %c0_i32, %c0_i32_0 : i32, i32, i32
  }
  func.func @transform_7(%arg0: i32) -> (i32, i32, i32) {
    %c0_i32 = arith.constant 0 : i32
    %c0_i32_0 = arith.constant 0 : i32
    %c0_i32_1 = arith.constant 0 : i32
    return %arg0, %c0_i32, %c0_i32_0 : i32, i32, i32
  }
  func.func @transform_8(%arg0: i32) -> (i32, i32) {
    %c0_i32 = arith.constant 0 : i32
    %c0_i32_0 = arith.constant 0 : i32
    %c0_i32_1 = arith.constant 0 : i32
    return %c0_i32, %c0_i32_0 : i32, i32
  }
  func.func @transform_9(%arg0: i32) -> (i32, i32) {
    %c0_i32 = arith.constant 0 : i32
    %c0_i32_0 = arith.constant 0 : i32
    %c0_i32_1 = arith.constant 0 : i32
    return %c0_i32, %c0_i32_0 : i32, i32
  }
  func.func @transform_10(%arg0: i32) -> (i32, i32) {
    %c0_i32 = arith.constant 0 : i32
    %c0_i32_0 = arith.constant 0 : i32
    %c0_i32_1 = arith.constant 0 : i32
    return %c0_i32, %c0_i32_0 : i32, i32
  }
  func.func @transform_11(%arg0: i32) -> (i32, i32, i32) {
    %c0_i32 = arith.constant 0 : i32
    %c0_i32_0 = arith.constant 0 : i32
    %c0_i32_1 = arith.constant 0 : i32
    return %arg0, %c0_i32, %c0_i32_0 : i32, i32, i32
  }
}

</mosaic_0001>

<bundles_post_ra>
// kernel: tpu_custom_call.1
= control target key start
LH: loop header
LB: loop body
LE: loop exit
PB: predicated region body
PF: predicated region fallthrough
CT: control target
= control target key end

     0   :  { %s2896_s0 = inlined_call_operand.<no memory space> [shape: f32[1], index: 0, kind: input, shape index: {}]   ;;  %s2897_s1 = inlined_call_operand.hbm [shape: f32[2,8,32], index: 1, kind: input, shape index: {}]   ;;  %s2898_s2 = inlined_call_operand.hbm [shape: f32[2,8,32], index: 2, kind: input, shape index: {}]   ;;  %s2899_s3 = inlined_call_operand.hbm [shape: f32[2,12,32], index: 3, kind: input, shape index: {}]   ;;  %s2900_s4 = inlined_call_operand.hbm [shape: f32[2,12,32], index: 4, kind: input, shape index: {}]   ;;  %s2901_s5 = inlined_call_operand.hbm [shape: f32[2,8,1], index: 5, kind: input, shape index: {}]   ;;  %s2902_s6 = inlined_call_operand.hbm [shape: f32[2,12,1], index: 6, kind: input, shape index: {}]   ;;  %s2903_s7 = inlined_call_operand.hbm [shape: f32[2,1,12], index: 7, kind: input, shape index: {}]   ;;  %s2904_s8 = inlined_call_operand.hbm [shape: f32[12,128], index: 8, kind: input, shape index: {}]   ;;  %s2905_s9 = inlined_call_operand.hbm [shape: f32[3,88], index: 9, kind: input, shape index: {}]   ;;  %s2906_s10 = inlined_call_operand.hbm [shape: f32[3,1], index: 10, kind: input, shape index: {}]   ;;  %s2907_s11 = inlined_call_operand.hbm [shape: f32[2,3,128], index: 11, kind: output, shape index: {}]  }
   0x1   :  { %2942 = sst [smem:[#allocation40_spill]] %s2898_s2 }
   0x2   :  { %2943 = sst [smem:[#allocation41_spill]] %s2900_s4 }
   0x3   :  { %2944 = sst [smem:[#allocation42_spill]] %s2902_s6 }
   0x4   :  { %2945 = sst [smem:[#allocation43_spill]] %s2903_s7 }
   0x5   :  { %2946 = sst [smem:[#allocation44_spill]] %s2904_s8 }
   0x6   :  { %2947 = sst [smem:[#allocation45_spill]] %s2907_s11 }
   0x7   :  { %16 = sst [smem:[#allocation3]] %s2896_s0 }
   0x8   :  { %17 = vsyncpa [#allocation5], 0 }
   0x9   :  { %19 = vsyncpa [#allocation5 + $0x1], 0 }
   0xa   :  { %20 = vsyncpa [#allocation8], 0 }
   0xb   :  { %22 = vsyncpa [#allocation8 + $0x1], 0 }
   0xc   :  { %23 = vsyncpa [#allocation11], 0 }
   0xd   :  { %25 = vsyncpa [#allocation11 + $0x1], 0 }
   0xe   :  { %26 = vsyncpa [#allocation14], 0 }
   0xf   :  { %28 = vsyncpa [#allocation14 + $0x1], 0 }
  0x10   :  { %29 = vsyncpa [#allocation17], 0 }
  0x11   :  { %30 = vsyncpa [#allocation20], 0 }
  0x12   :  { %31 = vsyncpa [#allocation6], 0 }
  0x13   :  { %33 = vsyncpa [#allocation6 + $0x1], 0  ;;  %s2310_s19 = smov 0   ;;  %s2312_s20 = smov 0  }
  0x14   :  { %s2314_s21 = smov 0   ;;  %s2316_s22 = smov 0  }
  0x15 LB: > { %2948 = sst [smem:[#allocation29_spill]] %s2215_s19  ;;  %s2331_s0 = sadd.s32 4294967295, %s2227_s22   ;;  %s2227_s22 = sphi %s2316_s22, %s3003_s22   ;;  %s2223_s21 = sphi %s2314_s21, %s3006_s21   ;;  %s2219_s20 = sphi %s2312_s20, %s3005_s20   ;;  %s2215_s19 = sphi %s2310_s19, %s3004_s19  }
  0x16   : > { %2949 = sst [smem:[#allocation30_spill]] %s2219_s20  ;;  %s1481_s23 = sadd.s32 4294967294, %s2227_s22  }
  0x17   : > { %2950 = sst [smem:[#allocation31_spill]] %s2223_s21  ;;  %p80_p0 = scmp.ne.s32.totalorder %s2219_s20, %s2215_s19 }
  0x18   : > { %2951 = sst [smem:[#allocation32_spill]] %s2227_s22  ;;  %p2909_p1 = scmp.eq.s32.totalorder %s2331_s0, 0 }
  0x19   : > { %2952 = sst [smem:[#allocation33_spill]] %s2331_s0  ;;  %p329_p3 = scmp.eq.s32.totalorder %s1481_s23, 1 }
  0x1a   : > { %p2340_p4 = por %p2909_p1, %p80_p0  ;;  %p1482_p5 = scmp.ge.s32.totalorder %s2227_s22, 1 }
  0x1b   : > { %p2345_p6 = por %p329_p3, %p80_p0  ;;  %p336_p7 = scmp.lt.s32.totalorder %s2227_s22, 3 }
  0x1c   : > { %s2953_s24 = scalar_select %p2340_p4, 1, 0 }
  0x1d   : > { %s2955_s25 = scalar_select %p2345_p6, 1, 0 }
  0x1e   : > { %2954 = sst [smem:[#allocation34_spill]] %s2953_s24  ;;  %p2350_p8 = pnand %p1482_p5, %p336_p7 }
  0x1f   : > { %2956 = sst [smem:[#allocation35_spill]] %s2955_s25  ;;  %s2229_s27 = smov [#allocation16]  }
  0x20   : > { %s2957_s26 = scalar_select %p2350_p8, 1, 0 }
  0x21   : > { %s351_s28 = sshll.u32 %s2229_s27, 4  ;;  %p1699_p9 = pneg %p2350_p8  ;;  %s2354_s28 = int_to_ptr.vmem [resolvable:$true] %s351_s28 }
  0x22   : > { %2958 = sst [smem:[#allocation36_spill]] %s2957_s26  ;;  %s2366_s30 = sadd.s32 1, %s2227_s22  }
  0x23   : > { %p2361_p11 = pnand %p1699_p9, %p2909_p1  ;;  %2960 = sst [smem:[#allocation37_spill]] %s2366_s30 }
  0x24   : > { %s67_s12 = sadd.s32 1, %s2223_s21  ;;  %s64_s13 = ssub.s32 %s2227_s22, %s2366_s30 }
  0x25   : > { %s2959_s29 = scalar_select %p2361_p11, 1, 0 }
  0x26   : > { %s2961_s8 = sld [smem:[#allocation44_spill]]  ;;  %p2379_p13 = pneg %p2361_p11 }
  0x28   : > { %s2962_s23 = scalar_select %p2379_p13, 1, 0 }
  0x2c   : > { %s1847_s16 = scalar_lea.hbm %s2961_s8, 256 }
  0x2d   : > { %p1848_p12 = scmp.ne.s32.totalorder %s2961_s8, %s1847_s16  ;;  %p1854_p5 = scmp.lt.u32.totalorder %s1847_s16, %s2961_s8 }
  0x2f   : > { %p1850_p0 = pnand %p2379_p13, %p1848_p12 }
  0x31   : > { %p1851_p3 = pneg %p1850_p0 }
  0x33   : > { %p1856_p7 = pnand %p1854_p5, %p1851_p3 }
  0x35   : > { %1859 = shalt.err (!%p1856_p7)
}
  0x36   : > { %s1860_s14 = scalar_lea.vmem %s2354_s28, 256  ;;  %p1868_p2 = scmp.lt.s32.totalorder %s2354_s28, %s2354_s28 }
  0x37   : > { %p1861_p9 = scmp.ne.s32.totalorder %s2354_s28, %s1860_s14  ;;  %p1869_p6 = scmp.lt.s32.totalorder %s1860_s14, %s1860_s14 }
  0x39   : > { %p1863_p10 = pnand %p1861_p9, %p2379_p13  ;;  %p1870_p12 = por %p1869_p6, %p1868_p2 }
  0x3b   : > { %p1864_p1 = pneg %p1863_p10 }
  0x3d   : > { %p1871_p0 = pnand %p1870_p12, %p1864_p1 }
  0x3f   : > { %1874 = shalt.err (!%p1871_p0)
}
  0x40   : > { %s2912_s15 = smov 128   ;;  %s2914_s25 = smov 8  }
  0x41   : > { %1702 = dma.hbm_to_vmem [thread:$0]  (!%p2361_p11), %s2961_s8, 256, %s2354_s28, [#allocation17], %s2912_s15, %s2912_s15, %s2914_s25  }
  0x42   : > { %p65_p1 = scmp.eq.s32.totalorder %s64_s13, 0  ;;  %p74_p2 = scmp.ne.s32.totalorder %s2223_s21, %s2219_s20 }
  0x43   : > { %p75_p6 = scmp.eq.s32.totalorder %s2227_s22, 0  ;;  %p1738_p10 = scmp.lt.s32.totalorder %s2227_s22, 2 }
  0x44   : > { %s2408_s18 = scalar_select %p65_p1, %s2223_s21, %s67_s12  }
  0x45   : > { %p76_p3 = por %p75_p6, %p74_p2  ;;  %p2964_p5 = scmp.eq.s32.totalorder %s2331_s0, 1 }
  0x46   : > { %2963 = sst [smem:[#allocation38_spill]] %s2408_s18  ;;  %s2417_s14 = sand.u32 1, %s2223_s21  }
  0x47   : > { %p2412_p7 = por %p2964_p5, %p74_p2  ;;  %s2420_s30 = sshll.u32 %s2227_s22, 7 }
  0x48   : > { %s2423_s16 = sshll.u32 %s2417_s14, 3  ;;  %p2425_p9 = pnand %p1738_p10, %p76_p3 }
  0x49   : > { %s2965_s27 = scalar_select %p2412_p7, 1, 0 }
  0x4a   : > { %s2967_s28 = scalar_select %p2425_p9, 1, 0 }
  0x4b   : > { %2966 = sst [smem:[#allocation39_spill]] %s2965_s27  ;;  %s2430_s12 = sand.u32 1, %s2227_s22  }
  0x4c   : > { %s2968_s2 = sld [smem:[#allocation40_spill]]  ;;  %s409_s25 = scalar_lea.vmem [#allocation7], %s2423_s16 }
  0x4d   : > { %s416_s8 = sshll.u32 %s409_s25, 4  ;;  %p2446_p0 = pneg %p2425_p9  ;;  %s2439_s8 = int_to_ptr.vmem [resolvable:$true] %s416_s8 }
  0x4f   : > { %s2969_s19 = scalar_select %p2446_p0, 1, 0 }
  0x52   : > { %s2436_s15 = scalar_lea.hbm %s2968_s2, %s2420_s30  ;;  %s1880_s11 = scalar_lea.hbm %s2968_s2, 256 }
  0x53   : > { %s1875_s21 = scalar_lea.hbm %s2436_s15, 128  ;;  %p1881_p6 = scmp.lt.u32.totalorder %s2436_s15, %s2968_s2 }
  0x54   : > { %p1876_p12 = scmp.ne.s32.totalorder %s2436_s15, %s1875_s21  ;;  %p1882_p10 = scmp.lt.u32.totalorder %s1880_s11, %s1875_s21 }
  0x55   : > { %p1884_p5 = scmp.lt.u32.totalorder %s1875_s21, %s2436_s15 }
  0x56   : > { %p1878_p1 = pnand %p2446_p0, %p1876_p12  ;;  %p1883_p3 = por %p1882_p10, %p1881_p6 }
  0x58   : > { %p1879_p2 = pneg %p1878_p1  ;;  %p1885_p7 = por %p1884_p5, %p1883_p3 }
  0x5a   : > { %p1886_p4 = pnand %p1885_p7, %p1879_p2 }
  0x5c   : > { %1889 = shalt.err (!%p1886_p4)
}
  0x5d   : > { %s1890_s18 = scalar_lea.vmem %s2439_s8, 128  ;;  %s2232_s13 = smov [#allocation7]  }
  0x5e   : > { %p1891_p12 = scmp.ne.s32.totalorder %s2439_s8, %s1890_s18  ;;  %s1895_s17 = sshll.u32 %s2232_s13, 4  ;;  %s1896_s17 = int_to_ptr.vmem [resolvable:$false] %s1895_s17 }
  0x5f   : > { %s1897_s27 = scalar_lea.vmem %s1896_s17, 256  ;;  %p1898_p11 = scmp.lt.s32.totalorder %s2439_s8, %s1896_s17 }
  0x60   : > { %p1893_p1 = pnand %p1891_p12, %p2446_p0  ;;  %p1899_p13 = scmp.lt.s32.totalorder %s1897_s27, %s1890_s18 }
  0x62   : > { %p1894_p8 = pneg %p1893_p1  ;;  %p1900_p6 = por %p1899_p13, %p1898_p11 }
  0x64   : > { %p1901_p10 = pnand %p1900_p6, %p1894_p8 }
  0x66   : > { %1904 = shalt.err (!%p1901_p10)
}
  0x67   : > { %s2970_s11 = scalar_lea.sflag [#allocation8], %s2430_s12  ;;  %s2472_s21 = sshll.u32 %s2417_s14, 4 }
  0x68   : > { %1715 = dma.hbm_to_vmem [thread:$0]  (!%p2425_p9), %s2436_s15, 128, %s2439_s8, %s2970_s11  }
  0x69   : > { %s2475_s25 = sshll.u32 %s2227_s22, 8  ;;  %s2971_s4 = sld [smem:[#allocation41_spill]] }
  0x6a   : > { %s448_s27 = scalar_lea.vmem [#allocation10], %s2472_s21  ;;  %s2933_s8 = scalar_lea.sflag [#allocation11], %s2430_s12 }
  0x6b   : > { %s455_s2 = sshll.u32 %s448_s27, 4  ;;  %s2484_s2 = int_to_ptr.vmem [resolvable:$true] %s455_s2 }
  0x6f   : > { %s2481_s17 = scalar_lea.hbm %s2971_s4, %s2475_s25  ;;  %s1910_s18 = scalar_lea.hbm %s2971_s4, 512 }
  0x70   : > { %s1905_s15 = scalar_lea.hbm %s2481_s17, 256  ;;  %p1911_p13 = scmp.lt.u32.totalorder %s2481_s17, %s2971_s4 }
  0x71   : > { %p1906_p4 = scmp.ne.s32.totalorder %s2481_s17, %s1905_s15  ;;  %p1912_p7 = scmp.lt.u32.totalorder %s1910_s18, %s1905_s15 }
  0x72   : > { %p1914_p3 = scmp.lt.u32.totalorder %s1905_s15, %s2481_s17 }
  0x73   : > { %p1908_p8 = pnand %p1906_p4, %p2446_p0  ;;  %p1913_p2 = por %p1912_p7, %p1911_p13 }
  0x75   : > { %p1909_p11 = pneg %p1908_p8  ;;  %p1915_p5 = por %p1914_p3, %p1913_p2 }
  0x77   : > { %p1916_p12 = pnand %p1915_p5, %p1909_p11 }
  0x79   : > { %1919 = shalt.err (!%p1916_p12)
}
  0x7a   : > { %s1920_s27 = scalar_lea.vmem %s2484_s2, 256  ;;  %s2233_s0 = smov [#allocation10]  }
  0x7b   : > { %p1921_p1 = scmp.ne.s32.totalorder %s2484_s2, %s1920_s27  ;;  %s1925_s11 = sshll.u32 %s2233_s0, 4  ;;  %s1926_s11 = int_to_ptr.vmem [resolvable:$false] %s1925_s11 }
  0x7c   : > { %s1927_s24 = scalar_lea.vmem %s1926_s11, 512  ;;  %p1928_p4 = scmp.lt.s32.totalorder %s2484_s2, %s1926_s11 }
  0x7d   : > { %p1923_p6 = pnand %p1921_p1, %p2446_p0  ;;  %p1929_p8 = scmp.lt.s32.totalorder %s1927_s24, %s1920_s27 }
  0x7f   : > { %p1924_p10 = pneg %p1923_p6  ;;  %p1930_p13 = por %p1929_p8, %p1928_p4 }
  0x81   : > { %p1931_p7 = pnand %p1930_p13, %p1924_p10 }
  0x83   : > { %1934 = shalt.err (!%p1931_p7)
}
  0x84   : > { %s2972_s15 = smov 8   ;;  %s2973_s18 = smov 128  }
  0x85   : > { %1721 = dma.hbm_to_vmem [thread:$0]  (!%p2425_p9), %s2481_s17, 256, %s2484_s2, %s2933_s8, %s2973_s18, %s2973_s18, %s2972_s15  }
  0x86   : > { %s2974_s6 = sld [smem:[#allocation42_spill]]  ;;  %s487_s11 = scalar_lea.vmem [#allocation13], %s2472_s21 }
  0x87   : > { %s494_s24 = sshll.u32 %s487_s11, 4  ;;  %s484_s4 = scalar_lea.sflag [#allocation14], %s2430_s12  ;;  %s2520_s24 = int_to_ptr.vmem [resolvable:$true] %s494_s24 }
  0x8c   : > { %s2517_s27 = scalar_lea.hbm %s2974_s6, %s2475_s25  ;;  %s1940_s13 = scalar_lea.hbm %s2974_s6, 512 }
  0x8d   : > { %s1935_s20 = scalar_lea.hbm %s2517_s27, 256  ;;  %p1941_p5 = scmp.lt.u32.totalorder %s2517_s27, %s2974_s6 }
  0x8e   : > { %p1936_p11 = scmp.ne.s32.totalorder %s2517_s27, %s1935_s20  ;;  %p1942_p12 = scmp.lt.u32.totalorder %s1940_s13, %s1935_s20 }
  0x8f   : > { %p1944_p6 = scmp.lt.u32.totalorder %s1935_s20, %s2517_s27 }
  0x90   : > { %p1938_p2 = pnand %p1936_p11, %p2446_p0  ;;  %p1943_p1 = por %p1942_p12, %p1941_p5 }
  0x92   : > { %p1939_p3 = pneg %p1938_p2  ;;  %p1945_p10 = por %p1944_p6, %p1943_p1 }
  0x94   : > { %p1946_p4 = pnand %p1945_p10, %p1939_p3 }
  0x96   : > { %1949 = shalt.err (!%p1946_p4)
}
  0x97   : > { %s1950_s11 = scalar_lea.vmem %s2520_s24, 256  ;;  %s2234_s2 = smov [#allocation13]  }
  0x98   : > { %p1951_p8 = scmp.ne.s32.totalorder %s2520_s24, %s1950_s11  ;;  %s1955_s17 = sshll.u32 %s2234_s2, 4  ;;  %s1956_s17 = int_to_ptr.vmem [resolvable:$false] %s1955_s17 }
  0x99   : > { %s1957_s8 = scalar_lea.vmem %s1956_s17, 512  ;;  %p1958_p11 = scmp.lt.s32.totalorder %s2520_s24, %s1956_s17 }
  0x9a   : > { %p1953_p13 = pnand %p1951_p8, %p2446_p0  ;;  %p1959_p2 = scmp.lt.s32.totalorder %s1957_s8, %s1950_s11 }
  0x9c   : > { %p1954_p7 = pneg %p1953_p13  ;;  %p1960_p5 = por %p1959_p2, %p1958_p11 }
  0x9e   : > { %p1961_p12 = pnand %p1960_p5, %p1954_p7 }
  0xa0   : > { %1964 = shalt.err (!%p1961_p12)
}
  0xa1   : > { %1727 = dma.hbm_to_vmem [thread:$0]  (!%p2425_p9), %s2517_s27, 256, %s2520_s24, %s484_s4, %s2973_s18, %s2973_s18, %s2972_s15  }
  0xa2   : > { %s2235_s20 = smov [#allocation18]   ;;  %s2236_s0 = smov [#allocation19]  }
  0xa3   : > { %s365_s13 = sshll.u32 %s2235_s20, 4  ;;  %s376_s2 = sshll.u32 %s2236_s0, 4  ;;  %s366_s13 = int_to_ptr.vmem [resolvable:$true] %s365_s13  ;;  %s377_s2 = int_to_ptr.vmem [resolvable:$true] %s376_s2 }
  0xa4   : > { %s1965_s8 = scalar_lea.hbm %s2905_s9, 64  ;;  %p2975_p1 = scmp.ne.s32.totalorder %s2962_s23, 0 }
  0xa5   : > { %p1966_p3 = scmp.ne.s32.totalorder %s2905_s9, %s1965_s8  ;;  %p1972_p4 = scmp.lt.u32.totalorder %s1965_s8, %s2905_s9 }
  0xa7   : > { %p1968_p6 = pnand %p1966_p3, %p2975_p1 }
  0xa9   : > { %p1969_p10 = pneg %p1968_p6 }
  0xab   : > { %p1974_p8 = pnand %p1972_p4, %p1969_p10 }
  0xad   : > { %1977 = shalt.err (!%p1974_p8)
}
  0xae   : > { %s1978_s27 = scalar_lea.vmem %s366_s13, 64  ;;  %p1986_p2 = scmp.lt.s32.totalorder %s366_s13, %s366_s13 }
  0xaf   : > { %p1979_p13 = scmp.ne.s32.totalorder %s366_s13, %s1978_s27  ;;  %p1987_p5 = scmp.lt.s32.totalorder %s1978_s27, %s1978_s27 }
  0xb1   : > { %p1981_p7 = pnand %p1979_p13, %p2975_p1  ;;  %p1988_p12 = por %p1987_p5, %p1986_p2 }
  0xb3   : > { %p1982_p11 = pneg %p1981_p7 }
  0xb5   : > { %p1989_p9 = pnand %p1988_p12, %p1982_p11 }
  0xb7   : > { %1992 = shalt.err (!%p1989_p9)
}
  0xb8   : > { %p2976_p3 = scmp.ne.s32.totalorder %s2959_s29, 0  ;;  %s1993_s24 = scalar_lea.hbm %s2906_s10, 64 }
  0xb9   : > { %p1994_p6 = scmp.ne.s32.totalorder %s2906_s10, %s1993_s24  ;;  %p2000_p9 = scmp.lt.u32.totalorder %s1993_s24, %s2906_s10 }
  0xba   : > { %1705 = dma.hbm_to_vmem [thread:$0]  (!%p2976_p3), %s2905_s9, 64, %s366_s13, [#allocation17]  }
  0xbb   : > { %p1996_p10 = pnand %p1994_p6, %p2975_p1 }
  0xbd   : > { %p1997_p4 = pneg %p1996_p10 }
  0xbf   : > { %p2002_p8 = pnand %p2000_p9, %p1997_p4 }
  0xc1   : > { %2005 = shalt.err (!%p2002_p8)
}
  0xc2   : > { %s2006_s8 = scalar_lea.vmem %s377_s2, 64  ;;  %p2014_p2 = scmp.lt.s32.totalorder %s377_s2, %s377_s2 }
  0xc3   : > { %p2007_p13 = scmp.ne.s32.totalorder %s377_s2, %s2006_s8  ;;  %p2015_p5 = scmp.lt.s32.totalorder %s2006_s8, %s2006_s8 }
  0xc5   : > { %p2009_p7 = pnand %p2007_p13, %p2975_p1  ;;  %p2016_p12 = por %p2015_p5, %p2014_p2 }
  0xc7   : > { %p2010_p11 = pneg %p2009_p7 }
  0xc9   : > { %p2017_p0 = pnand %p2016_p12, %p2010_p11 }
  0xcb   : > { %2020 = shalt.err (!%p2017_p0)
}
  0xcc   : > { %1708 = dma.hbm_to_vmem [thread:$0]  (!%p2976_p3), %s2906_s10, 64, %s377_s2, [#allocation20]  }
  0xcd   : > { %s2589_s26 = scalar_lea.hbm %s2897_s1, %s2420_s30  ;;  %s391_s7 = scalar_lea.vmem [#allocation4], %s2423_s16 }
  0xce   : > { %s398_s29 = sshll.u32 %s391_s7, 4  ;;  %s2598_s20 = scalar_lea.hbm %s2899_s3, %s2475_s25  ;;  %s2592_s29 = int_to_ptr.vmem [resolvable:$true] %s398_s29 }
  0xcf   : > { %s388_s0 = scalar_lea.sflag [#allocation5], %s2417_s14  ;;  %s2021_s2 = scalar_lea.hbm %s2589_s26, 128 }
  0xd0   : > { %p2022_p0 = scmp.ne.s32.totalorder %s2589_s26, %s2021_s2  ;;  %p2977_p1 = scmp.ne.s32.totalorder %s2969_s19, 0 }
  0xd1   : > { %s2026_s8 = scalar_lea.hbm %s2897_s1, 256  ;;  %p2027_p10 = scmp.lt.u32.totalorder %s2589_s26, %s2897_s1 }
  0xd2   : > { %p2024_p3 = pnand %p2022_p0, %p2977_p1  ;;  %p2028_p4 = scmp.lt.u32.totalorder %s2026_s8, %s2021_s2 }
  0xd3   : > { %p2030_p8 = scmp.lt.u32.totalorder %s2021_s2, %s2589_s26 }
  0xd4   : > { %p2025_p6 = pneg %p2024_p3  ;;  %p2029_p9 = por %p2028_p4, %p2027_p10 }
  0xd6   : > { %p2031_p13 = por %p2030_p8, %p2029_p9 }
  0xd8   : > { %p2032_p7 = pnand %p2031_p13, %p2025_p6 }
  0xda   : > { %2035 = shalt.err (!%p2032_p7)
}
  0xdb   : > { %s2036_s25 = scalar_lea.vmem %s2592_s29, 128  ;;  %s2237_s6 = smov [#allocation4]  }
  0xdc   : > { %p2037_p11 = scmp.ne.s32.totalorder %s2592_s29, %s2036_s25  ;;  %s2041_s23 = sshll.u32 %s2237_s6, 4  ;;  %s2042_s23 = int_to_ptr.vmem [resolvable:$false] %s2041_s23 }
  0xdd   : > { %s2043_s7 = scalar_lea.vmem %s2042_s23, 256  ;;  %p2044_p12 = scmp.lt.s32.totalorder %s2592_s29, %s2042_s23 }
  0xde   : > { %p2039_p2 = pnand %p2037_p11, %p2977_p1  ;;  %p2045_p0 = scmp.lt.s32.totalorder %s2043_s7, %s2036_s25 }
  0xe0   : > { %p2040_p5 = pneg %p2039_p2  ;;  %p2046_p3 = por %p2045_p0, %p2044_p12 }
  0xe2   : > { %p2047_p10 = pnand %p2046_p3, %p2040_p5 }
  0xe4   : > { %2050 = shalt.err (!%p2047_p10)
}
  0xe5   : > { %p2978_p6 = scmp.ne.s32.totalorder %s2967_s28, 0  ;;  %s427_s22 = scalar_lea.vmem [#allocation9], %s2472_s21 }
  0xe6   : > { %s434_s24 = sshll.u32 %s427_s22, 4  ;;  %s2629_s17 = scalar_lea.hbm %s2901_s5, %s2420_s30  ;;  %s2623_s24 = int_to_ptr.vmem [resolvable:$true] %s434_s24 }
  0xe7   : > { %1712 = dma.hbm_to_vmem [thread:$0]  (!%p2978_p6), %s2589_s26, 128, %s2592_s29, %s388_s0  }
  0xe8   : > { %s2051_s8 = scalar_lea.hbm %s2598_s20, 256  ;;  %s2056_s25 = scalar_lea.hbm %s2899_s3, 512 }
  0xe9   : > { %p2052_p4 = scmp.ne.s32.totalorder %s2598_s20, %s2051_s8  ;;  %p2057_p13 = scmp.lt.u32.totalorder %s2598_s20, %s2899_s3 }
  0xea   : > { %p2058_p7 = scmp.lt.u32.totalorder %s2056_s25, %s2051_s8  ;;  %p2060_p2 = scmp.lt.u32.totalorder %s2051_s8, %s2598_s20 }
  0xeb   : > { %p2054_p9 = pnand %p2052_p4, %p2977_p1 }
  0xec   : > { %p2059_p11 = por %p2058_p7, %p2057_p13 }
  0xed   : > { %p2055_p8 = pneg %p2054_p9 }
  0xee   : > { %p2061_p5 = por %p2060_p2, %p2059_p11 }
  0xf0   : > { %p2062_p12 = pnand %p2061_p5, %p2055_p8 }
  0xf2   : > { %2065 = shalt.err (!%p2062_p12)
}
  0xf3   : > { %s2066_s30 = scalar_lea.vmem %s2623_s24, 256  ;;  %s2238_s21 = smov [#allocation9]  }
  0xf4   : > { %p2067_p0 = scmp.ne.s32.totalorder %s2623_s24, %s2066_s30  ;;  %s2071_s29 = sshll.u32 %s2238_s21, 4  ;;  %s2072_s29 = int_to_ptr.vmem [resolvable:$false] %s2071_s29 }
  0xf5   : > { %s2073_s0 = scalar_lea.vmem %s2072_s29, 512  ;;  %p2074_p4 = scmp.lt.s32.totalorder %s2623_s24, %s2072_s29 }
  0xf6   : > { %p2069_p3 = pnand %p2067_p0, %p2977_p1  ;;  %p2075_p9 = scmp.lt.s32.totalorder %s2073_s0, %s2066_s30 }
  0xf8   : > { %p2070_p10 = pneg %p2069_p3  ;;  %p2076_p13 = por %p2075_p9, %p2074_p4 }
  0xfa   : > { %p2077_p7 = pnand %p2076_p13, %p2070_p10 }
  0xfc   : > { %2080 = shalt.err (!%p2077_p7)
}
  0xfd   : > { %s2979_s23 = scalar_lea.sflag [#allocation8], %s2430_s12  ;;  %s2980_s7 = sld [smem:[#allocation32_spill]] }
  0xfe   : > { %1718 = dma.hbm_to_vmem [thread:$0]  (!%p2978_p6), %s2598_s20, 256, %s2623_s24, %s2979_s23, %s2973_s18, %s2973_s18, %s2972_s15  }
  0xff   : > { %s469_s22 = scalar_lea.vmem [#allocation12], %s2423_s16  ;;  %s2081_s8 = scalar_lea.hbm %s2629_s17, 128 }
 0x100   : > { %s476_s2 = sshll.u32 %s469_s22, 4  ;;  %p2082_p8 = scmp.ne.s32.totalorder %s2629_s17, %s2081_s8  ;;  %s477_s2 = int_to_ptr.vmem [resolvable:$true] %s476_s2 }
 0x101   : > { %s2086_s25 = scalar_lea.hbm %s2901_s5, 256  ;;  %p2087_p5 = scmp.lt.u32.totalorder %s2629_s17, %s2901_s5 }
 0x102   : > { %p2084_p11 = pnand %p2082_p8, %p2977_p1  ;;  %p2088_p12 = scmp.lt.u32.totalorder %s2086_s25, %s2081_s8 }
 0x103   : > { %s1502_s11 = sshll.u32 %s2980_s7, 4  ;;  %p2090_p3 = scmp.lt.u32.totalorder %s2081_s8, %s2629_s17 }
 0x104   : > { %p2085_p2 = pneg %p2084_p11  ;;  %p2089_p0 = por %p2088_p12, %p2087_p5 }
 0x106   : > { %p2091_p10 = por %p2090_p3, %p2089_p0 }
 0x108   : > { %p2092_p4 = pnand %p2091_p10, %p2085_p2 }
 0x10a   : > { %2095 = shalt.err (!%p2092_p4)
}
 0x10b   : > { %s2096_s16 = scalar_lea.vmem %s477_s2, 128  ;;  %s2239_s15 = smov [#allocation12]  }
 0x10c   : > { %p2097_p9 = scmp.ne.s32.totalorder %s477_s2, %s2096_s16  ;;  %s2101_s18 = sshll.u32 %s2239_s15, 4  ;;  %s2102_s18 = int_to_ptr.vmem [resolvable:$false] %s2101_s18 }
 0x10d   : > { %s2103_s20 = scalar_lea.vmem %s2102_s18, 256  ;;  %p2104_p8 = scmp.lt.s32.totalorder %s477_s2, %s2102_s18 }
 0x10e   : > { %p2099_p13 = pnand %p2097_p9, %p2977_p1  ;;  %p2105_p11 = scmp.lt.s32.totalorder %s2103_s20, %s2096_s16 }
 0x110   : > { %p2100_p7 = pneg %p2099_p13  ;;  %p2106_p6 = por %p2105_p11, %p2104_p8 }
 0x112   : > { %p2107_p5 = pnand %p2106_p6, %p2100_p7 }
 0x114   : > { %2110 = shalt.err (!%p2107_p5)
}
 0x115   : > { %p2981_p12 = scmp.ne.s32.totalorder %s2967_s28, 0  ;;  %s2982_s24 = scalar_lea.sflag [#allocation11], %s2430_s12 }
 0x116   : > { %s2983_s29 = sld [smem:[#allocation43_spill]]  ;;  %s507_s23 = scalar_lea.vmem [#allocation15], %s2417_s14 }
 0x117   : > { %1724 = dma.hbm_to_vmem [thread:$0]  (!%p2981_p12), %s2629_s17, 128, %s477_s2, %s2982_s24  }
 0x118   : > { %s514_s7 = sshll.u32 %s507_s23, 4  ;;  %s515_s7 = int_to_ptr.vmem [resolvable:$true] %s514_s7 }
 0x11c   : > { %s2681_s0 = scalar_lea.hbm %s2983_s29, %s1502_s11  ;;  %s2116_s17 = scalar_lea.hbm %s2983_s29, 32 }
 0x11d   : > { %s2111_s22 = scalar_lea.hbm %s2681_s0, 16  ;;  %p2117_p3 = scmp.lt.u32.totalorder %s2681_s0, %s2983_s29 }
 0x11e   : > { %p2112_p6 = scmp.ne.s32.totalorder %s2681_s0, %s2111_s22  ;;  %p2118_p10 = scmp.lt.u32.totalorder %s2116_s17, %s2111_s22 }
 0x11f   : > { %p2120_p9 = scmp.lt.u32.totalorder %s2111_s22, %s2681_s0 }
 0x120   : > { %p2114_p2 = pnand %p2112_p6, %p2977_p1  ;;  %p2119_p4 = por %p2118_p10, %p2117_p3 }
 0x122   : > { %p2115_p0 = pneg %p2114_p2  ;;  %p2121_p13 = por %p2120_p9, %p2119_p4 }
 0x124   : > { %p2122_p7 = pnand %p2121_p13, %p2115_p0 }
 0x126   : > { %2125 = shalt.err (!%p2122_p7)
}
 0x127   : > { %s2126_s14 = scalar_lea.vmem %s515_s7, 16  ;;  %s2240_s11 = smov [#allocation15]  }
 0x128   : > { %p2127_p8 = scmp.ne.s32.totalorder %s515_s7, %s2126_s14  ;;  %s2131_s25 = sshll.u32 %s2240_s11, 4  ;;  %s2132_s25 = int_to_ptr.vmem [resolvable:$false] %s2131_s25 }
 0x129   : > { %s2133_s6 = scalar_lea.vmem %s2132_s25, 32  ;;  %p2134_p6 = scmp.lt.s32.totalorder %s515_s7, %s2132_s25 }
 0x12a   : > { %p2129_p11 = pnand %p2127_p8, %p2977_p1  ;;  %p2135_p2 = scmp.lt.s32.totalorder %s2133_s6, %s2126_s14 }
 0x12c   : > { %p2130_p5 = pneg %p2129_p11  ;;  %p2136_p12 = por %p2135_p2, %p2134_p6 }
 0x12e   : > { %p2137_p3 = pnand %p2136_p12, %p2130_p5 }
 0x130   : > { %2140 = shalt.err (!%p2137_p3)
}
 0x131   : > { %p2984_p10 = scmp.ne.s32.totalorder %s2967_s28, 0  ;;  %s2985_s26 = sld [smem:[#allocation36_spill]] }
 0x133   : > { %1730 = dma.hbm_to_vmem [thread:$0]  (!%p2984_p10), %s2681_s0, 16, %s515_s7, %s484_s4  }
 0x137   : > { %p2986_p0 = scmp.ne.s32.totalorder %s2985_s26, 0 }
 0x138   : > { %s2987_s19 = sld [smem:[#allocation30_spill]] (!%p2986_p0)  ;;  %s2988_s16 = sld [smem:[#allocation34_spill]] (!%p2986_p0) }
 0x139   : > { %523 = sbr.rel (%p2986_p0) target bundleno = 1442 (0x5a2), region = 64 }
 0x13e   : > { %s2706_s15 = sand.u32 (!%p2986_p0), 1, %s2987_s19   ;;  %p2989_p1 = scmp.ne.s32.totalorder (!%p2986_p0), %s2988_s16, 0 }
 0x13f   : > { %s2709_s18 = sshll.u32 (!%p2986_p0), %s2706_s15, 3  ;;  %s526_s20 = scalar_lea.sflag (!%p2986_p0), [#allocation5], %s2706_s15 }
 0x140   : > { %s529_s24 = scalar_lea.vmem [#allocation4], %s2709_s18 }
 0x141   : > { %2186 = dma.done.wait (%p2989_p1), %s526_s20, 128  }
 0x142   : > { %2188 = vsyncadd (%p2989_p1), %s526_s20, 4294967168  ;;  %s2990_s4 = sld [smem:[#allocation33_spill]]  ;;  %s538_s30 = scalar_lea.vmem [#allocation7], %s2709_s18 }
 0x148   : > { %s534_s28 = sand.u32 1, %s2990_s4  }
 0x149   : > { %s535_s12 = scalar_lea.sflag [#allocation8], %s534_s28 }
 0x14a   : > { %2190 = dma.done.wait (%p2989_p1), %s535_s12, 384  }
 0x14b   : > { %2192 = vsyncadd (%p2989_p1), %s535_s12, 4294966912  ;;  %s2724_s21 = sshll.u32 %s2706_s15, 4  ;;  %s553_s23 = scalar_lea.sflag [#allocation11], %s534_s28 }
 0x14c   : > { %s547_s0 = scalar_lea.vmem [#allocation9], %s2724_s21  ;;  %s556_s7 = scalar_lea.vmem [#allocation10], %s2724_s21 }
 0x14d   : > { %2194 = dma.done.wait (%p2989_p1), %s553_s23, 384  }
 0x14e   : > { %2196 = vsyncadd (%p2989_p1), %s553_s23, 4294966912  ;;  %s565_s22 = scalar_lea.vmem [#allocation12], %s2709_s18  ;;  %s571_s8 = scalar_lea.sflag [#allocation14], %s534_s28 }
 0x14f   : > { %s574_s13 = scalar_lea.vmem [#allocation13], %s2724_s21 }
 0x150   : > { %2198 = dma.done.wait (%p2989_p1), %s571_s8, 272  }
 0x151   : > { %2200 = vsyncadd (%p2989_p1), %s571_s8, 4294967024  ;;  %s582_s17 = scalar_lea.vmem [#allocation15], %s2706_s15  ;;  %p2991_p12 = scmp.eq.s32.totalorder %s2990_s4, 0 }
 0x153   : > { %2202 = dma.done.wait (%p2991_p12), [#allocation17], 320   ;;  %p2992_p4 = pmov %p2991_p12 }
 0x155   : > { %2204 = vsyncadd (%p2992_p4), [#allocation17], 4294966976  ;;  %p2993_p9 = pmov %p2992_p4 }
 0x156   : > { %p2994_p13 = pmov %p2992_p4 }
 0x157   : > { %2206 = dma.done.wait (%p2993_p9), [#allocation20], 64  }
 0x158   : > { %2208 = vsyncadd (%p2994_p13), [#allocation20], 4294967232  ;;  %v2241_v0 = vmov 0   ;;  %v664_v1 = vld [vmem:[%s574_s13] sm:$0xff]  ;;  %v663_v2 = vld [vmem:[%s565_s22] sm:$0xff]  ;;  %s662_s2 = sld [smem:[#allocation3]] }
 0x159   : > { %1785 = vset.pattern.permute.xlu0 %v2241_v0  ;;  %1786 = vset.pattern.permute.xlu1 %v2241_v0  ;;  %v665_v3 = vld [vmem:[%s574_s13 + $0x8] sm:$0xf]  ;;  %v681_v4 = vld [vmem:[%s547_s0] sm:$0xff]  ;;  %v671_v9 = vld [vmem:[%s538_s30] sm:$0xff]  ;;  %vm704_vm0 = vcmask 261120   ;;  %vm723_vm1 = vcmask 257024  }
 0x15a   : > { %693 = vperm.xlu0 %1785, %v664_v1   ;;  %677 = vperm.xlu1 %1786, %v663_v2   ;;  %v685_v5 = vld [vmem:[%s556_s7] sm:$0xff]  ;;  %v682_v12 = vld [vmem:[%s547_s0 + $0x8] sm:$0xf]  ;;  %v2242_v34 = vmov 0.0|0.0   ;;  %vm2243_vm2 = vmmov 0   ;;  %v2244_v35 = vmov 0.0   ;;  %vm1650_vm9 = vmpackc.low %vm704_vm0, %vm704_vm0 }
 0x15b   : > { %v667_v8 = vld [vmem:[%s529_s24] sm:$0xff]  ;;  %v686_v13 = vld [vmem:[%s556_s7 + $0x8] sm:$0xf]  ;;  %1648 = vmatprep.subr.bf16.mxu0 %v2242_v34  ;;  %1652 = vmatprep.subr.bf16.mxu1 %v2242_v34  ;;  %vm972_vm10 = vcmask 1043456   ;;  %vm2245_vm11 = vmmov 1   ;;  %vm844_vm13 = vcmask 97280  }
 0x15c   : > { %v1228_v33 = vld [vmem:[#allocation19] sm:$0x7]  ;;  %1583 = vmatprep.mubr.msk.f32.mxu0 %vm2243_vm2, %v2244_v35  ;;  %1590 = vmatprep.mubr.msk.f32.mxu1 %vm2243_vm2, %v2244_v35  ;;  %v937_v0 = vld [vmem:[#allocation16] sm:$0xff]  ;;  %v938_v1 = vld [vmem:[#allocation16 + $0x8] sm:$0xf]  ;;  %vm1154_vm15 = vcmask 719872  }
 0x15d   : > { %v1653_v2 = vpack.c.bf16 %v938_v1, %v937_v0  ;;  %vm1654_vm12 = vmpackc.low %vm972_vm10, %vm2245_vm11  ;;  %s2995_s14 = sld [smem:[#allocation39_spill]]  ;;  %s1513_s11 = sshll.u32 %s2706_s15, 2 }
 0x15e   : > { %698 = vperm.xlu0 %1785, %v665_v3   ;;  %s670_s27 = ssub.f32 1.0, %s662_s2  ;;  %v668_v6 = vstv %s662_s2  ;;  %v1517_v3 = vld [vmem:[%s582_s17] ss:$0 sm:$0xff]  ;;  %s1545_s25 = sshll.u32 %s2990_s4, 6 }
 0x15f   : > { %v683_v10 = vmul.f32 %v681_v4, %v668_v6  ;;  %v669_v14 = vmul.f32 %v668_v6, %v667_v8  ;;  %v684_v17 = vmul.f32 %v682_v12, %v668_v6  ;;  %1655 = vmatpush3.bf16.msk.msra.mxu1 %vm1654_vm12, %v1653_v2  ;;  %s661_s6 = scalar_lea.vmem [#allocation21], %s1513_s11  ;;  %s2996_s18 = sld [smem:[#allocation45_spill]] }
 0x160   : > { %v672_v7 = vstv %s670_s27  ;;  %s1256_s26 = sshll.u32 %s661_s6, 4  ;;  %s1243_s24 = scalar_lea.sflag [#allocation6], %s2706_s15  ;;  %s2854_s26 = int_to_ptr.vmem [resolvable:$true] %s1256_s26 }
 0x161   : > { %v687_v11 = vmul.f32 %v685_v5, %v672_v7  ;;  %v673_v15 = vmul.f32 %v672_v7, %v671_v9  ;;  %v688_v18 = vmul.f32 %v686_v13, %v672_v7  ;;  %s2141_s28 = scalar_lea.vmem %s2854_s26, 64  ;;  %s2246_s4 = smov [#allocation21]  }
 0x162   : > { %p2142_p7 = scmp.ne.s32.totalorder %s2854_s26, %s2141_s28  ;;  %s2145_s12 = sshll.u32 %s2246_s4, 4  ;;  %s2146_s12 = int_to_ptr.vmem [resolvable:$false] %s2145_s12 }
 0x163   : > { %v689_v16 = vadd.f32 %v687_v11, %v683_v10  ;;  %v674_v19 = vadd.f32 %v673_v15, %v669_v14  ;;  %v690_v23 = vadd.f32 %v688_v18, %v684_v17  ;;  %p2997_p8 = scmp.ne.s32.totalorder %s2995_s14, 0  ;;  %s2147_s30 = scalar_lea.vmem %s2146_s12, 128 }
 0x164   : > { %p2148_p6 = scmp.lt.s32.totalorder %s2854_s26, %s2146_s12  ;;  %p2149_p2 = scmp.lt.s32.totalorder %s2147_s30, %s2141_s28 }
 0x165   : > { %s2852_s20 = scalar_lea.hbm %s2996_s18, %s1545_s25  ;;  %p2143_p11 = pnand %p2142_p7, %p2997_p8 }
 0x166   : > { %p2150_p3 = por %p2149_p2, %p2148_p6 }
 0x167   : > { %p2144_p5 = pneg %p2143_p11 }
 0x169   : > { %p2151_p10 = pnand %p2150_p3, %p2144_p5 }
 0x1d9   : > { %v694_v20 = vpop.permute.xlu0 %693  ;;  %v2759_v21 = vpop.permute.xlu1 %677 }
 0x1da   : > { %v701_v22 = vmul.f32 %v694_v20, %v689_v16  ;;  %v2762_v25 = vmul.f32 %v2759_v21, %v674_v19  ;;  %v2784_v4 = vmul.f32 %v1517_v3, %v2759_v21 }
 0x1dc   : > { %v718_v24 = vmul.f32 %v701_v22, %v701_v22  ;;  %v703_v30 = vmul.f32 %v2762_v25, %v2762_v25 }
 0x1dd   : > { %v699_v26 = vpop.permute.xlu0 %698 }
 0x1de   : > { %v702_v27 = vmul.f32 %v699_v26, %v690_v23  ;;  %v720_v28 = vsel %vm704_vm0, %v718_v24, 0.0  ;;  %v705_v32 = vsel %vm704_vm0, %v703_v30, 0.0 }
 0x1df   : > { %721 = vadd.xlane.f32.xlu1 %v720_v28 }
 0x1e0   : > { %v719_v29 = vmul.f32 %v702_v27, %v702_v27 }
 0x1e2   : > { %v724_v31 = vsel %vm723_vm1, %v719_v29, 0.0 }
 0x1e3   : > { %725 = vadd.xlane.f32.xlu0 %v724_v31 }
 0x1e7   : > { %706 = vadd.xlane.f32.xlu0 %v705_v32 }
 0x1f0   : > { %1231 = vperm.xlu1 %1786, %v1228_v33  }
 0x26c   : > { %v722_v36 = vpop.xlane.xlu1 %721 }
 0x26d   : > { %1787 = vrsqrt.f32 %v722_v36  ;;  %vm729_vm3 = vcmp.eq.f32.partialorder %v722_v36, inf  ;;  %v732_v41 = vand.u32 2147483648, %v722_v36  ;;  %vm731_vm4 = vcmp.eq.f32.partialorder %v722_v36, 0.0 }
 0x270   : > { %v726_v37 = vpop.xlane.xlu0 %725 }
 0x271   : > { %1789 = vrsqrt.f32 %v726_v37  ;;  %vm736_vm5 = vcmp.eq.f32.partialorder %v726_v37, inf  ;;  %v739_v47 = vand.u32 2147483648, %v726_v37  ;;  %vm738_vm6 = vcmp.eq.f32.partialorder %v726_v37, 0.0 }
 0x274   : > { %v707_v38 = vpop.xlane.xlu0 %706 }
 0x275   : > { %1791 = vrsqrt.f32 %v707_v38  ;;  %vm710_vm7 = vcmp.eq.f32.partialorder %v707_v38, inf  ;;  %v713_v53 = vand.u32 2147483648, %v707_v38  ;;  %vm712_vm8 = vcmp.eq.f32.partialorder %v707_v38, 0.0 }
 0x277   : > { %v1788_v39 = vpop.eup %1787 }
 0x278   : > { %v728_v40 = vmul.f32 %v1788_v39, %v722_v36 }
 0x27a   : > { %v730_v42 = vsel %vm729_vm3, %v722_v36, %v728_v40 }
 0x27b   : > { %v1790_v43 = vpop.eup %1789  ;;  %v733_v44 = vsel %vm731_vm4, %v732_v41, %v730_v42 }
 0x27c   : > { %v741_v45 = vadd.f32 1e-13, %v733_v44  ;;  %v735_v46 = vmul.f32 %v1790_v43, %v726_v37 }
 0x27e   : > { %v737_v48 = vsel %vm736_vm5, %v726_v37, %v735_v46  ;;  %1793 = vrcp.f32 %v741_v45 }
 0x27f   : > { %v1792_v49 = vpop.eup %1791  ;;  %v740_v50 = vsel %vm738_vm6, %v739_v47, %v737_v48 }
 0x280   : > { %v742_v51 = vadd.f32 1e-13, %v740_v50  ;;  %v709_v52 = vmul.f32 %v1792_v49, %v707_v38 }
 0x282   : > { %1795 = vrcp.f32 %v742_v51  ;;  %v711_v54 = vsel %vm710_vm7, %v707_v38, %v709_v52 }
 0x283   : > { %v714_v55 = vsel %vm712_vm8, %v713_v53, %v711_v54 }
 0x284   : > { %v715_v56 = vadd.f32 1e-13, %v714_v55 }
 0x286   : > { %1797 = vrcp.f32 %v715_v56 }
 0x288   : > { %v1794_v57 = vpop.eup %1793 }
 0x289   : > { %v748_v59 = vmul.f32 %v1794_v57, %v701_v22 }
 0x28c   : > { %v1796_v58 = vpop.eup %1795 }
 0x28d   : > { %v749_v60 = vmul.f32 %v1796_v58, %v702_v27 }
 0x28f   : > { %v1649_v61 = vpack.c.bf16 %v749_v60, %v748_v59 }
 0x290   : > { %v1798_v62 = vpop.eup %1797 }
 0x291   : > { %1651 = vmatpush3.bf16.xpose.msk.msra.mxu0 %vm1650_vm9, %v1649_v61  ;;  %v747_v63 = vmul.f32 %v1798_v62, %v2762_v25 }
 0x292   : > { %1656 = vmatprep.subr.bf16.mxu0 %v2242_v34 }
 0x298   : > { %1584 = vmatmul.mubr.msk.f32.vlgmr.msra.gmra.mrb[0].mxu0 %vm704_vm0, %v747_v63 }
 0x299   : > { %1645 = vmatprep.mubr.msk.f32.mxu0 %vm2243_vm2, %v2244_v35 }
 0x36b   : > { %v825_v5 = vpop.f32.mrb[0].mxu0 }
 0x36c   : > { %v836_v6 = vmul.f32 %v2784_v4, %v825_v5  ;;  %v1585_v7 = vpop.f32.mrb[1].mxu0 }
 0x36e   : > { %1799 = vtanh.f32 %v836_v6 }
 0x378   : > { %v1800_v8 = vpop.eup %1799 }
 0x379   : > { %v1518_v9 = vadd.f32 -1.0, %v1800_v8  ;;  %v1519_v10 = vadd.f32 -0.9, %v1800_v8  ;;  %v1520_v11 = vadd.f32 -0.7, %v1800_v8  ;;  %v1521_v12 = vadd.f32 -0.5, %v1800_v8 }
 0x37a   : > { %v1522_v13 = vadd.f32 -0.3, %v1800_v8  ;;  %v1523_v14 = vadd.f32 -0.1, %v1800_v8  ;;  %v1524_v15 = vadd.f32 0.1, %v1800_v8 }
 0x37b   : > { %v839_v16 = vmul.f32 %v1518_v9, %v1518_v9  ;;  %v847_v17 = vmul.f32 %v1519_v10, %v1519_v10  ;;  %v855_v18 = vmul.f32 %v1520_v11, %v1520_v11  ;;  %v863_v19 = vmul.f32 %v1521_v12, %v1521_v12 }
 0x37c   : > { %v871_v20 = vmul.f32 %v1522_v13, %v1522_v13  ;;  %v879_v21 = vmul.f32 %v1523_v14, %v1523_v14  ;;  %v887_v22 = vmul.f32 %v1524_v15, %v1524_v15  ;;  %v1525_v23 = vadd.f32 0.3, %v1800_v8 }
 0x37d   : > { %v840_v24 = vmul.f32 -50.0, %v839_v16  ;;  %v848_v25 = vmul.f32 -50.0, %v847_v17  ;;  %v856_v26 = vmul.f32 -50.0, %v855_v18  ;;  %v864_v27 = vmul.f32 -50.0, %v863_v19 }
 0x37e   : > { %v872_v28 = vmul.f32 -50.0, %v871_v20  ;;  %v880_v29 = vmul.f32 -50.0, %v879_v21  ;;  %v888_v30 = vmul.f32 -50.0, %v887_v22  ;;  %v895_v31 = vmul.f32 %v1525_v23, %v1525_v23 }
 0x37f   : > { %v841_v32 = vmul.f32 1.442695, %v840_v24  ;;  %v849_v33 = vmul.f32 1.442695, %v848_v25  ;;  %v857_v36 = vmul.f32 1.442695, %v856_v26 }
 0x380   : > { %v865_v37 = vmul.f32 1.442695, %v864_v27  ;;  %v873_v38 = vmul.f32 1.442695, %v872_v28  ;;  %v896_v39 = vmul.f32 -50.0, %v895_v31  ;;  %v1526_v40 = vadd.f32 0.5, %v1800_v8 }
 0x381   : > { %1801 = vpow2.f32 %v841_v32  ;;  %v881_v41 = vmul.f32 1.442695, %v880_v29  ;;  %v1527_v42 = vadd.f32 0.7, %v1800_v8  ;;  %v1528_v43 = vadd.f32 0.9, %v1800_v8 }
 0x382   : > { %1803 = vpow2.f32 %v849_v33  ;;  %v889_v44 = vmul.f32 1.442695, %v888_v30  ;;  %v903_v45 = vmul.f32 %v1526_v40, %v1526_v40  ;;  %v897_v46 = vmul.f32 1.442695, %v896_v39 }
 0x383   : > { %1805 = vpow2.f32 %v857_v36  ;;  %v911_v47 = vmul.f32 %v1527_v42, %v1527_v42  ;;  %v919_v48 = vmul.f32 %v1528_v43, %v1528_v43 }
 0x384   : > { %1807 = vpow2.f32 %v865_v37  ;;  %v904_v49 = vmul.f32 -50.0, %v903_v45 }
 0x385   : > { %1809 = vpow2.f32 %v873_v38  ;;  %v912_v50 = vmul.f32 -50.0, %v911_v47  ;;  %v920_v51 = vmul.f32 -50.0, %v919_v48 }
 0x386   : > { %1811 = vpow2.f32 %v881_v41  ;;  %v905_v52 = vmul.f32 1.442695, %v904_v49 }
 0x387   : > { %1813 = vpow2.f32 %v889_v44  ;;  %v913_v53 = vmul.f32 1.442695, %v912_v50  ;;  %v921_v54 = vmul.f32 1.442695, %v920_v51 }
 0x388   : > { %1815 = vpow2.f32 %v897_v46 }
 0x389   : > { %1817 = vpow2.f32 %v905_v52 }
 0x38a   : > { %1819 = vpow2.f32 %v913_v53 }
 0x38b   : > { %v1802_v55 = vpop.eup %1801  ;;  %1821 = vpow2.f32 %v921_v54 }
 0x38c   : > { %v1804_v56 = vpop.eup %1803  ;;  %v843_v57 = vmul.f32 %v1802_v55, %v2784_v4 }
 0x38d   : > { %v1806_v58 = vpop.eup %1805  ;;  %v851_v59 = vmul.f32 %v1804_v56, %v2784_v4 }
 0x38e   : > { %v1808_v60 = vpop.eup %1807  ;;  %845 = vst.msk [vmem:[#allocation2] sm:$0xff] %vm844_vm13, %v843_v57  ;;  %v859_v61 = vmul.f32 %v1806_v58, %v2784_v4 }
 0x38f   : > { %v1810_v62 = vpop.eup %1809  ;;  %853 = vst.msk [vmem:[#allocation2 + $0x8] sm:$0xff] %vm844_vm13, %v851_v59  ;;  %v867_v63 = vmul.f32 %v1808_v60, %v2784_v4 }
 0x390   : > { %v1812_v0 = vpop.eup %1811  ;;  %861 = vst.msk [vmem:[#allocation2 + $0x10] sm:$0xff] %vm844_vm13, %v859_v61  ;;  %v875_v1 = vmul.f32 %v1810_v62, %v2784_v4 }
 0x391   : > { %v1814_v2 = vpop.eup %1813  ;;  %869 = vst.msk [vmem:[#allocation2 + $0x18] sm:$0xff] %vm844_vm13, %v867_v63  ;;  %v883_v3 = vmul.f32 %v1812_v0, %v2784_v4 }
 0x392   : > { %v1816_v5 = vpop.eup %1815  ;;  %877 = vst.msk [vmem:[#allocation2 + $0x20] sm:$0xff] %vm844_vm13, %v875_v1  ;;  %v891_v6 = vmul.f32 %v1814_v2, %v2784_v4 }
 0x393   : > { %v1818_v7 = vpop.eup %1817  ;;  %885 = vst.msk [vmem:[#allocation2 + $0x28] sm:$0xff] %vm844_vm13, %v883_v3  ;;  %v899_v8 = vmul.f32 %v1816_v5, %v2784_v4 }
 0x394   : > { %v1820_v9 = vpop.eup %1819  ;;  %893 = vst.msk [vmem:[#allocation2 + $0x30] sm:$0xff] %vm844_vm13, %v891_v6  ;;  %v907_v10 = vmul.f32 %v1818_v7, %v2784_v4 }
 0x395   : > { %v1822_v11 = vpop.eup %1821  ;;  %v926_v12 = vld [vmem:[#allocation2] sm:$0xff]  ;;  %901 = vst.msk [vmem:[#allocation2 + $0x38] sm:$0xff] %vm844_vm13, %v899_v8  ;;  %v915_v13 = vmul.f32 %v1820_v9, %v2784_v4 }
 0x396   : > { %1591 = vmatmul.mubr.msk.f32.vlgmr.msra.gmra.mrb[0].mxu1 %vm844_vm13, %v926_v12  ;;  %909 = vst.msk [vmem:[#allocation2 + $0x40] sm:$0xff] %vm844_vm13, %v907_v10  ;;  %v923_v14 = vmul.f32 %v1822_v11, %v2784_v4  ;;  %v927_v15 = vld [vmem:[#allocation2 + $0x8] sm:$0xff] }
 0x397   : > { %1593 = vmatprep.mubr.msk.f32.mxu1 %vm2243_vm2, %v2244_v35  ;;  %917 = vst.msk [vmem:[#allocation2 + $0x48] sm:$0xff] %vm844_vm13, %v915_v13  ;;  %v928_v16 = vld [vmem:[#allocation2 + $0x10] sm:$0xff] }
 0x398   : > { %925 = vst.msk [vmem:[#allocation2 + $0x50] sm:$0xff] %vm844_vm13, %v923_v14  ;;  %v929_v4 = vld [vmem:[#allocation2 + $0x18] sm:$0xff] }
 0x399   : > { %v930_v17 = vld [vmem:[#allocation2 + $0x20] sm:$0xff] }
 0x39a   : > { %1594 = vmatmul.mubr.msk.f32.gmra.mrb[2].mxu1 %vm844_vm13, %v927_v15  ;;  %v931_v18 = vld [vmem:[#allocation2 + $0x28] sm:$0xff] }
 0x39b   : > { %1596 = vmatprep.mubr.msk.f32.mxu1 %vm2243_vm2, %v2244_v35  ;;  %v932_v19 = vld [vmem:[#allocation2 + $0x30] sm:$0xff] }
 0x39c   : > { %v933_v20 = vld [vmem:[#allocation2 + $0x38] sm:$0xff] }
 0x39d   : > { %v934_v21 = vld [vmem:[#allocation2 + $0x40] sm:$0xff] }
 0x39e   : > { %1597 = vmatmul.mubr.msk.f32.gmra.mrb[4].mxu1 %vm844_vm13, %v928_v16  ;;  %v935_v22 = vld [vmem:[#allocation2 + $0x48] sm:$0xff] }
 0x39f   : > { %1599 = vmatprep.mubr.msk.f32.mxu1 %vm2243_vm2, %v2244_v35  ;;  %v936_v23 = vld [vmem:[#allocation2 + $0x50] sm:$0xff] }
 0x3a2   : > { %1600 = vmatmul.mubr.msk.f32.gmra.mrb[6].mxu1 %vm844_vm13, %v929_v4 }
 0x3a3   : > { %1602 = vmatprep.mubr.msk.f32.mxu1 %vm2243_vm2, %v2244_v35 }
 0x3a6   : > { %1603 = vmatmul.mubr.msk.f32.gmra.mrb[8].mxu1 %vm844_vm13, %v930_v17 }
 0x3a7   : > { %1605 = vmatprep.mubr.msk.f32.mxu1 %vm2243_vm2, %v2244_v35 }
 0x3aa   : > { %1606 = vmatmul.mubr.msk.f32.gmra.mrb[10].mxu1 %vm844_vm13, %v931_v18 }
 0x3ab   : > { %1608 = vmatprep.mubr.msk.f32.mxu1 %vm2243_vm2, %v2244_v35 }
 0x3ae   : > { %1609 = vmatmul.mubr.msk.f32.gmra.mrb[12].mxu1 %vm844_vm13, %v932_v19 }
 0x3af   : > { %1611 = vmatprep.mubr.msk.f32.mxu1 %vm2243_vm2, %v2244_v35 }
 0x3b2   : > { %1612 = vmatmul.mubr.msk.f32.gmra.mrb[14].mxu1 %vm844_vm13, %v933_v20 }
 0x3b3   : > { %1614 = vmatprep.mubr.msk.f32.mxu1 %vm2243_vm2, %v2244_v35 }
 0x3b6   : > { %1615 = vmatmul.mubr.msk.f32.gmra.mrb[16].mxu1 %vm844_vm13, %v934_v21 }
 0x3b7   : > { %1617 = vmatprep.mubr.msk.f32.mxu1 %vm2243_vm2, %v2244_v35 }
 0x3ba   : > { %1618 = vmatmul.mubr.msk.f32.gmra.mrb[18].mxu1 %vm844_vm13, %v935_v22 }
 0x3bb   : > { %1620 = vmatprep.mubr.msk.f32.mxu1 %vm2243_vm2, %v2244_v35 }
 0x3be   : > { %1621 = vmatmul.mubr.msk.f32.gmra.mrb[20].mxu1 %vm844_vm13, %v936_v23 }
 0x469   : > { %v1042_v24 = vpop.f32.mrb[0].mxu1 }
 0x46a   : > { %v1592_v25 = vpop.f32.mrb[1].mxu1  ;;  %v1109_v40 = vmax.f32 %v1042_v24, 1e-10 }
 0x46c   : > { %1823 = vlog2.f32 %v1109_v40 }
 0x46d   : > { %v1047_v26 = vpop.f32.mrb[2].mxu1 }
 0x46e   : > { %v1096_v27 = vadd.f32 %v1047_v26, %v1042_v24  ;;  %v1595_v28 = vpop.f32.mrb[3].mxu1  ;;  %v1110_v42 = vmax.f32 %v1047_v26, 1e-10 }
 0x470   : > { %1825 = vlog2.f32 %v1110_v42 }
 0x471   : > { %v1052_v29 = vpop.f32.mrb[4].mxu1 }
 0x472   : > { %v1097_v30 = vadd.f32 %v1096_v27, %v1052_v29  ;;  %v1598_v31 = vpop.f32.mrb[5].mxu1  ;;  %v1111_v45 = vmax.f32 %v1052_v29, 1e-10 }
 0x474   : > { %1827 = vlog2.f32 %v1111_v45 }
 0x475   : > { %v1057_v32 = vpop.f32.mrb[6].mxu1 }
 0x476   : > { %v1098_v33 = vadd.f32 %v1097_v30, %v1057_v32  ;;  %v1601_v36 = vpop.f32.mrb[7].mxu1  ;;  %v1112_v46 = vmax.f32 %v1057_v32, 1e-10  ;;  %v1824_v61 = vpop.eup %1823 }
 0x477   : > { %v1121_v11 = vmul.f32 0.6931472, %v1824_v61 }
 0x478   : > { %1829 = vlog2.f32 %v1112_v46  ;;  %v1153_v46 = vld [vmem:[#allocation18] sm:$0x7] }
 0x479   : > { %v1062_v37 = vpop.f32.mrb[8].mxu1 }
 0x47a   : > { %v1099_v38 = vadd.f32 %v1098_v33, %v1062_v37  ;;  %v1604_v39 = vpop.f32.mrb[9].mxu1  ;;  %v1113_v47 = vmax.f32 %v1062_v37, 1e-10  ;;  %v1826_v62 = vpop.eup %1825 }
 0x47b   : > { %v1123_v15 = vmul.f32 0.6931472, %v1826_v62 }
 0x47c   : > { %1831 = vlog2.f32 %v1113_v47  ;;  %v1232_v47 = vpop.permute.xlu1 %1231 }
 0x47d   : > { %v1067_v41 = vpop.f32.mrb[10].mxu1 }
 0x47e   : > { %v1100_v43 = vadd.f32 %v1099_v38, %v1067_v41  ;;  %v1607_v44 = vpop.f32.mrb[11].mxu1  ;;  %v1114_v49 = vmax.f32 %v1067_v41, 1e-10  ;;  %v1828_v63 = vpop.eup %1827 }
 0x47f   : > { %v1125_v16 = vmul.f32 0.6931472, %v1828_v63 }
 0x480   : > { %1833 = vlog2.f32 %v1114_v49 }
 0x481   : > { %v1072_v48 = vpop.f32.mrb[12].mxu1 }
 0x482   : > { %v1101_v50 = vadd.f32 %v1100_v43, %v1072_v48  ;;  %v1610_v51 = vpop.f32.mrb[13].mxu1  ;;  %v1115_v52 = vmax.f32 %v1072_v48, 1e-10  ;;  %v1830_v1 = vpop.eup %1829 }
 0x483   : > { %v1127_v4 = vmul.f32 0.6931472, %v1830_v1 }
 0x484   : > { %1835 = vlog2.f32 %v1115_v52 }
 0x485   : > { %v1077_v53 = vpop.f32.mrb[14].mxu1 }
 0x486   : > { %v1102_v54 = vadd.f32 %v1101_v50, %v1077_v53  ;;  %v1116_v55 = vmax.f32 %v1077_v53, 1e-10  ;;  %v1613_v56 = vpop.f32.mrb[15].mxu1  ;;  %v1832_v6 = vpop.eup %1831 }
 0x487   : > { %v1129_v17 = vmul.f32 0.6931472, %v1832_v6 }
 0x488   : > { %1837 = vlog2.f32 %v1116_v55 }
 0x489   : > { %v1082_v57 = vpop.f32.mrb[16].mxu1 }
 0x48a   : > { %v1103_v58 = vadd.f32 %v1102_v54, %v1082_v57  ;;  %v1117_v59 = vmax.f32 %v1082_v57, 1e-10  ;;  %v1616_v60 = vpop.f32.mrb[17].mxu1  ;;  %v1834_v7 = vpop.eup %1833 }
 0x48b   : > { %v1131_v19 = vmul.f32 0.6931472, %v1834_v7 }
 0x48c   : > { %1839 = vlog2.f32 %v1117_v59 }
 0x48d   : > { %v1087_v0 = vpop.f32.mrb[18].mxu1 }
 0x48e   : > { %v1104_v2 = vadd.f32 %v1103_v58, %v1087_v0  ;;  %v1118_v3 = vmax.f32 %v1087_v0, 1e-10  ;;  %v1619_v5 = vpop.f32.mrb[19].mxu1  ;;  %v1836_v8 = vpop.eup %1835 }
 0x48f   : > { %v1133_v20 = vmul.f32 0.6931472, %v1836_v8 }
 0x490   : > { %1841 = vlog2.f32 %v1118_v3 }
 0x491   : > { %v1092_v9 = vpop.f32.mrb[20].mxu1 }
 0x492   : > { %v1838_v10 = vpop.eup %1837  ;;  %v1105_v12 = vadd.f32 %v1104_v2, %v1092_v9  ;;  %v1119_v13 = vmax.f32 %v1092_v9, 1e-10  ;;  %v1622_v14 = vpop.f32.mrb[21].mxu1 }
 0x493   : > { %v1135_v18 = vmul.f32 0.6931472, %v1838_v10 }
 0x494   : > { %vm1106_vm14 = vcmp.ne.f32.partialorder %v1105_v12, 0.0  ;;  %1843 = vlog2.f32 %v1119_v13 }
 0x495   : > { %v1541_v21 = vsel %vm1106_vm14, 1.0, %v2244_v35 }
 0x496   : > { %v1840_v22 = vpop.eup %1839  ;;  %v1142_v23 = vmul.f32 %v1541_v21, %v1121_v11  ;;  %v1143_v24 = vmul.f32 %v1541_v21, %v1123_v15  ;;  %v1144_v25 = vmul.f32 %v1541_v21, %v1125_v16  ;;  %v1145_v26 = vmul.f32 %v1541_v21, %v1127_v4 }
 0x497   : > { %v1137_v27 = vmul.f32 0.6931472, %v1840_v22  ;;  %v1146_v28 = vmul.f32 %v1541_v21, %v1129_v17  ;;  %v1147_v29 = vmul.f32 %v1541_v21, %v1131_v19  ;;  %v1148_v30 = vmul.f32 %v1541_v21, %v1133_v20 }
 0x498   : > { %v1657_v31 = vpack.c.bf16 %v1143_v24, %v1142_v23  ;;  %v1660_v32 = vpack.c.bf16 %v1145_v26, %v1144_v25  ;;  %v1149_v33 = vmul.f32 %v1541_v21, %v1135_v18 }
 0x499   : > { %v1663_v36 = vpack.c.bf16 %v1147_v29, %v1146_v28  ;;  %v1150_v37 = vmul.f32 %v1541_v21, %v1137_v27 }
 0x49a   : > { %v1842_v38 = vpop.eup %1841  ;;  %1658 = vmatpush3.bf16.msra.mxu0 %v1657_v31  ;;  %v1666_v39 = vpack.c.bf16 %v1149_v33, %v1148_v30 }
 0x49b   : > { %v1139_v40 = vmul.f32 0.6931472, %v1842_v38  ;;  %1659 = vmatprep.subr.bf16.mxu0 %v2242_v34 }
 0x49d   : > { %v1151_v41 = vmul.f32 %v1541_v21, %v1139_v40 }
 0x49e   : > { %v1844_v42 = vpop.eup %1843  ;;  %1661 = vmatpush3.bf16.msra.mxu0 %v1660_v32 }
 0x49f   : > { %v1141_v43 = vmul.f32 0.6931472, %v1844_v42  ;;  %1662 = vmatprep.subr.bf16.mxu0 %v2242_v34  ;;  %v1669_v44 = vpack.c.bf16 %v1151_v41, %v1150_v37 }
 0x4a1   : > { %v1152_v45 = vmul.f32 %v1541_v21, %v1141_v43 }
 0x4a2   : > { %1664 = vmatpush3.bf16.msra.mxu0 %v1663_v36 }
 0x4a3   : > { %1665 = vmatprep.subr.bf16.mxu0 %v2242_v34 }
 0x4a6   : > { %1667 = vmatpush3.bf16.msra.mxu0 %v1666_v39 }
 0x4a7   : > { %1668 = vmatprep.subr.bf16.mxu0 %v2242_v34 }
 0x4aa   : > { %1670 = vmatpush3.bf16.msra.mxu0 %v1669_v44 }
 0x4ab   : > { %1643 = vmatprep.subr.mxu0 %v2244_v35 }
 0x4ae   : > { %1644 = vmatpush3.msra.mxu0 %v1152_v45 }
 0x4af   : > { %1646 = vmatmul.mubr.msk.f32.vlgmr.msra.gmra.mrb[2].mxu0 %vm1154_vm15, %v1153_v46 }
 0x582   : > { %v1224_v48 = vpop.f32.mrb[2].mxu0 }
 0x583   : > { %v1234_v49 = vmul.f32 %v1232_v47, %v1224_v48  ;;  %v1647_v50 = vpop.f32.mrb[3].mxu0  ;;  %vm1237_vm0 = vcmp.ne.f32.partialorder %v1224_v48, 0.0 }
 0x584   : > { %v1543_v52 = vsel %vm1237_vm0, 1.0, %v2244_v35 }
 0x585   : > { %v1235_v51 = vmul.f32 1.442695, %v1234_v49 }
 0x587   : > { %1845 = vpow2.f32 %v1235_v51 }
 0x591   : > { %v1846_v34 = vpop.eup %1845 }
 0x592   : > { %v1240_v53 = vmul.f32 %v1846_v34, %v1543_v52 }
 0x594   : > { %1241 = vst [vmem:[%s661_s6] sm:$0x7] %v1240_v53 }
 0x595   : > { %2154 = shalt.err (!%p2151_p10)
}
 0x596   : > { %s2155_s15 = scalar_lea.hbm %s2852_s20, 64  ;;  %s2159_s23 = scalar_lea.hbm %s2996_s18, 128 }
 0x597   : > { %p2156_p0 = scmp.ne.s32.totalorder %s2852_s20, %s2155_s15  ;;  %p2160_p4 = scmp.lt.u32.totalorder %s2852_s20, %s2996_s18 }
 0x598   : > { %p2161_p9 = scmp.lt.u32.totalorder %s2159_s23, %s2155_s15  ;;  %p2163_p7 = scmp.lt.u32.totalorder %s2155_s15, %s2852_s20 }
 0x599   : > { %p2157_p1 = pnand %p2156_p0, %p2997_p8 }
 0x59a   : > { %p2162_p13 = por %p2161_p9, %p2160_p4 }
 0x59b   : > { %p2158_p12 = pneg %p2157_p1 }
 0x59c   : > { %p2164_p11 = por %p2163_p7, %p2162_p13 }
 0x59e   : > { %p2165_p5 = pnand %p2164_p11, %p2158_p12 }
 0x5a0   : > { %2168 = shalt.err (!%p2165_p5)
}
 0x5a1   : > { %1697 = dma.vmem_to_hbm [thread:$0]  (%p2997_p8), %s2854_s26, 64, %s2852_s20, %s1243_s24  }
 0x5a2 PF: > { %s2998_s8 = sld [smem:[#allocation29_spill]]  ;;  %s2999_s13 = sld [smem:[#allocation35_spill]] }
 0x5a3   : > { %s3000_s17 = sld [smem:[#allocation32_spill]] }
 0x5a8   : > { %s1268_s2 = sand.u32 1, %s2998_s8   ;;  %p3001_p6 = scmp.ne.s32.totalorder %s2999_s13, 0 }
 0x5a9   : > { %p3002_p2 = scmp.ge.s32.totalorder %s3000_s17, 2  ;;  %s1269_s27 = scalar_lea.sflag [#allocation6], %s1268_s2 }
 0x5ab   : > { %p1732_p3 = pnand %p3002_p2, %p3001_p6 }
 0x5ad   : > { %2210 = dma.done.wait (!%p1732_p3), %s1269_s27, 64  }
 0x5ae   : > { %2212 = vsyncadd (!%p1732_p3), %s1269_s27, 4294967232  ;;  %s3003_s22 = sld [smem:[#allocation37_spill]]  ;;  %s3004_s19 = sld [smem:[#allocation30_spill]] }
 0x5af   : > { %s3005_s20 = sld [smem:[#allocation31_spill]]  ;;  %s3006_s21 = sld [smem:[#allocation38_spill]] }
 0x5b4   : > { %p36_p10 = scmp.ge.s32.totalorder %s3003_s22, 4  }
 0x5b6   :  { %38 = sbr.rel (!%p36_p10) target bundleno = 21 (0x15), region = 203 }
 0x5bd   :  { %1274 = vsyncpa [#allocation5], 1 }
 0x5be   :  { %1276 = vsyncpa [#allocation5 + $0x1], 1 }
 0x5bf   :  { %1277 = vsyncpa [#allocation8], 1 }
 0x5c0   :  { %1279 = vsyncpa [#allocation8 + $0x1], 1 }
 0x5c1   :  { %1280 = vsyncpa [#allocation11], 1 }
 0x5c2   :  { %1282 = vsyncpa [#allocation11 + $0x1], 1 }
 0x5c3   :  { %1283 = vsyncpa [#allocation14], 1 }
 0x5c4   :  { %1285 = vsyncpa [#allocation14 + $0x1], 1 }
 0x5c5   :  { %1286 = vsyncpa [#allocation17], 1 }
 0x5c6   :  { %1287 = vsyncpa [#allocation20], 1 }
 0x5c7   :  { %1288 = vsyncpa [#allocation6], 1 }
 0x5c8   :  { %1290 = vsyncpa [#allocation6 + $0x1], 1 }

// kernel: tpu_custom_call.1
= control target key start
LH: loop header
LB: loop body
LE: loop exit
PB: predicated region body
PF: predicated region fallthrough
CT: control target
= control target key end

     0   :  { %s2896_s0 = inlined_call_operand.<no memory space> [shape: f32[1], index: 0, kind: input, shape index: {}]   ;;  %s2897_s1 = inlined_call_operand.hbm [shape: f32[2,8,32], index: 1, kind: input, shape index: {}]   ;;  %s2898_s2 = inlined_call_operand.hbm [shape: f32[2,8,32], index: 2, kind: input, shape index: {}]   ;;  %s2899_s3 = inlined_call_operand.hbm [shape: f32[2,12,32], index: 3, kind: input, shape index: {}]   ;;  %s2900_s4 = inlined_call_operand.hbm [shape: f32[2,12,32], index: 4, kind: input, shape index: {}]   ;;  %s2901_s5 = inlined_call_operand.hbm [shape: f32[2,8,1], index: 5, kind: input, shape index: {}]   ;;  %s2902_s6 = inlined_call_operand.hbm [shape: f32[2,12,1], index: 6, kind: input, shape index: {}]   ;;  %s2903_s7 = inlined_call_operand.hbm [shape: f32[2,1,12], index: 7, kind: input, shape index: {}]   ;;  %s2904_s8 = inlined_call_operand.hbm [shape: f32[12,128], index: 8, kind: input, shape index: {}]   ;;  %s2905_s9 = inlined_call_operand.hbm [shape: f32[3,88], index: 9, kind: input, shape index: {}]   ;;  %s2906_s10 = inlined_call_operand.hbm [shape: f32[3,1], index: 10, kind: input, shape index: {}]   ;;  %s2907_s11 = inlined_call_operand.hbm [shape: f32[2,3,128], index: 11, kind: output, shape index: {}]  }
   0x1   :  { %2942 = sst [smem:[#allocation40_spill]] %s2898_s2 }
   0x2   :  { %2943 = sst [smem:[#allocation41_spill]] %s2900_s4 }
   0x3   :  { %2944 = sst [smem:[#allocation42_spill]] %s2902_s6 }
   0x4   :  { %2945 = sst [smem:[#allocation43_spill]] %s2903_s7 }
   0x5   :  { %2946 = sst [smem:[#allocation44_spill]] %s2904_s8 }
   0x6   :  { %2947 = sst [smem:[#allocation45_spill]] %s2907_s11 }
   0x7   :  { %16 = sst [smem:[#allocation3]] %s2896_s0 }
   0x8   :  { %17 = vsyncpa [#allocation5], 0 }
   0x9   :  { %19 = vsyncpa [#allocation5 + $0x1], 0 }
   0xa   :  { %20 = vsyncpa [#allocation8], 0 }
   0xb   :  { %22 = vsyncpa [#allocation8 + $0x1], 0 }
   0xc   :  { %23 = vsyncpa [#allocation11], 0 }
   0xd   :  { %25 = vsyncpa [#allocation11 + $0x1], 0 }
   0xe   :  { %26 = vsyncpa [#allocation14], 0 }
   0xf   :  { %28 = vsyncpa [#allocation14 + $0x1], 0 }
  0x10   :  { %29 = vsyncpa [#allocation17], 0 }
  0x11   :  { %30 = vsyncpa [#allocation20], 0 }
  0x12   :  { %31 = vsyncpa [#allocation6], 0 }
  0x13   :  { %33 = vsyncpa [#allocation6 + $0x1], 0  ;;  %s2310_s19 = smov 0   ;;  %s2312_s20 = smov 0  }
  0x14   :  { %s2314_s21 = smov 0   ;;  %s2316_s22 = smov 0  }
  0x15 LB: > { %2948 = sst [smem:[#allocation29_spill]] %s2215_s19  ;;  %s2331_s0 = sadd.s32 4294967295, %s2227_s22   ;;  %s2227_s22 = sphi %s2316_s22, %s3003_s22   ;;  %s2223_s21 = sphi %s2314_s21, %s3006_s21   ;;  %s2219_s20 = sphi %s2312_s20, %s3005_s20   ;;  %s2215_s19 = sphi %s2310_s19, %s3004_s19  }
  0x16   : > { %2949 = sst [smem:[#allocation30_spill]] %s2219_s20  ;;  %s1481_s23 = sadd.s32 4294967294, %s2227_s22  }
  0x17   : > { %2950 = sst [smem:[#allocation31_spill]] %s2223_s21  ;;  %p80_p0 = scmp.ne.s32.totalorder %s2219_s20, %s2215_s19 }
  0x18   : > { %2951 = sst [smem:[#allocation32_spill]] %s2227_s22  ;;  %p2909_p1 = scmp.eq.s32.totalorder %s2331_s0, 0 }
  0x19   : > { %2952 = sst [smem:[#allocation33_spill]] %s2331_s0  ;;  %p329_p3 = scmp.eq.s32.totalorder %s1481_s23, 1 }
  0x1a   : > { %p2340_p4 = por %p2909_p1, %p80_p0  ;;  %p1482_p5 = scmp.ge.s32.totalorder %s2227_s22, 1 }
  0x1b   : > { %p2345_p6 = por %p329_p3, %p80_p0  ;;  %p336_p7 = scmp.lt.s32.totalorder %s2227_s22, 3 }
  0x1c   : > { %s2953_s24 = scalar_select %p2340_p4, 1, 0 }
  0x1d   : > { %s2955_s25 = scalar_select %p2345_p6, 1, 0 }
  0x1e   : > { %2954 = sst [smem:[#allocation34_spill]] %s2953_s24  ;;  %p2350_p8 = pnand %p1482_p5, %p336_p7 }
  0x1f   : > { %2956 = sst [smem:[#allocation35_spill]] %s2955_s25  ;;  %s2229_s27 = smov [#allocation16]  }
  0x20   : > { %s2957_s26 = scalar_select %p2350_p8, 1, 0 }
  0x21   : > { %s351_s28 = sshll.u32 %s2229_s27, 4  ;;  %p1699_p9 = pneg %p2350_p8  ;;  %s2354_s28 = int_to_ptr.vmem [resolvable:$true] %s351_s28 }
  0x22   : > { %2958 = sst [smem:[#allocation36_spill]] %s2957_s26  ;;  %s2366_s30 = sadd.s32 1, %s2227_s22  }
  0x23   : > { %p2361_p11 = pnand %p1699_p9, %p2909_p1  ;;  %2960 = sst [smem:[#allocation37_spill]] %s2366_s30 }
  0x24   : > { %s67_s12 = sadd.s32 1, %s2223_s21  ;;  %s64_s13 = ssub.s32 %s2227_s22, %s2366_s30 }
  0x25   : > { %s2959_s29 = scalar_select %p2361_p11, 1, 0 }
  0x26   : > { %s2961_s8 = sld [smem:[#allocation44_spill]]  ;;  %p2379_p13 = pneg %p2361_p11 }
  0x28   : > { %s2962_s23 = scalar_select %p2379_p13, 1, 0 }
  0x2c   : > { %s1847_s16 = scalar_lea.hbm %s2961_s8, 256 }
  0x2d   : > { %p1848_p12 = scmp.ne.s32.totalorder %s2961_s8, %s1847_s16  ;;  %p1854_p5 = scmp.lt.u32.totalorder %s1847_s16, %s2961_s8 }
  0x2f   : > { %p1850_p0 = pnand %p2379_p13, %p1848_p12 }
  0x31   : > { %p1851_p3 = pneg %p1850_p0 }
  0x33   : > { %p1856_p7 = pnand %p1854_p5, %p1851_p3 }
  0x35   : > { %1859 = shalt.err (!%p1856_p7)
}
  0x36   : > { %s1860_s14 = scalar_lea.vmem %s2354_s28, 256  ;;  %p1868_p2 = scmp.lt.s32.totalorder %s2354_s28, %s2354_s28 }
  0x37   : > { %p1861_p9 = scmp.ne.s32.totalorder %s2354_s28, %s1860_s14  ;;  %p1869_p6 = scmp.lt.s32.totalorder %s1860_s14, %s1860_s14 }
  0x39   : > { %p1863_p10 = pnand %p1861_p9, %p2379_p13  ;;  %p1870_p12 = por %p1869_p6, %p1868_p2 }
  0x3b   : > { %p1864_p1 = pneg %p1863_p10 }
  0x3d   : > { %p1871_p0 = pnand %p1870_p12, %p1864_p1 }
  0x3f   : > { %1874 = shalt.err (!%p1871_p0)
}
  0x40   : > { %s2912_s15 = smov 128   ;;  %s2914_s25 = smov 8  }
  0x41   : > { %1702 = dma.hbm_to_vmem [thread:$0]  (!%p2361_p11), %s2961_s8, 256, %s2354_s28, [#allocation17], %s2912_s15, %s2912_s15, %s2914_s25  }
  0x42   : > { %p65_p1 = scmp.eq.s32.totalorder %s64_s13, 0  ;;  %p74_p2 = scmp.ne.s32.totalorder %s2223_s21, %s2219_s20 }
  0x43   : > { %p75_p6 = scmp.eq.s32.totalorder %s2227_s22, 0  ;;  %p1738_p10 = scmp.lt.s32.totalorder %s2227_s22, 2 }
  0x44   : > { %s2408_s18 = scalar_select %p65_p1, %s2223_s21, %s67_s12  }
  0x45   : > { %p76_p3 = por %p75_p6, %p74_p2  ;;  %p2964_p5 = scmp.eq.s32.totalorder %s2331_s0, 1 }
  0x46   : > { %2963 = sst [smem:[#allocation38_spill]] %s2408_s18  ;;  %s2417_s14 = sand.u32 1, %s2223_s21  }
  0x47   : > { %p2412_p7 = por %p2964_p5, %p74_p2  ;;  %s2420_s30 = sshll.u32 %s2227_s22, 7 }
  0x48   : > { %s2423_s16 = sshll.u32 %s2417_s14, 3  ;;  %p2425_p9 = pnand %p1738_p10, %p76_p3 }
  0x49   : > { %s2965_s27 = scalar_select %p2412_p7, 1, 0 }
  0x4a   : > { %s2967_s28 = scalar_select %p2425_p9, 1, 0 }
  0x4b   : > { %2966 = sst [smem:[#allocation39_spill]] %s2965_s27  ;;  %s2430_s12 = sand.u32 1, %s2227_s22  }
  0x4c   : > { %s2968_s2 = sld [smem:[#allocation40_spill]]  ;;  %s409_s25 = scalar_lea.vmem [#allocation7], %s2423_s16 }
  0x4d   : > { %s416_s8 = sshll.u32 %s409_s25, 4  ;;  %p2446_p0 = pneg %p2425_p9  ;;  %s2439_s8 = int_to_ptr.vmem [resolvable:$true] %s416_s8 }
  0x4f   : > { %s2969_s19 = scalar_select %p2446_p0, 1, 0 }
  0x52   : > { %s2436_s15 = scalar_lea.hbm %s2968_s2, %s2420_s30  ;;  %s1880_s11 = scalar_lea.hbm %s2968_s2, 256 }
  0x53   : > { %s1875_s21 = scalar_lea.hbm %s2436_s15, 128  ;;  %p1881_p6 = scmp.lt.u32.totalorder %s2436_s15, %s2968_s2 }
  0x54   : > { %p1876_p12 = scmp.ne.s32.totalorder %s2436_s15, %s1875_s21  ;;  %p1882_p10 = scmp.lt.u32.totalorder %s1880_s11, %s1875_s21 }
  0x55   : > { %p1884_p5 = scmp.lt.u32.totalorder %s1875_s21, %s2436_s15 }
  0x56   : > { %p1878_p1 = pnand %p2446_p0, %p1876_p12  ;;  %p1883_p3 = por %p1882_p10, %p1881_p6 }
  0x58   : > { %p1879_p2 = pneg %p1878_p1  ;;  %p1885_p7 = por %p1884_p5, %p1883_p3 }
  0x5a   : > { %p1886_p4 = pnand %p1885_p7, %p1879_p2 }
  0x5c   : > { %1889 = shalt.err (!%p1886_p4)
}
  0x5d   : > { %s1890_s18 = scalar_lea.vmem %s2439_s8, 128  ;;  %s2232_s13 = smov [#allocation7]  }
  0x5e   : > { %p1891_p12 = scmp.ne.s32.totalorder %s2439_s8, %s1890_s18  ;;  %s1895_s17 = sshll.u32 %s2232_s13, 4  ;;  %s1896_s17 = int_to_ptr.vmem [resolvable:$false] %s1895_s17 }
  0x5f   : > { %s1897_s27 = scalar_lea.vmem %s1896_s17, 256  ;;  %p1898_p11 = scmp.lt.s32.totalorder %s2439_s8, %s1896_s17 }
  0x60   : > { %p1893_p1 = pnand %p1891_p12, %p2446_p0  ;;  %p1899_p13 = scmp.lt.s32.totalorder %s1897_s27, %s1890_s18 }
  0x62   : > { %p1894_p8 = pneg %p1893_p1  ;;  %p1900_p6 = por %p1899_p13, %p1898_p11 }
  0x64   : > { %p1901_p10 = pnand %p1900_p6, %p1894_p8 }
  0x66   : > { %1904 = shalt.err (!%p1901_p10)
}
  0x67   : > { %s2970_s11 = scalar_lea.sflag [#allocation8], %s2430_s12  ;;  %s2472_s21 = sshll.u32 %s2417_s14, 4 }
  0x68   : > { %1715 = dma.hbm_to_vmem [thread:$0]  (!%p2425_p9), %s2436_s15, 128, %s2439_s8, %s2970_s11  }
  0x69   : > { %s2475_s25 = sshll.u32 %s2227_s22, 8  ;;  %s2971_s4 = sld [smem:[#allocation41_spill]] }
  0x6a   : > { %s448_s27 = scalar_lea.vmem [#allocation10], %s2472_s21  ;;  %s2933_s8 = scalar_lea.sflag [#allocation11], %s2430_s12 }
  0x6b   : > { %s455_s2 = sshll.u32 %s448_s27, 4  ;;  %s2484_s2 = int_to_ptr.vmem [resolvable:$true] %s455_s2 }
  0x6f   : > { %s2481_s17 = scalar_lea.hbm %s2971_s4, %s2475_s25  ;;  %s1910_s18 = scalar_lea.hbm %s2971_s4, 512 }
  0x70   : > { %s1905_s15 = scalar_lea.hbm %s2481_s17, 256  ;;  %p1911_p13 = scmp.lt.u32.totalorder %s2481_s17, %s2971_s4 }
  0x71   : > { %p1906_p4 = scmp.ne.s32.totalorder %s2481_s17, %s1905_s15  ;;  %p1912_p7 = scmp.lt.u32.totalorder %s1910_s18, %s1905_s15 }
  0x72   : > { %p1914_p3 = scmp.lt.u32.totalorder %s1905_s15, %s2481_s17 }
  0x73   : > { %p1908_p8 = pnand %p1906_p4, %p2446_p0  ;;  %p1913_p2 = por %p1912_p7, %p1911_p13 }
  0x75   : > { %p1909_p11 = pneg %p1908_p8  ;;  %p1915_p5 = por %p1914_p3, %p1913_p2 }
  0x77   : > { %p1916_p12 = pnand %p1915_p5, %p1909_p11 }
  0x79   : > { %1919 = shalt.err (!%p1916_p12)
}
  0x7a   : > { %s1920_s27 = scalar_lea.vmem %s2484_s2, 256  ;;  %s2233_s0 = smov [#allocation10]  }
  0x7b   : > { %p1921_p1 = scmp.ne.s32.totalorder %s2484_s2, %s1920_s27  ;;  %s1925_s11 = sshll.u32 %s2233_s0, 4  ;;  %s1926_s11 = int_to_ptr.vmem [resolvable:$false] %s1925_s11 }
  0x7c   : > { %s1927_s24 = scalar_lea.vmem %s1926_s11, 512  ;;  %p1928_p4 = scmp.lt.s32.totalorder %s2484_s2, %s1926_s11 }
  0x7d   : > { %p1923_p6 = pnand %p1921_p1, %p2446_p0  ;;  %p1929_p8 = scmp.lt.s32.totalorder %s1927_s24, %s1920_s27 }
  0x7f   : > { %p1924_p10 = pneg %p1923_p6  ;;  %p1930_p13 = por %p1929_p8, %p1928_p4 }
  0x81   : > { %p1931_p7 = pnand %p1930_p13, %p1924_p10 }
  0x83   : > { %1934 = shalt.err (!%p1931_p7)
}
  0x84   : > { %s2972_s15 = smov 8   ;;  %s2973_s18 = smov 128  }
  0x85   : > { %1721 = dma.hbm_to_vmem [thread:$0]  (!%p2425_p9), %s2481_s17, 256, %s2484_s2, %s2933_s8, %s2973_s18, %s2973_s18, %s2972_s15  }
  0x86   : > { %s2974_s6 = sld [smem:[#allocation42_spill]]  ;;  %s487_s11 = scalar_lea.vmem [#allocation13], %s2472_s21 }
  0x87   : > { %s494_s24 = sshll.u32 %s487_s11, 4  ;;  %s484_s4 = scalar_lea.sflag [#allocation14], %s2430_s12  ;;  %s2520_s24 = int_to_ptr.vmem [resolvable:$true] %s494_s24 }
  0x8c   : > { %s2517_s27 = scalar_lea.hbm %s2974_s6, %s2475_s25  ;;  %s1940_s13 = scalar_lea.hbm %s2974_s6, 512 }
  0x8d   : > { %s1935_s20 = scalar_lea.hbm %s2517_s27, 256  ;;  %p1941_p5 = scmp.lt.u32.totalorder %s2517_s27, %s2974_s6 }
  0x8e   : > { %p1936_p11 = scmp.ne.s32.totalorder %s2517_s27, %s1935_s20  ;;  %p1942_p12 = scmp.lt.u32.totalorder %s1940_s13, %s1935_s20 }
  0x8f   : > { %p1944_p6 = scmp.lt.u32.totalorder %s1935_s20, %s2517_s27 }
  0x90   : > { %p1938_p2 = pnand %p1936_p11, %p2446_p0  ;;  %p1943_p1 = por %p1942_p12, %p1941_p5 }
  0x92   : > { %p1939_p3 = pneg %p1938_p2  ;;  %p1945_p10 = por %p1944_p6, %p1943_p1 }
  0x94   : > { %p1946_p4 = pnand %p1945_p10, %p1939_p3 }
  0x96   : > { %1949 = shalt.err (!%p1946_p4)
}
  0x97   : > { %s1950_s11 = scalar_lea.vmem %s2520_s24, 256  ;;  %s2234_s2 = smov [#allocation13]  }
  0x98   : > { %p1951_p8 = scmp.ne.s32.totalorder %s2520_s24, %s1950_s11  ;;  %s1955_s17 = sshll.u32 %s2234_s2, 4  ;;  %s1956_s17 = int_to_ptr.vmem [resolvable:$false] %s1955_s17 }
  0x99   : > { %s1957_s8 = scalar_lea.vmem %s1956_s17, 512  ;;  %p1958_p11 = scmp.lt.s32.totalorder %s2520_s24, %s1956_s17 }
  0x9a   : > { %p1953_p13 = pnand %p1951_p8, %p2446_p0  ;;  %p1959_p2 = scmp.lt.s32.totalorder %s1957_s8, %s1950_s11 }
  0x9c   : > { %p1954_p7 = pneg %p1953_p13  ;;  %p1960_p5 = por %p1959_p2, %p1958_p11 }
  0x9e   : > { %p1961_p12 = pnand %p1960_p5, %p1954_p7 }
  0xa0   : > { %1964 = shalt.err (!%p1961_p12)
}
  0xa1   : > { %1727 = dma.hbm_to_vmem [thread:$0]  (!%p2425_p9), %s2517_s27, 256, %s2520_s24, %s484_s4, %s2973_s18, %s2973_s18, %s2972_s15  }
  0xa2   : > { %s2235_s20 = smov [#allocation18]   ;;  %s2236_s0 = smov [#allocation19]  }
  0xa3   : > { %s365_s13 = sshll.u32 %s2235_s20, 4  ;;  %s376_s2 = sshll.u32 %s2236_s0, 4  ;;  %s366_s13 = int_to_ptr.vmem [resolvable:$true] %s365_s13  ;;  %s377_s2 = int_to_ptr.vmem [resolvable:$true] %s376_s2 }
  0xa4   : > { %s1965_s8 = scalar_lea.hbm %s2905_s9, 64  ;;  %p2975_p1 = scmp.ne.s32.totalorder %s2962_s23, 0 }
  0xa5   : > { %p1966_p3 = scmp.ne.s32.totalorder %s2905_s9, %s1965_s8  ;;  %p1972_p4 = scmp.lt.u32.totalorder %s1965_s8, %s2905_s9 }
  0xa7   : > { %p1968_p6 = pnand %p1966_p3, %p2975_p1 }
  0xa9   : > { %p1969_p10 = pneg %p1968_p6 }
  0xab   : > { %p1974_p8 = pnand %p1972_p4, %p1969_p10 }
  0xad   : > { %1977 = shalt.err (!%p1974_p8)
}
  0xae   : > { %s1978_s27 = scalar_lea.vmem %s366_s13, 64  ;;  %p1986_p2 = scmp.lt.s32.totalorder %s366_s13, %s366_s13 }
  0xaf   : > { %p1979_p13 = scmp.ne.s32.totalorder %s366_s13, %s1978_s27  ;;  %p1987_p5 = scmp.lt.s32.totalorder %s1978_s27, %s1978_s27 }
  0xb1   : > { %p1981_p7 = pnand %p1979_p13, %p2975_p1  ;;  %p1988_p12 = por %p1987_p5, %p1986_p2 }
  0xb3   : > { %p1982_p11 = pneg %p1981_p7 }
  0xb5   : > { %p1989_p9 = pnand %p1988_p12, %p1982_p11 }
  0xb7   : > { %1992 = shalt.err (!%p1989_p9)
}
  0xb8   : > { %p2976_p3 = scmp.ne.s32.totalorder %s2959_s29, 0  ;;  %s1993_s24 = scalar_lea.hbm %s2906_s10, 64 }
  0xb9   : > { %p1994_p6 = scmp.ne.s32.totalorder %s2906_s10, %s1993_s24  ;;  %p2000_p9 = scmp.lt.u32.totalorder %s1993_s24, %s2906_s10 }
  0xba   : > { %1705 = dma.hbm_to_vmem [thread:$0]  (!%p2976_p3), %s2905_s9, 64, %s366_s13, [#allocation17]  }
  0xbb   : > { %p1996_p10 = pnand %p1994_p6, %p2975_p1 }
  0xbd   : > { %p1997_p4 = pneg %p1996_p10 }
  0xbf   : > { %p2002_p8 = pnand %p2000_p9, %p1997_p4 }
  0xc1   : > { %2005 = shalt.err (!%p2002_p8)
}
  0xc2   : > { %s2006_s8 = scalar_lea.vmem %s377_s2, 64  ;;  %p2014_p2 = scmp.lt.s32.totalorder %s377_s2, %s377_s2 }
  0xc3   : > { %p2007_p13 = scmp.ne.s32.totalorder %s377_s2, %s2006_s8  ;;  %p2015_p5 = scmp.lt.s32.totalorder %s2006_s8, %s2006_s8 }
  0xc5   : > { %p2009_p7 = pnand %p2007_p13, %p2975_p1  ;;  %p2016_p12 = por %p2015_p5, %p2014_p2 }
  0xc7   : > { %p2010_p11 = pneg %p2009_p7 }
  0xc9   : > { %p2017_p0 = pnand %p2016_p12, %p2010_p11 }
  0xcb   : > { %2020 = shalt.err (!%p2017_p0)
}
  0xcc   : > { %1708 = dma.hbm_to_vmem [thread:$0]  (!%p2976_p3), %s2906_s10, 64, %s377_s2, [#allocation20]  }
  0xcd   : > { %s2589_s26 = scalar_lea.hbm %s2897_s1, %s2420_s30  ;;  %s391_s7 = scalar_lea.vmem [#allocation4], %s2423_s16 }
  0xce   : > { %s398_s29 = sshll.u32 %s391_s7, 4  ;;  %s2598_s20 = scalar_lea.hbm %s2899_s3, %s2475_s25  ;;  %s2592_s29 = int_to_ptr.vmem [resolvable:$true] %s398_s29 }
  0xcf   : > { %s388_s0 = scalar_lea.sflag [#allocation5], %s2417_s14  ;;  %s2021_s2 = scalar_lea.hbm %s2589_s26, 128 }
  0xd0   : > { %p2022_p0 = scmp.ne.s32.totalorder %s2589_s26, %s2021_s2  ;;  %p2977_p1 = scmp.ne.s32.totalorder %s2969_s19, 0 }
  0xd1   : > { %s2026_s8 = scalar_lea.hbm %s2897_s1, 256  ;;  %p2027_p10 = scmp.lt.u32.totalorder %s2589_s26, %s2897_s1 }
  0xd2   : > { %p2024_p3 = pnand %p2022_p0, %p2977_p1  ;;  %p2028_p4 = scmp.lt.u32.totalorder %s2026_s8, %s2021_s2 }
  0xd3   : > { %p2030_p8 = scmp.lt.u32.totalorder %s2021_s2, %s2589_s26 }
  0xd4   : > { %p2025_p6 = pneg %p2024_p3  ;;  %p2029_p9 = por %p2028_p4, %p2027_p10 }
  0xd6   : > { %p2031_p13 = por %p2030_p8, %p2029_p9 }
  0xd8   : > { %p2032_p7 = pnand %p2031_p13, %p2025_p6 }
  0xda   : > { %2035 = shalt.err (!%p2032_p7)
}
  0xdb   : > { %s2036_s25 = scalar_lea.vmem %s2592_s29, 128  ;;  %s2237_s6 = smov [#allocation4]  }
  0xdc   : > { %p2037_p11 = scmp.ne.s32.totalorder %s2592_s29, %s2036_s25  ;;  %s2041_s23 = sshll.u32 %s2237_s6, 4  ;;  %s2042_s23 = int_to_ptr.vmem [resolvable:$false] %s2041_s23 }
  0xdd   : > { %s2043_s7 = scalar_lea.vmem %s2042_s23, 256  ;;  %p2044_p12 = scmp.lt.s32.totalorder %s2592_s29, %s2042_s23 }
  0xde   : > { %p2039_p2 = pnand %p2037_p11, %p2977_p1  ;;  %p2045_p0 = scmp.lt.s32.totalorder %s2043_s7, %s2036_s25 }
  0xe0   : > { %p2040_p5 = pneg %p2039_p2  ;;  %p2046_p3 = por %p2045_p0, %p2044_p12 }
  0xe2   : > { %p2047_p10 = pnand %p2046_p3, %p2040_p5 }
  0xe4   : > { %2050 = shalt.err (!%p2047_p10)
}
  0xe5   : > { %p2978_p6 = scmp.ne.s32.totalorder %s2967_s28, 0  ;;  %s427_s22 = scalar_lea.vmem [#allocation9], %s2472_s21 }
  0xe6   : > { %s434_s24 = sshll.u32 %s427_s22, 4  ;;  %s2629_s17 = scalar_lea.hbm %s2901_s5, %s2420_s30  ;;  %s2623_s24 = int_to_ptr.vmem [resolvable:$true] %s434_s24 }
  0xe7   : > { %1712 = dma.hbm_to_vmem [thread:$0]  (!%p2978_p6), %s2589_s26, 128, %s2592_s29, %s388_s0  }
  0xe8   : > { %s2051_s8 = scalar_lea.hbm %s2598_s20, 256  ;;  %s2056_s25 = scalar_lea.hbm %s2899_s3, 512 }
  0xe9   : > { %p2052_p4 = scmp.ne.s32.totalorder %s2598_s20, %s2051_s8  ;;  %p2057_p13 = scmp.lt.u32.totalorder %s2598_s20, %s2899_s3 }
  0xea   : > { %p2058_p7 = scmp.lt.u32.totalorder %s2056_s25, %s2051_s8  ;;  %p2060_p2 = scmp.lt.u32.totalorder %s2051_s8, %s2598_s20 }
  0xeb   : > { %p2054_p9 = pnand %p2052_p4, %p2977_p1 }
  0xec   : > { %p2059_p11 = por %p2058_p7, %p2057_p13 }
  0xed   : > { %p2055_p8 = pneg %p2054_p9 }
  0xee   : > { %p2061_p5 = por %p2060_p2, %p2059_p11 }
  0xf0   : > { %p2062_p12 = pnand %p2061_p5, %p2055_p8 }
  0xf2   : > { %2065 = shalt.err (!%p2062_p12)
}
  0xf3   : > { %s2066_s30 = scalar_lea.vmem %s2623_s24, 256  ;;  %s2238_s21 = smov [#allocation9]  }
  0xf4   : > { %p2067_p0 = scmp.ne.s32.totalorder %s2623_s24, %s2066_s30  ;;  %s2071_s29 = sshll.u32 %s2238_s21, 4  ;;  %s2072_s29 = int_to_ptr.vmem [resolvable:$false] %s2071_s29 }
  0xf5   : > { %s2073_s0 = scalar_lea.vmem %s2072_s29, 512  ;;  %p2074_p4 = scmp.lt.s32.totalorder %s2623_s24, %s2072_s29 }
  0xf6   : > { %p2069_p3 = pnand %p2067_p0, %p2977_p1  ;;  %p2075_p9 = scmp.lt.s32.totalorder %s2073_s0, %s2066_s30 }
  0xf8   : > { %p2070_p10 = pneg %p2069_p3  ;;  %p2076_p13 = por %p2075_p9, %p2074_p4 }
  0xfa   : > { %p2077_p7 = pnand %p2076_p13, %p2070_p10 }
  0xfc   : > { %2080 = shalt.err (!%p2077_p7)
}
  0xfd   : > { %s2979_s23 = scalar_lea.sflag [#allocation8], %s2430_s12  ;;  %s2980_s7 = sld [smem:[#allocation32_spill]] }
  0xfe   : > { %1718 = dma.hbm_to_vmem [thread:$0]  (!%p2978_p6), %s2598_s20, 256, %s2623_s24, %s2979_s23, %s2973_s18, %s2973_s18, %s2972_s15  }
  0xff   : > { %s469_s22 = scalar_lea.vmem [#allocation12], %s2423_s16  ;;  %s2081_s8 = scalar_lea.hbm %s2629_s17, 128 }
 0x100   : > { %s476_s2 = sshll.u32 %s469_s22, 4  ;;  %p2082_p8 = scmp.ne.s32.totalorder %s2629_s17, %s2081_s8  ;;  %s477_s2 = int_to_ptr.vmem [resolvable:$true] %s476_s2 }
 0x101   : > { %s2086_s25 = scalar_lea.hbm %s2901_s5, 256  ;;  %p2087_p5 = scmp.lt.u32.totalorder %s2629_s17, %s2901_s5 }
 0x102   : > { %p2084_p11 = pnand %p2082_p8, %p2977_p1  ;;  %p2088_p12 = scmp.lt.u32.totalorder %s2086_s25, %s2081_s8 }
 0x103   : > { %s1502_s11 = sshll.u32 %s2980_s7, 4  ;;  %p2090_p3 = scmp.lt.u32.totalorder %s2081_s8, %s2629_s17 }
 0x104   : > { %p2085_p2 = pneg %p2084_p11  ;;  %p2089_p0 = por %p2088_p12, %p2087_p5 }
 0x106   : > { %p2091_p10 = por %p2090_p3, %p2089_p0 }
 0x108   : > { %p2092_p4 = pnand %p2091_p10, %p2085_p2 }
 0x10a   : > { %2095 = shalt.err (!%p2092_p4)
}
 0x10b   : > { %s2096_s16 = scalar_lea.vmem %s477_s2, 128  ;;  %s2239_s15 = smov [#allocation12]  }
 0x10c   : > { %p2097_p9 = scmp.ne.s32.totalorder %s477_s2, %s2096_s16  ;;  %s2101_s18 = sshll.u32 %s2239_s15, 4  ;;  %s2102_s18 = int_to_ptr.vmem [resolvable:$false] %s2101_s18 }
 0x10d   : > { %s2103_s20 = scalar_lea.vmem %s2102_s18, 256  ;;  %p2104_p8 = scmp.lt.s32.totalorder %s477_s2, %s2102_s18 }
 0x10e   : > { %p2099_p13 = pnand %p2097_p9, %p2977_p1  ;;  %p2105_p11 = scmp.lt.s32.totalorder %s2103_s20, %s2096_s16 }
 0x110   : > { %p2100_p7 = pneg %p2099_p13  ;;  %p2106_p6 = por %p2105_p11, %p2104_p8 }
 0x112   : > { %p2107_p5 = pnand %p2106_p6, %p2100_p7 }
 0x114   : > { %2110 = shalt.err (!%p2107_p5)
}
 0x115   : > { %p2981_p12 = scmp.ne.s32.totalorder %s2967_s28, 0  ;;  %s2982_s24 = scalar_lea.sflag [#allocation11], %s2430_s12 }
 0x116   : > { %s2983_s29 = sld [smem:[#allocation43_spill]]  ;;  %s507_s23 = scalar_lea.vmem [#allocation15], %s2417_s14 }
 0x117   : > { %1724 = dma.hbm_to_vmem [thread:$0]  (!%p2981_p12), %s2629_s17, 128, %s477_s2, %s2982_s24  }
 0x118   : > { %s514_s7 = sshll.u32 %s507_s23, 4  ;;  %s515_s7 = int_to_ptr.vmem [resolvable:$true] %s514_s7 }
 0x11c   : > { %s2681_s0 = scalar_lea.hbm %s2983_s29, %s1502_s11  ;;  %s2116_s17 = scalar_lea.hbm %s2983_s29, 32 }
 0x11d   : > { %s2111_s22 = scalar_lea.hbm %s2681_s0, 16  ;;  %p2117_p3 = scmp.lt.u32.totalorder %s2681_s0, %s2983_s29 }
 0x11e   : > { %p2112_p6 = scmp.ne.s32.totalorder %s2681_s0, %s2111_s22  ;;  %p2118_p10 = scmp.lt.u32.totalorder %s2116_s17, %s2111_s22 }
 0x11f   : > { %p2120_p9 = scmp.lt.u32.totalorder %s2111_s22, %s2681_s0 }
 0x120   : > { %p2114_p2 = pnand %p2112_p6, %p2977_p1  ;;  %p2119_p4 = por %p2118_p10, %p2117_p3 }
 0x122   : > { %p2115_p0 = pneg %p2114_p2  ;;  %p2121_p13 = por %p2120_p9, %p2119_p4 }
 0x124   : > { %p2122_p7 = pnand %p2121_p13, %p2115_p0 }
 0x126   : > { %2125 = shalt.err (!%p2122_p7)
}
 0x127   : > { %s2126_s14 = scalar_lea.vmem %s515_s7, 16  ;;  %s2240_s11 = smov [#allocation15]  }
 0x128   : > { %p2127_p8 = scmp.ne.s32.totalorder %s515_s7, %s2126_s14  ;;  %s2131_s25 = sshll.u32 %s2240_s11, 4  ;;  %s2132_s25 = int_to_ptr.vmem [resolvable:$false] %s2131_s25 }
 0x129   : > { %s2133_s6 = scalar_lea.vmem %s2132_s25, 32  ;;  %p2134_p6 = scmp.lt.s32.totalorder %s515_s7, %s2132_s25 }
 0x12a   : > { %p2129_p11 = pnand %p2127_p8, %p2977_p1  ;;  %p2135_p2 = scmp.lt.s32.totalorder %s2133_s6, %s2126_s14 }
 0x12c   : > { %p2130_p5 = pneg %p2129_p11  ;;  %p2136_p12 = por %p2135_p2, %p2134_p6 }
 0x12e   : > { %p2137_p3 = pnand %p2136_p12, %p2130_p5 }
 0x130   : > { %2140 = shalt.err (!%p2137_p3)
}
 0x131   : > { %p2984_p10 = scmp.ne.s32.totalorder %s2967_s28, 0  ;;  %s2985_s26 = sld [smem:[#allocation36_spill]] }
 0x133   : > { %1730 = dma.hbm_to_vmem [thread:$0]  (!%p2984_p10), %s2681_s0, 16, %s515_s7, %s484_s4  }
 0x137   : > { %p2986_p0 = scmp.ne.s32.totalorder %s2985_s26, 0 }
 0x138   : > { %s2987_s19 = sld [smem:[#allocation30_spill]] (!%p2986_p0)  ;;  %s2988_s16 = sld [smem:[#allocation34_spill]] (!%p2986_p0) }
 0x139   : > { %523 = sbr.rel (%p2986_p0) target bundleno = 1442 (0x5a2), region = 64 }
 0x13e   : > { %s2706_s15 = sand.u32 (!%p2986_p0), 1, %s2987_s19   ;;  %p2989_p1 = scmp.ne.s32.totalorder (!%p2986_p0), %s2988_s16, 0 }
 0x13f   : > { %s2709_s18 = sshll.u32 (!%p2986_p0), %s2706_s15, 3  ;;  %s526_s20 = scalar_lea.sflag (!%p2986_p0), [#allocation5], %s2706_s15 }
 0x140   : > { %s529_s24 = scalar_lea.vmem [#allocation4], %s2709_s18 }
 0x141   : > { %2186 = dma.done.wait (%p2989_p1), %s526_s20, 128  }
 0x142   : > { %2188 = vsyncadd (%p2989_p1), %s526_s20, 4294967168  ;;  %s2990_s4 = sld [smem:[#allocation33_spill]]  ;;  %s538_s30 = scalar_lea.vmem [#allocation7], %s2709_s18 }
 0x148   : > { %s534_s28 = sand.u32 1, %s2990_s4  }
 0x149   : > { %s535_s12 = scalar_lea.sflag [#allocation8], %s534_s28 }
 0x14a   : > { %2190 = dma.done.wait (%p2989_p1), %s535_s12, 384  }
 0x14b   : > { %2192 = vsyncadd (%p2989_p1), %s535_s12, 4294966912  ;;  %s2724_s21 = sshll.u32 %s2706_s15, 4  ;;  %s553_s23 = scalar_lea.sflag [#allocation11], %s534_s28 }
 0x14c   : > { %s547_s0 = scalar_lea.vmem [#allocation9], %s2724_s21  ;;  %s556_s7 = scalar_lea.vmem [#allocation10], %s2724_s21 }
 0x14d   : > { %2194 = dma.done.wait (%p2989_p1), %s553_s23, 384  }
 0x14e   : > { %2196 = vsyncadd (%p2989_p1), %s553_s23, 4294966912  ;;  %s565_s22 = scalar_lea.vmem [#allocation12], %s2709_s18  ;;  %s571_s8 = scalar_lea.sflag [#allocation14], %s534_s28 }
 0x14f   : > { %s574_s13 = scalar_lea.vmem [#allocation13], %s2724_s21 }
 0x150   : > { %2198 = dma.done.wait (%p2989_p1), %s571_s8, 272  }
 0x151   : > { %2200 = vsyncadd (%p2989_p1), %s571_s8, 4294967024  ;;  %s582_s17 = scalar_lea.vmem [#allocation15], %s2706_s15  ;;  %p2991_p12 = scmp.eq.s32.totalorder %s2990_s4, 0 }
 0x153   : > { %2202 = dma.done.wait (%p2991_p12), [#allocation17], 320   ;;  %p2992_p4 = pmov %p2991_p12 }
 0x155   : > { %2204 = vsyncadd (%p2992_p4), [#allocation17], 4294966976  ;;  %p2993_p9 = pmov %p2992_p4 }
 0x156   : > { %p2994_p13 = pmov %p2992_p4 }
 0x157   : > { %2206 = dma.done.wait (%p2993_p9), [#allocation20], 64  }
 0x158   : > { %2208 = vsyncadd (%p2994_p13), [#allocation20], 4294967232  ;;  %v2241_v0 = vmov 0   ;;  %v664_v1 = vld [vmem:[%s574_s13] sm:$0xff]  ;;  %v663_v2 = vld [vmem:[%s565_s22] sm:$0xff]  ;;  %s662_s2 = sld [smem:[#allocation3]] }
 0x159   : > { %1785 = vset.pattern.permute.xlu0 %v2241_v0  ;;  %1786 = vset.pattern.permute.xlu1 %v2241_v0  ;;  %v665_v3 = vld [vmem:[%s574_s13 + $0x8] sm:$0xf]  ;;  %v681_v4 = vld [vmem:[%s547_s0] sm:$0xff]  ;;  %v671_v9 = vld [vmem:[%s538_s30] sm:$0xff]  ;;  %vm704_vm0 = vcmask 261120   ;;  %vm723_vm1 = vcmask 257024  }
 0x15a   : > { %693 = vperm.xlu0 %1785, %v664_v1   ;;  %677 = vperm.xlu1 %1786, %v663_v2   ;;  %v685_v5 = vld [vmem:[%s556_s7] sm:$0xff]  ;;  %v682_v12 = vld [vmem:[%s547_s0 + $0x8] sm:$0xf]  ;;  %v2242_v34 = vmov 0.0|0.0   ;;  %vm2243_vm2 = vmmov 0   ;;  %v2244_v35 = vmov 0.0   ;;  %vm1650_vm9 = vmpackc.low %vm704_vm0, %vm704_vm0 }
 0x15b   : > { %v667_v8 = vld [vmem:[%s529_s24] sm:$0xff]  ;;  %v686_v13 = vld [vmem:[%s556_s7 + $0x8] sm:$0xf]  ;;  %1648 = vmatprep.subr.bf16.mxu0 %v2242_v34  ;;  %1652 = vmatprep.subr.bf16.mxu1 %v2242_v34  ;;  %vm972_vm10 = vcmask 1043456   ;;  %vm2245_vm11 = vmmov 1   ;;  %vm844_vm13 = vcmask 97280  }
 0x15c   : > { %v1228_v33 = vld [vmem:[#allocation19] sm:$0x7]  ;;  %1583 = vmatprep.mubr.msk.f32.mxu0 %vm2243_vm2, %v2244_v35  ;;  %1590 = vmatprep.mubr.msk.f32.mxu1 %vm2243_vm2, %v2244_v35  ;;  %v937_v0 = vld [vmem:[#allocation16] sm:$0xff]  ;;  %v938_v1 = vld [vmem:[#allocation16 + $0x8] sm:$0xf]  ;;  %vm1154_vm15 = vcmask 719872  }
 0x15d   : > { %v1653_v2 = vpack.c.bf16 %v938_v1, %v937_v0  ;;  %vm1654_vm12 = vmpackc.low %vm972_vm10, %vm2245_vm11  ;;  %s2995_s14 = sld [smem:[#allocation39_spill]]  ;;  %s1513_s11 = sshll.u32 %s2706_s15, 2 }
 0x15e   : > { %698 = vperm.xlu0 %1785, %v665_v3   ;;  %s670_s27 = ssub.f32 1.0, %s662_s2  ;;  %v668_v6 = vstv %s662_s2  ;;  %v1517_v3 = vld [vmem:[%s582_s17] ss:$0 sm:$0xff]  ;;  %s1545_s25 = sshll.u32 %s2990_s4, 6 }
 0x15f   : > { %v683_v10 = vmul.f32 %v681_v4, %v668_v6  ;;  %v669_v14 = vmul.f32 %v668_v6, %v667_v8  ;;  %v684_v17 = vmul.f32 %v682_v12, %v668_v6  ;;  %1655 = vmatpush3.bf16.msk.msra.mxu1 %vm1654_vm12, %v1653_v2  ;;  %s661_s6 = scalar_lea.vmem [#allocation21], %s1513_s11  ;;  %s2996_s18 = sld [smem:[#allocation45_spill]] }
 0x160   : > { %v672_v7 = vstv %s670_s27  ;;  %s1256_s26 = sshll.u32 %s661_s6, 4  ;;  %s1243_s24 = scalar_lea.sflag [#allocation6], %s2706_s15  ;;  %s2854_s26 = int_to_ptr.vmem [resolvable:$true] %s1256_s26 }
 0x161   : > { %v687_v11 = vmul.f32 %v685_v5, %v672_v7  ;;  %v673_v15 = vmul.f32 %v672_v7, %v671_v9  ;;  %v688_v18 = vmul.f32 %v686_v13, %v672_v7  ;;  %s2141_s28 = scalar_lea.vmem %s2854_s26, 64  ;;  %s2246_s4 = smov [#allocation21]  }
 0x162   : > { %p2142_p7 = scmp.ne.s32.totalorder %s2854_s26, %s2141_s28  ;;  %s2145_s12 = sshll.u32 %s2246_s4, 4  ;;  %s2146_s12 = int_to_ptr.vmem [resolvable:$false] %s2145_s12 }
 0x163   : > { %v689_v16 = vadd.f32 %v687_v11, %v683_v10  ;;  %v674_v19 = vadd.f32 %v673_v15, %v669_v14  ;;  %v690_v23 = vadd.f32 %v688_v18, %v684_v17  ;;  %p2997_p8 = scmp.ne.s32.totalorder %s2995_s14, 0  ;;  %s2147_s30 = scalar_lea.vmem %s2146_s12, 128 }
 0x164   : > { %p2148_p6 = scmp.lt.s32.totalorder %s2854_s26, %s2146_s12  ;;  %p2149_p2 = scmp.lt.s32.totalorder %s2147_s30, %s2141_s28 }
 0x165   : > { %s2852_s20 = scalar_lea.hbm %s2996_s18, %s1545_s25  ;;  %p2143_p11 = pnand %p2142_p7, %p2997_p8 }
 0x166   : > { %p2150_p3 = por %p2149_p2, %p2148_p6 }
 0x167   : > { %p2144_p5 = pneg %p2143_p11 }
 0x169   : > { %p2151_p10 = pnand %p2150_p3, %p2144_p5 }
 0x1d9   : > { %v694_v20 = vpop.permute.xlu0 %693  ;;  %v2759_v21 = vpop.permute.xlu1 %677 }
 0x1da   : > { %v701_v22 = vmul.f32 %v694_v20, %v689_v16  ;;  %v2762_v25 = vmul.f32 %v2759_v21, %v674_v19  ;;  %v2784_v4 = vmul.f32 %v1517_v3, %v2759_v21 }
 0x1dc   : > { %v718_v24 = vmul.f32 %v701_v22, %v701_v22  ;;  %v703_v30 = vmul.f32 %v2762_v25, %v2762_v25 }
 0x1dd   : > { %v699_v26 = vpop.permute.xlu0 %698 }
 0x1de   : > { %v702_v27 = vmul.f32 %v699_v26, %v690_v23  ;;  %v720_v28 = vsel %vm704_vm0, %v718_v24, 0.0  ;;  %v705_v32 = vsel %vm704_vm0, %v703_v30, 0.0 }
 0x1df   : > { %721 = vadd.xlane.f32.xlu1 %v720_v28 }
 0x1e0   : > { %v719_v29 = vmul.f32 %v702_v27, %v702_v27 }
 0x1e2   : > { %v724_v31 = vsel %vm723_vm1, %v719_v29, 0.0 }
 0x1e3   : > { %725 = vadd.xlane.f32.xlu0 %v724_v31 }
 0x1e7   : > { %706 = vadd.xlane.f32.xlu0 %v705_v32 }
 0x1f0   : > { %1231 = vperm.xlu1 %1786, %v1228_v33  }
 0x26c   : > { %v722_v36 = vpop.xlane.xlu1 %721 }
 0x26d   : > { %1787 = vrsqrt.f32 %v722_v36  ;;  %vm729_vm3 = vcmp.eq.f32.partialorder %v722_v36, inf  ;;  %v732_v41 = vand.u32 2147483648, %v722_v36  ;;  %vm731_vm4 = vcmp.eq.f32.partialorder %v722_v36, 0.0 }
 0x270   : > { %v726_v37 = vpop.xlane.xlu0 %725 }
 0x271   : > { %1789 = vrsqrt.f32 %v726_v37  ;;  %vm736_vm5 = vcmp.eq.f32.partialorder %v726_v37, inf  ;;  %v739_v47 = vand.u32 2147483648, %v726_v37  ;;  %vm738_vm6 = vcmp.eq.f32.partialorder %v726_v37, 0.0 }
 0x274   : > { %v707_v38 = vpop.xlane.xlu0 %706 }
 0x275   : > { %1791 = vrsqrt.f32 %v707_v38  ;;  %vm710_vm7 = vcmp.eq.f32.partialorder %v707_v38, inf  ;;  %v713_v53 = vand.u32 2147483648, %v707_v38  ;;  %vm712_vm8 = vcmp.eq.f32.partialorder %v707_v38, 0.0 }
 0x277   : > { %v1788_v39 = vpop.eup %1787 }
 0x278   : > { %v728_v40 = vmul.f32 %v1788_v39, %v722_v36 }
 0x27a   : > { %v730_v42 = vsel %vm729_vm3, %v722_v36, %v728_v40 }
 0x27b   : > { %v1790_v43 = vpop.eup %1789  ;;  %v733_v44 = vsel %vm731_vm4, %v732_v41, %v730_v42 }
 0x27c   : > { %v741_v45 = vadd.f32 1e-13, %v733_v44  ;;  %v735_v46 = vmul.f32 %v1790_v43, %v726_v37 }
 0x27e   : > { %v737_v48 = vsel %vm736_vm5, %v726_v37, %v735_v46  ;;  %1793 = vrcp.f32 %v741_v45 }
 0x27f   : > { %v1792_v49 = vpop.eup %1791  ;;  %v740_v50 = vsel %vm738_vm6, %v739_v47, %v737_v48 }
 0x280   : > { %v742_v51 = vadd.f32 1e-13, %v740_v50  ;;  %v709_v52 = vmul.f32 %v1792_v49, %v707_v38 }
 0x282   : > { %1795 = vrcp.f32 %v742_v51  ;;  %v711_v54 = vsel %vm710_vm7, %v707_v38, %v709_v52 }
 0x283   : > { %v714_v55 = vsel %vm712_vm8, %v713_v53, %v711_v54 }
 0x284   : > { %v715_v56 = vadd.f32 1e-13, %v714_v55 }
 0x286   : > { %1797 = vrcp.f32 %v715_v56 }
 0x288   : > { %v1794_v57 = vpop.eup %1793 }
 0x289   : > { %v748_v59 = vmul.f32 %v1794_v57, %v701_v22 }
 0x28c   : > { %v1796_v58 = vpop.eup %1795 }
 0x28d   : > { %v749_v60 = vmul.f32 %v1796_v58, %v702_v27 }
 0x28f   : > { %v1649_v61 = vpack.c.bf16 %v749_v60, %v748_v59 }
 0x290   : > { %v1798_v62 = vpop.eup %1797 }
 0x291   : > { %1651 = vmatpush3.bf16.xpose.msk.msra.mxu0 %vm1650_vm9, %v1649_v61  ;;  %v747_v63 = vmul.f32 %v1798_v62, %v2762_v25 }
 0x292   : > { %1656 = vmatprep.subr.bf16.mxu0 %v2242_v34 }
 0x298   : > { %1584 = vmatmul.mubr.msk.f32.vlgmr.msra.gmra.mrb[0].mxu0 %vm704_vm0, %v747_v63 }
 0x299   : > { %1645 = vmatprep.mubr.msk.f32.mxu0 %vm2243_vm2, %v2244_v35 }
 0x36b   : > { %v825_v5 = vpop.f32.mrb[0].mxu0 }
 0x36c   : > { %v836_v6 = vmul.f32 %v2784_v4, %v825_v5  ;;  %v1585_v7 = vpop.f32.mrb[1].mxu0 }
 0x36e   : > { %1799 = vtanh.f32 %v836_v6 }
 0x378   : > { %v1800_v8 = vpop.eup %1799 }
 0x379   : > { %v1518_v9 = vadd.f32 -1.0, %v1800_v8  ;;  %v1519_v10 = vadd.f32 -0.9, %v1800_v8  ;;  %v1520_v11 = vadd.f32 -0.7, %v1800_v8  ;;  %v1521_v12 = vadd.f32 -0.5, %v1800_v8 }
 0x37a   : > { %v1522_v13 = vadd.f32 -0.3, %v1800_v8  ;;  %v1523_v14 = vadd.f32 -0.1, %v1800_v8  ;;  %v1524_v15 = vadd.f32 0.1, %v1800_v8 }
 0x37b   : > { %v839_v16 = vmul.f32 %v1518_v9, %v1518_v9  ;;  %v847_v17 = vmul.f32 %v1519_v10, %v1519_v10  ;;  %v855_v18 = vmul.f32 %v1520_v11, %v1520_v11  ;;  %v863_v19 = vmul.f32 %v1521_v12, %v1521_v12 }
 0x37c   : > { %v871_v20 = vmul.f32 %v1522_v13, %v1522_v13  ;;  %v879_v21 = vmul.f32 %v1523_v14, %v1523_v14  ;;  %v887_v22 = vmul.f32 %v1524_v15, %v1524_v15  ;;  %v1525_v23 = vadd.f32 0.3, %v1800_v8 }
 0x37d   : > { %v840_v24 = vmul.f32 -50.0, %v839_v16  ;;  %v848_v25 = vmul.f32 -50.0, %v847_v17  ;;  %v856_v26 = vmul.f32 -50.0, %v855_v18  ;;  %v864_v27 = vmul.f32 -50.0, %v863_v19 }
 0x37e   : > { %v872_v28 = vmul.f32 -50.0, %v871_v20  ;;  %v880_v29 = vmul.f32 -50.0, %v879_v21  ;;  %v888_v30 = vmul.f32 -50.0, %v887_v22  ;;  %v895_v31 = vmul.f32 %v1525_v23, %v1525_v23 }
 0x37f   : > { %v841_v32 = vmul.f32 1.442695, %v840_v24  ;;  %v849_v33 = vmul.f32 1.442695, %v848_v25  ;;  %v857_v36 = vmul.f32 1.442695, %v856_v26 }
 0x380   : > { %v865_v37 = vmul.f32 1.442695, %v864_v27  ;;  %v873_v38 = vmul.f32 1.442695, %v872_v28  ;;  %v896_v39 = vmul.f32 -50.0, %v895_v31  ;;  %v1526_v40 = vadd.f32 0.5, %v1800_v8 }
 0x381   : > { %1801 = vpow2.f32 %v841_v32  ;;  %v881_v41 = vmul.f32 1.442695, %v880_v29  ;;  %v1527_v42 = vadd.f32 0.7, %v1800_v8  ;;  %v1528_v43 = vadd.f32 0.9, %v1800_v8 }
 0x382   : > { %1803 = vpow2.f32 %v849_v33  ;;  %v889_v44 = vmul.f32 1.442695, %v888_v30  ;;  %v903_v45 = vmul.f32 %v1526_v40, %v1526_v40  ;;  %v897_v46 = vmul.f32 1.442695, %v896_v39 }
 0x383   : > { %1805 = vpow2.f32 %v857_v36  ;;  %v911_v47 = vmul.f32 %v1527_v42, %v1527_v42  ;;  %v919_v48 = vmul.f32 %v1528_v43, %v1528_v43 }
 0x384   : > { %1807 = vpow2.f32 %v865_v37  ;;  %v904_v49 = vmul.f32 -50.0, %v903_v45 }
 0x385   : > { %1809 = vpow2.f32 %v873_v38  ;;  %v912_v50 = vmul.f32 -50.0, %v911_v47  ;;  %v920_v51 = vmul.f32 -50.0, %v919_v48 }
 0x386   : > { %1811 = vpow2.f32 %v881_v41  ;;  %v905_v52 = vmul.f32 1.442695, %v904_v49 }
 0x387   : > { %1813 = vpow2.f32 %v889_v44  ;;  %v913_v53 = vmul.f32 1.442695, %v912_v50  ;;  %v921_v54 = vmul.f32 1.442695, %v920_v51 }
 0x388   : > { %1815 = vpow2.f32 %v897_v46 }
 0x389   : > { %1817 = vpow2.f32 %v905_v52 }
 0x38a   : > { %1819 = vpow2.f32 %v913_v53 }
 0x38b   : > { %v1802_v55 = vpop.eup %1801  ;;  %1821 = vpow2.f32 %v921_v54 }
 0x38c   : > { %v1804_v56 = vpop.eup %1803  ;;  %v843_v57 = vmul.f32 %v1802_v55, %v2784_v4 }
 0x38d   : > { %v1806_v58 = vpop.eup %1805  ;;  %v851_v59 = vmul.f32 %v1804_v56, %v2784_v4 }
 0x38e   : > { %v1808_v60 = vpop.eup %1807  ;;  %845 = vst.msk [vmem:[#allocation2] sm:$0xff] %vm844_vm13, %v843_v57  ;;  %v859_v61 = vmul.f32 %v1806_v58, %v2784_v4 }
 0x38f   : > { %v1810_v62 = vpop.eup %1809  ;;  %853 = vst.msk [vmem:[#allocation2 + $0x8] sm:$0xff] %vm844_vm13, %v851_v59  ;;  %v867_v63 = vmul.f32 %v1808_v60, %v2784_v4 }
 0x390   : > { %v1812_v0 = vpop.eup %1811  ;;  %861 = vst.msk [vmem:[#allocation2 + $0x10] sm:$0xff] %vm844_vm13, %v859_v61  ;;  %v875_v1 = vmul.f32 %v1810_v62, %v2784_v4 }
 0x391   : > { %v1814_v2 = vpop.eup %1813  ;;  %869 = vst.msk [vmem:[#allocation2 + $0x18] sm:$0xff] %vm844_vm13, %v867_v63  ;;  %v883_v3 = vmul.f32 %v1812_v0, %v2784_v4 }
 0x392   : > { %v1816_v5 = vpop.eup %1815  ;;  %877 = vst.msk [vmem:[#allocation2 + $0x20] sm:$0xff] %vm844_vm13, %v875_v1  ;;  %v891_v6 = vmul.f32 %v1814_v2, %v2784_v4 }
 0x393   : > { %v1818_v7 = vpop.eup %1817  ;;  %885 = vst.msk [vmem:[#allocation2 + $0x28] sm:$0xff] %vm844_vm13, %v883_v3  ;;  %v899_v8 = vmul.f32 %v1816_v5, %v2784_v4 }
 0x394   : > { %v1820_v9 = vpop.eup %1819  ;;  %893 = vst.msk [vmem:[#allocation2 + $0x30] sm:$0xff] %vm844_vm13, %v891_v6  ;;  %v907_v10 = vmul.f32 %v1818_v7, %v2784_v4 }
 0x395   : > { %v1822_v11 = vpop.eup %1821  ;;  %v926_v12 = vld [vmem:[#allocation2] sm:$0xff]  ;;  %901 = vst.msk [vmem:[#allocation2 + $0x38] sm:$0xff] %vm844_vm13, %v899_v8  ;;  %v915_v13 = vmul.f32 %v1820_v9, %v2784_v4 }
 0x396   : > { %1591 = vmatmul.mubr.msk.f32.vlgmr.msra.gmra.mrb[0].mxu1 %vm844_vm13, %v926_v12  ;;  %909 = vst.msk [vmem:[#allocation2 + $0x40] sm:$0xff] %vm844_vm13, %v907_v10  ;;  %v923_v14 = vmul.f32 %v1822_v11, %v2784_v4  ;;  %v927_v15 = vld [vmem:[#allocation2 + $0x8] sm:$0xff] }
 0x397   : > { %1593 = vmatprep.mubr.msk.f32.mxu1 %vm2243_vm2, %v2244_v35  ;;  %917 = vst.msk [vmem:[#allocation2 + $0x48] sm:$0xff] %vm844_vm13, %v915_v13  ;;  %v928_v16 = vld [vmem:[#allocation2 + $0x10] sm:$0xff] }
 0x398   : > { %925 = vst.msk [vmem:[#allocation2 + $0x50] sm:$0xff] %vm844_vm13, %v923_v14  ;;  %v929_v4 = vld [vmem:[#allocation2 + $0x18] sm:$0xff] }
 0x399   : > { %v930_v17 = vld [vmem:[#allocation2 + $0x20] sm:$0xff] }
 0x39a   : > { %1594 = vmatmul.mubr.msk.f32.gmra.mrb[2].mxu1 %vm844_vm13, %v927_v15  ;;  %v931_v18 = vld [vmem:[#allocation2 + $0x28] sm:$0xff] }
 0x39b   : > { %1596 = vmatprep.mubr.msk.f32.mxu1 %vm2243_vm2, %v2244_v35  ;;  %v932_v19 = vld [vmem:[#allocation2 + $0x30] sm:$0xff] }
 0x39c   : > { %v933_v20 = vld [vmem:[#allocation2 + $0x38] sm:$0xff] }
 0x39d   : > { %v934_v21 = vld [vmem:[#allocation2 + $0x40] sm:$0xff] }
 0x39e   : > { %1597 = vmatmul.mubr.msk.f32.gmra.mrb[4].mxu1 %vm844_vm13, %v928_v16  ;;  %v935_v22 = vld [vmem:[#allocation2 + $0x48] sm:$0xff] }
 0x39f   : > { %1599 = vmatprep.mubr.msk.f32.mxu1 %vm2243_vm2, %v2244_v35  ;;  %v936_v23 = vld [vmem:[#allocation2 + $0x50] sm:$0xff] }
 0x3a2   : > { %1600 = vmatmul.mubr.msk.f32.gmra.mrb[6].mxu1 %vm844_vm13, %v929_v4 }
 0x3a3   : > { %1602 = vmatprep.mubr.msk.f32.mxu1 %vm2243_vm2, %v2244_v35 }
 0x3a6   : > { %1603 = vmatmul.mubr.msk.f32.gmra.mrb[8].mxu1 %vm844_vm13, %v930_v17 }
 0x3a7   : > { %1605 = vmatprep.mubr.msk.f32.mxu1 %vm2243_vm2, %v2244_v35 }
 0x3aa   : > { %1606 = vmatmul.mubr.msk.f32.gmra.mrb[10].mxu1 %vm844_vm13, %v931_v18 }
 0x3ab   : > { %1608 = vmatprep.mubr.msk.f32.mxu1 %vm2243_vm2, %v2244_v35 }
 0x3ae   : > { %1609 = vmatmul.mubr.msk.f32.gmra.mrb[12].mxu1 %vm844_vm13, %v932_v19 }
 0x3af   : > { %1611 = vmatprep.mubr.msk.f32.mxu1 %vm2243_vm2, %v2244_v35 }
 0x3b2   : > { %1612 = vmatmul.mubr.msk.f32.gmra.mrb[14].mxu1 %vm844_vm13, %v933_v20 }
 0x3b3   : > { %1614 = vmatprep.mubr.msk.f32.mxu1 %vm2243_vm2, %v2244_v35 }
 0x3b6   : > { %1615 = vmatmul.mubr.msk.f32.gmra.mrb[16].mxu1 %vm844_vm13, %v934_v21 }
 0x3b7   : > { %1617 = vmatprep.mubr.msk.f32.mxu1 %vm2243_vm2, %v2244_v35 }
 0x3ba   : > { %1618 = vmatmul.mubr.msk.f32.gmra.mrb[18].mxu1 %vm844_vm13, %v935_v22 }
 0x3bb   : > { %1620 = vmatprep.mubr.msk.f32.mxu1 %vm2243_vm2, %v2244_v35 }
 0x3be   : > { %1621 = vmatmul.mubr.msk.f32.gmra.mrb[20].mxu1 %vm844_vm13, %v936_v23 }
 0x469   : > { %v1042_v24 = vpop.f32.mrb[0].mxu1 }
 0x46a   : > { %v1592_v25 = vpop.f32.mrb[1].mxu1  ;;  %v1109_v40 = vmax.f32 %v1042_v24, 1e-10 }
 0x46c   : > { %1823 = vlog2.f32 %v1109_v40 }
 0x46d   : > { %v1047_v26 = vpop.f32.mrb[2].mxu1 }
 0x46e   : > { %v1096_v27 = vadd.f32 %v1047_v26, %v1042_v24  ;;  %v1595_v28 = vpop.f32.mrb[3].mxu1  ;;  %v1110_v42 = vmax.f32 %v1047_v26, 1e-10 }
 0x470   : > { %1825 = vlog2.f32 %v1110_v42 }
 0x471   : > { %v1052_v29 = vpop.f32.mrb[4].mxu1 }
 0x472   : > { %v1097_v30 = vadd.f32 %v1096_v27, %v1052_v29  ;;  %v1598_v31 = vpop.f32.mrb[5].mxu1  ;;  %v1111_v45 = vmax.f32 %v1052_v29, 1e-10 }
 0x474   : > { %1827 = vlog2.f32 %v1111_v45 }
 0x475   : > { %v1057_v32 = vpop.f32.mrb[6].mxu1 }
 0x476   : > { %v1098_v33 = vadd.f32 %v1097_v30, %v1057_v32  ;;  %v1601_v36 = vpop.f32.mrb[7].mxu1  ;;  %v1112_v46 = vmax.f32 %v1057_v32, 1e-10  ;;  %v1824_v61 = vpop.eup %1823 }
 0x477   : > { %v1121_v11 = vmul.f32 0.6931472, %v1824_v61 }
 0x478   : > { %1829 = vlog2.f32 %v1112_v46  ;;  %v1153_v46 = vld [vmem:[#allocation18] sm:$0x7] }
 0x479   : > { %v1062_v37 = vpop.f32.mrb[8].mxu1 }
 0x47a   : > { %v1099_v38 = vadd.f32 %v1098_v33, %v1062_v37  ;;  %v1604_v39 = vpop.f32.mrb[9].mxu1  ;;  %v1113_v47 = vmax.f32 %v1062_v37, 1e-10  ;;  %v1826_v62 = vpop.eup %1825 }
 0x47b   : > { %v1123_v15 = vmul.f32 0.6931472, %v1826_v62 }
 0x47c   : > { %1831 = vlog2.f32 %v1113_v47  ;;  %v1232_v47 = vpop.permute.xlu1 %1231 }
 0x47d   : > { %v1067_v41 = vpop.f32.mrb[10].mxu1 }
 0x47e   : > { %v1100_v43 = vadd.f32 %v1099_v38, %v1067_v41  ;;  %v1607_v44 = vpop.f32.mrb[11].mxu1  ;;  %v1114_v49 = vmax.f32 %v1067_v41, 1e-10  ;;  %v1828_v63 = vpop.eup %1827 }
 0x47f   : > { %v1125_v16 = vmul.f32 0.6931472, %v1828_v63 }
 0x480   : > { %1833 = vlog2.f32 %v1114_v49 }
 0x481   : > { %v1072_v48 = vpop.f32.mrb[12].mxu1 }
 0x482   : > { %v1101_v50 = vadd.f32 %v1100_v43, %v1072_v48  ;;  %v1610_v51 = vpop.f32.mrb[13].mxu1  ;;  %v1115_v52 = vmax.f32 %v1072_v48, 1e-10  ;;  %v1830_v1 = vpop.eup %1829 }
 0x483   : > { %v1127_v4 = vmul.f32 0.6931472, %v1830_v1 }
 0x484   : > { %1835 = vlog2.f32 %v1115_v52 }
 0x485   : > { %v1077_v53 = vpop.f32.mrb[14].mxu1 }
 0x486   : > { %v1102_v54 = vadd.f32 %v1101_v50, %v1077_v53  ;;  %v1116_v55 = vmax.f32 %v1077_v53, 1e-10  ;;  %v1613_v56 = vpop.f32.mrb[15].mxu1  ;;  %v1832_v6 = vpop.eup %1831 }
 0x487   : > { %v1129_v17 = vmul.f32 0.6931472, %v1832_v6 }
 0x488   : > { %1837 = vlog2.f32 %v1116_v55 }
 0x489   : > { %v1082_v57 = vpop.f32.mrb[16].mxu1 }
 0x48a   : > { %v1103_v58 = vadd.f32 %v1102_v54, %v1082_v57  ;;  %v1117_v59 = vmax.f32 %v1082_v57, 1e-10  ;;  %v1616_v60 = vpop.f32.mrb[17].mxu1  ;;  %v1834_v7 = vpop.eup %1833 }
 0x48b   : > { %v1131_v19 = vmul.f32 0.6931472, %v1834_v7 }
 0x48c   : > { %1839 = vlog2.f32 %v1117_v59 }
 0x48d   : > { %v1087_v0 = vpop.f32.mrb[18].mxu1 }
 0x48e   : > { %v1104_v2 = vadd.f32 %v1103_v58, %v1087_v0  ;;  %v1118_v3 = vmax.f32 %v1087_v0, 1e-10  ;;  %v1619_v5 = vpop.f32.mrb[19].mxu1  ;;  %v1836_v8 = vpop.eup %1835 }
 0x48f   : > { %v1133_v20 = vmul.f32 0.6931472, %v1836_v8 }
 0x490   : > { %1841 = vlog2.f32 %v1118_v3 }
 0x491   : > { %v1092_v9 = vpop.f32.mrb[20].mxu1 }
 0x492   : > { %v1838_v10 = vpop.eup %1837  ;;  %v1105_v12 = vadd.f32 %v1104_v2, %v1092_v9  ;;  %v1119_v13 = vmax.f32 %v1092_v9, 1e-10  ;;  %v1622_v14 = vpop.f32.mrb[21].mxu1 }
 0x493   : > { %v1135_v18 = vmul.f32 0.6931472, %v1838_v10 }
 0x494   : > { %vm1106_vm14 = vcmp.ne.f32.partialorder %v1105_v12, 0.0  ;;  %1843 = vlog2.f32 %v1119_v13 }
 0x495   : > { %v1541_v21 = vsel %vm1106_vm14, 1.0, %v2244_v35 }
 0x496   : > { %v1840_v22 = vpop.eup %1839  ;;  %v1142_v23 = vmul.f32 %v1541_v21, %v1121_v11  ;;  %v1143_v24 = vmul.f32 %v1541_v21, %v1123_v15  ;;  %v1144_v25 = vmul.f32 %v1541_v21, %v1125_v16  ;;  %v1145_v26 = vmul.f32 %v1541_v21, %v1127_v4 }
 0x497   : > { %v1137_v27 = vmul.f32 0.6931472, %v1840_v22  ;;  %v1146_v28 = vmul.f32 %v1541_v21, %v1129_v17  ;;  %v1147_v29 = vmul.f32 %v1541_v21, %v1131_v19  ;;  %v1148_v30 = vmul.f32 %v1541_v21, %v1133_v20 }
 0x498   : > { %v1657_v31 = vpack.c.bf16 %v1143_v24, %v1142_v23  ;;  %v1660_v32 = vpack.c.bf16 %v1145_v26, %v1144_v25  ;;  %v1149_v33 = vmul.f32 %v1541_v21, %v1135_v18 }
 0x499   : > { %v1663_v36 = vpack.c.bf16 %v1147_v29, %v1146_v28  ;;  %v1150_v37 = vmul.f32 %v1541_v21, %v1137_v27 }
 0x49a   : > { %v1842_v38 = vpop.eup %1841  ;;  %1658 = vmatpush3.bf16.msra.mxu0 %v1657_v31  ;;  %v1666_v39 = vpack.c.bf16 %v1149_v33, %v1148_v30 }
 0x49b   : > { %v1139_v40 = vmul.f32 0.6931472, %v1842_v38  ;;  %1659 = vmatprep.subr.bf16.mxu0 %v2242_v34 }
 0x49d   : > { %v1151_v41 = vmul.f32 %v1541_v21, %v1139_v40 }
 0x49e   : > { %v1844_v42 = vpop.eup %1843  ;;  %1661 = vmatpush3.bf16.msra.mxu0 %v1660_v32 }
 0x49f   : > { %v1141_v43 = vmul.f32 0.6931472, %v1844_v42  ;;  %1662 = vmatprep.subr.bf16.mxu0 %v2242_v34  ;;  %v1669_v44 = vpack.c.bf16 %v1151_v41, %v1150_v37 }
 0x4a1   : > { %v1152_v45 = vmul.f32 %v1541_v21, %v1141_v43 }
 0x4a2   : > { %1664 = vmatpush3.bf16.msra.mxu0 %v1663_v36 }
 0x4a3   : > { %1665 = vmatprep.subr.bf16.mxu0 %v2242_v34 }
 0x4a6   : > { %1667 = vmatpush3.bf16.msra.mxu0 %v1666_v39 }
 0x4a7   : > { %1668 = vmatprep.subr.bf16.mxu0 %v2242_v34 }
 0x4aa   : > { %1670 = vmatpush3.bf16.msra.mxu0 %v1669_v44 }
 0x4ab   : > { %1643 = vmatprep.subr.mxu0 %v2244_v35 }
 0x4ae   : > { %1644 = vmatpush3.msra.mxu0 %v1152_v45 }
 0x4af   : > { %1646 = vmatmul.mubr.msk.f32.vlgmr.msra.gmra.mrb[2].mxu0 %vm1154_vm15, %v1153_v46 }
 0x582   : > { %v1224_v48 = vpop.f32.mrb[2].mxu0 }
 0x583   : > { %v1234_v49 = vmul.f32 %v1232_v47, %v1224_v48  ;;  %v1647_v50 = vpop.f32.mrb[3].mxu0  ;;  %vm1237_vm0 = vcmp.ne.f32.partialorder %v1224_v48, 0.0 }
 0x584   : > { %v1543_v52 = vsel %vm1237_vm0, 1.0, %v2244_v35 }
 0x585   : > { %v1235_v51 = vmul.f32 1.442695, %v1234_v49 }
 0x587   : > { %1845 = vpow2.f32 %v1235_v51 }
 0x591   : > { %v1846_v34 = vpop.eup %1845 }
 0x592   : > { %v1240_v53 = vmul.f32 %v1846_v34, %v1543_v52 }
 0x594   : > { %1241 = vst [vmem:[%s661_s6] sm:$0x7] %v1240_v53 }
 0x595   : > { %2154 = shalt.err (!%p2151_p10)
}
 0x596   : > { %s2155_s15 = scalar_lea.hbm %s2852_s20, 64  ;;  %s2159_s23 = scalar_lea.hbm %s2996_s18, 128 }
 0x597   : > { %p2156_p0 = scmp.ne.s32.totalorder %s2852_s20, %s2155_s15  ;;  %p2160_p4 = scmp.lt.u32.totalorder %s2852_s20, %s2996_s18 }
 0x598   : > { %p2161_p9 = scmp.lt.u32.totalorder %s2159_s23, %s2155_s15  ;;  %p2163_p7 = scmp.lt.u32.totalorder %s2155_s15, %s2852_s20 }
 0x599   : > { %p2157_p1 = pnand %p2156_p0, %p2997_p8 }
 0x59a   : > { %p2162_p13 = por %p2161_p9, %p2160_p4 }
 0x59b   : > { %p2158_p12 = pneg %p2157_p1 }
 0x59c   : > { %p2164_p11 = por %p2163_p7, %p2162_p13 }
 0x59e   : > { %p2165_p5 = pnand %p2164_p11, %p2158_p12 }
 0x5a0   : > { %2168 = shalt.err (!%p2165_p5)
}
 0x5a1   : > { %1697 = dma.vmem_to_hbm [thread:$0]  (%p2997_p8), %s2854_s26, 64, %s2852_s20, %s1243_s24  }
 0x5a2 PF: > { %s2998_s8 = sld [smem:[#allocation29_spill]]  ;;  %s2999_s13 = sld [smem:[#allocation35_spill]] }
 0x5a3   : > { %s3000_s17 = sld [smem:[#allocation32_spill]] }
 0x5a8   : > { %s1268_s2 = sand.u32 1, %s2998_s8   ;;  %p3001_p6 = scmp.ne.s32.totalorder %s2999_s13, 0 }
 0x5a9   : > { %p3002_p2 = scmp.ge.s32.totalorder %s3000_s17, 2  ;;  %s1269_s27 = scalar_lea.sflag [#allocation6], %s1268_s2 }
 0x5ab   : > { %p1732_p3 = pnand %p3002_p2, %p3001_p6 }
 0x5ad   : > { %2210 = dma.done.wait (!%p1732_p3), %s1269_s27, 64  }
 0x5ae   : > { %2212 = vsyncadd (!%p1732_p3), %s1269_s27, 4294967232  ;;  %s3003_s22 = sld [smem:[#allocation37_spill]]  ;;  %s3004_s19 = sld [smem:[#allocation30_spill]] }
 0x5af   : > { %s3005_s20 = sld [smem:[#allocation31_spill]]  ;;  %s3006_s21 = sld [smem:[#allocation38_spill]] }
 0x5b4   : > { %p36_p10 = scmp.ge.s32.totalorder %s3003_s22, 4  }
 0x5b6   :  { %38 = sbr.rel (!%p36_p10) target bundleno = 21 (0x15), region = 203 }
 0x5bd   :  { %1274 = vsyncpa [#allocation5], 1 }
 0x5be   :  { %1276 = vsyncpa [#allocation5 + $0x1], 1 }
 0x5bf   :  { %1277 = vsyncpa [#allocation8], 1 }
 0x5c0   :  { %1279 = vsyncpa [#allocation8 + $0x1], 1 }
 0x5c1   :  { %1280 = vsyncpa [#allocation11], 1 }
 0x5c2   :  { %1282 = vsyncpa [#allocation11 + $0x1], 1 }
 0x5c3   :  { %1283 = vsyncpa [#allocation14], 1 }
 0x5c4   :  { %1285 = vsyncpa [#allocation14 + $0x1], 1 }
 0x5c5   :  { %1286 = vsyncpa [#allocation17], 1 }
 0x5c6   :  { %1287 = vsyncpa [#allocation20], 1 }
 0x5c7   :  { %1288 = vsyncpa [#allocation6], 1 }
 0x5c8   :  { %1290 = vsyncpa [#allocation6 + $0x1], 1 }

</bundles_post_ra>
